<compile_context>
chip_gen: v6e
topology: v6e:2x2x1
jax: 0.10.0
libtpu: 0.0.40
codegen_flags: <defaults>
</compile_context>

<pallas_src>
import jax
import jax.numpy as jnp
from jax.experimental import pallas as pl
from jax.experimental.pallas import tpu as pltpu

# ----------------------------- model config ---------------------------------
INPUT_SIZE = 16       # mel dim (PyTorch default 80; small for the demo)
HIDDEN_SIZE = 32      # PyTorch default 256; small for the demo
NUM_LAYERS = 3
OUT_FEATURES = 256    # hardcoded in the PyTorch module
BATCH = 4
SEQ = 8

_VMEM_SPEC = pl.BlockSpec(memory_space=pltpu.MemorySpace.VMEM)


# ----------------------------- fused kernel ----------------------------------
def _encoder_kernel(x_ref,
                    w0f_ih, w0b_ih, w0f_hh, w0b_hh, b0f, b0b,
                    w1f_ih, w1b_ih, w1f_hh, w1b_hh, b1f, b1b,
                    w2b_ihf, w2b_ihb, w2b_hh, b2b,
                    lin_w, lin_b,
                    out_ref,
                    gf, gb, s0, s1f):
    """Fused 3-layer bidirectional LSTM + Linear + ReLU + L2-normalize.

    x_ref : (T*B, D) time-major input, row index = t*B + b (VMEM)
    w*_ih : (D_in, 4H) input->gates weights (pre-transposed, gate order i,f,o,g)
    w*_hh : (H, 4H)   hidden->gates weights (pre-transposed)
    b*    : (1, 4H)   combined bias (b_ih + b_hh)
    w2b_ihf / w2b_ihb : layer-2-backward W_ih split into the rows multiplying the
                        fwd / bwd halves of layer-1's concatenated output.
    out_ref: (B, 256) normalized embeddings
    gf/gb : (T*B, 4H) precomputed input-gate slabs (reused layer to layer)
    s0    : (T*B, 2H) layer-0 output (fwd | bwd)
    s1f   : (T*B, H)  layer-1 forward output
    """
    B = out_ref.shape[0]
    H = w0f_hh.shape[0]
    T = x_ref.shape[0] // B

    def gates_to_state(gates, c):
        sig = jax.nn.sigmoid(gates[:, :3 * H])          # i, f, o in one EUP pass
        i = sig[:, 0:H]
        f = sig[:, H:2 * H]
        o = sig[:, 2 * H:3 * H]
        g = jnp.tanh(gates[:, 3 * H:])
        c_new = f * c + i * g
        return o * jnp.tanh(c_new), c_new

    def gates_to_state0(gates):
        # First step of every chain: h0 = c0 = 0 -> the f*c term is dead and the
        # recurrent matmul is skipped by the caller.
        sig = jax.nn.sigmoid(gates[:, :3 * H])
        i = sig[:, 0:H]
        o = sig[:, 2 * H:3 * H]
        g = jnp.tanh(gates[:, 3 * H:])
        c_new = i * g
        return o * jnp.tanh(c_new), c_new

    def cell(xg, h, c, whh):
        # xg already holds x @ W_ih + bias; only h @ W_hh stays on the chain.
        return gates_to_state(
            xg + jnp.dot(h, whh, preferred_element_type=jnp.float32), c)

    def row(ref, t):
        return ref[pl.ds(t * B, B), :]                  # static (B, 4H) slice

    # ---- layer 0: input-gate precompute (bias folded in), big MXU matmuls ----
    x = x_ref[...]
    gf[...] = jnp.dot(x, w0f_ih[...], preferred_element_type=jnp.float32) + b0f[...]
    gb[...] = jnp.dot(x, w0b_ih[...], preferred_element_type=jnp.float32) + b0b[...]

    # ---- layer 0 recurrence: fwd + bwd chains interleaved (T static, unrolled) ----
    w0f_hh_v = w0f_hh[...]
    w0b_hh_v = w0b_hh[...]
    hf, cf = gates_to_state0(row(gf, 0))
    hb, cb = gates_to_state0(row(gb, T - 1))
    s0[pl.ds(0, B), 0:H] = hf
    s0[pl.ds((T - 1) * B, B), H:2 * H] = hb
    for t in range(1, T):
        tb = T - 1 - t
        hf, cf = cell(row(gf, t), hf, cf, w0f_hh_v)
        hb, cb = cell(row(gb, tb), hb, cb, w0b_hh_v)
        s0[pl.ds(t * B, B), 0:H] = hf
        s0[pl.ds(tb * B, B), H:2 * H] = hb

    # ---- layer 1: input-gate precompute, one (T*B,2H)@(2H,4H) per direction ----
    s0v = s0[...]
    gf[...] = jnp.dot(s0v, w1f_ih[...], preferred_element_type=jnp.float32) + b1f[...]
    gb[...] = jnp.dot(s0v, w1b_ih[...], preferred_element_type=jnp.float32) + b1b[...]

    # ---- layer 1 forward recurrence fills s1f (backward is fused with layer 2) ----
    w1f_hh_v = w1f_hh[...]
    hf, cf = gates_to_state0(row(gf, 0))
    s1f[pl.ds(0, B), :] = hf
    for t in range(1, T):
        hf, cf = cell(row(gf, t), hf, cf, w1f_hh_v)
        s1f[pl.ds(t * B, B), :] = hf

    # ---- layer 2 (backward only): precompute the s1f-half input contribution.
    #      gf is dead after the layer-1 fwd loop -> reuse it (bias folded in). ----
    gf[...] = jnp.dot(s1f[...], w2b_ihf[...],
                      preferred_element_type=jnp.float32) + b2b[...]

    # ---- fused layer-1 backward + layer-2 backward, descending time (no s1b slab).
    #      Only the FINAL layer-2 backward hidden state (== hidden[-1]) is kept. ----
    w1b_hh_v = w1b_hh[...]
    w2b_ihb_v = w2b_ihb[...]
    w2b_hh_v = w2b_hh[...]
    tb = T - 1
    hb1, cb1 = gates_to_state0(row(gb, tb))
    hb2, cb2 = gates_to_state0(
        row(gf, tb) + jnp.dot(hb1, w2b_ihb_v, preferred_element_type=jnp.float32))
    for k in range(1, T):
        tb = T - 1 - k
        hb1, cb1 = cell(row(gb, tb), hb1, cb1, w1b_hh_v)
        g2 = (row(gf, tb)
              + jnp.dot(hb1, w2b_ihb_v, preferred_element_type=jnp.float32)
              + jnp.dot(hb2, w2b_hh_v, preferred_element_type=jnp.float32))
        hb2, cb2 = gates_to_state(g2, cb2)

    # ---- embed head: relu(linear(hidden[-1])), exact per-row L2 normalization ----
    y = jnp.dot(hb2, lin_w[...], preferred_element_type=jnp.float32) + lin_b[...]
    y = jnp.maximum(y, 0.0)
    out_ref[...] = y / jnp.sqrt(jnp.sum(y * y, axis=1, keepdims=True))


# --------------------------- kernel wrapper ----------------------------------
@jax.jit
def lstm_speaker_encoder_forward(utterances, params):
    """utterances: (B, T, INPUT_SIZE) batch-first, float32 -> (B, 256) embeds."""
    B, T, D = utterances.shape
    H = HIDDEN_SIZE
    # Time-major flat layout: row index = t*B + b (one cheap XLA transpose).
    x_tm = jnp.transpose(utterances, (1, 0, 2)).reshape(T * B, D)

    lp = params["lstm"]
    l0f, l0b = lp[0][0], lp[0][1]
    l1f, l1b = lp[1][0], lp[1][1]
    l2b = lp[2][1]                                   # fwd dir of last layer: dead work

    args = [
        x_tm,
        l0f["w_ih_t"], l0b["w_ih_t"], l0f["w_hh_t"], l0b["w_hh_t"], l0f["b"], l0b["b"],
        l1f["w_ih_t"], l1b["w_ih_t"], l1f["w_hh_t"], l1b["w_hh_t"], l1f["b"], l1b["b"],
        l2b["w_ih_t"][:H], l2b["w_ih_t"][H:], l2b["w_hh_t"], l2b["b"],
        params["linear"]["w_t"], params["linear"]["b"],
    ]

    return pl.pallas_call(
        _encoder_kernel,
        out_shape=jax.ShapeDtypeStruct((B, OUT_FEATURES), jnp.float32),
        in_specs=[_VMEM_SPEC] * len(args),
        out_specs=_VMEM_SPEC,
        scratch_shapes=[
            pltpu.VMEM((T * B, 4 * H), jnp.float32),  # fwd input-gate slab (reused)
            pltpu.VMEM((T * B, 4 * H), jnp.float32),  # bwd input-gate slab (reused)
            pltpu.VMEM((T * B, 2 * H), jnp.float32),  # layer-0 output (fwd | bwd)
            pltpu.VMEM((T * B, H), jnp.float32),      # layer-1 fwd output
        ],
    )(*args)


# --------------------------- parameter setup ---------------------------------
def _permute_gates(w):
    """Permute the 4H gate axis (axis 0) from PyTorch (i,f,g,o) to (i,f,o,g)."""
    H = HIDDEN_SIZE
    return jnp.concatenate([w[0:H], w[H:2 * H], w[3 * H:4 * H], w[2 * H:3 * H]],
                           axis=0)


def init_params(key):
    """Deterministic synthetic parameters with PyTorch-style uniform init.

    Weights are generated in PyTorch layout/order, then transposed to (Din, 4H)
    and gate-permuted to (i, f, o, g) for the kernel hot path.
    """
    params = {"lstm": []}
    bound = 1.0 / jnp.sqrt(HIDDEN_SIZE)
    for layer in range(NUM_LAYERS):
        d_in = INPUT_SIZE if layer == 0 else 2 * HIDDEN_SIZE
        dirs = []
        for _direction in range(2):
            key, k1, k2, k3, k4 = jax.random.split(key, 5)
            w_ih = jax.random.uniform(k1, (4 * HIDDEN_SIZE, d_in),
                                      minval=-bound, maxval=bound, dtype=jnp.float32)
            w_hh = jax.random.uniform(k2, (4 * HIDDEN_SIZE, HIDDEN_SIZE),
                                      minval=-bound, maxval=bound, dtype=jnp.float32)
            b_ih = jax.random.uniform(k3, (4 * HIDDEN_SIZE,),
                                      minval=-bound, maxval=bound, dtype=jnp.float32)
            b_hh = jax.random.uniform(k4, (4 * HIDDEN_SIZE,),
                                      minval=-bound, maxval=bound, dtype=jnp.float32)
            dirs.append({
                "w_ih_t": jnp.transpose(_permute_gates(w_ih)),          # (Din, 4H)
                "w_hh_t": jnp.transpose(_permute_gates(w_hh)),          # (H, 4H)
                "b": _permute_gates(b_ih + b_hh).reshape(1, 4 * HIDDEN_SIZE),
            })
        params["lstm"].append(dirs)

    key, k1, k2 = jax.random.split(key, 3)
    lbound = 1.0 / jnp.sqrt(HIDDEN_SIZE)
    lin_w = jax.random.uniform(k1, (OUT_FEATURES, HIDDEN_SIZE),
                               minval=-lbound, maxval=lbound, dtype=jnp.float32)
    lin_b = jax.random.uniform(k2, (OUT_FEATURES,),
                               minval=-lbound, maxval=lbound, dtype=jnp.float32)
    params["linear"] = {"w_t": jnp.transpose(lin_w),                    # (H, 256)
                        "b": lin_b.reshape(1, OUT_FEATURES)}            # (1, 256)
    return params


# --------------------------- pure-JAX reference ------------------------------
def _reference_forward(utterances, params):
    """Full bidirectional LSTM reference (gate order i,f,o,g to match params)."""
    x_tm = jnp.transpose(utterances, (1, 0, 2))
    layer_in = x_tm
    h_final = None
    for layer in range(NUM_LAYERS):
        outs = []
        for direction in range(2):
            p = params["lstm"][layer][direction]
            xin = layer_in if direction == 0 else layer_in[::-1]
            B = xin.shape[1]
            H = HIDDEN_SIZE

            def step(carry, xt, p=p):
                h, c = carry
                gates = xt @ p["w_ih_t"] + h @ p["w_hh_t"] + p["b"]
                i, f, o, g = jnp.split(gates, 4, axis=1)
                i, f, o = jax.nn.sigmoid(i), jax.nn.sigmoid(f), jax.nn.sigmoid(o)
                g = jnp.tanh(g)
                c = f * c + i * g
                h = o * jnp.tanh(c)
                return (h, c), h

            (hf, _), seq = jax.lax.scan(step, (jnp.zeros((B, H)), jnp.zeros((B, H))), xin)
            if direction == 1:
                seq = seq[::-1]
            outs.append(seq)
            h_final = hf          # ends as backward dir of last layer == hidden[-1]
        layer_in = jnp.concatenate(outs, axis=-1)
    y = jnp.maximum(h_final @ params["linear"]["w_t"] + params["linear"]["b"], 0.0)
    return y / jnp.sqrt(jnp.sum(y * y, axis=1, keepdims=True))


# TODO(synk): similarity_matrix / GE2E loss / EER (roc_curve + brentq) and
# do_gradient_ops are training-only utilities, not part of forward(); not ported.

if __name__ == "__main__":
    key = jax.random.PRNGKey(0)
    key, pkey, xkey = jax.random.split(key, 3)
    params = init_params(pkey)
    utterances = jax.random.normal(xkey, (BATCH, SEQ, INPUT_SIZE), dtype=jnp.float32)

    embeds = lstm_speaker_encoder_forward(utterances, params)
    embeds = jax.block_until_ready(embeds)

    ref = _reference_forward(utterances, params)
    assert embeds.shape == (BATCH, OUT_FEATURES)
    assert jnp.all(jnp.isfinite(embeds))
    assert jnp.max(jnp.abs(embeds - ref)) < 1e-3, "Pallas output mismatch vs JAX reference"

    print("KERNEL_OK")
</pallas_src>

<mosaic_0001>
module attributes {stable_mosaic.version = 11 : i64} {
  func.func @_encoder_kernel(%arg0: memref<32x16xf32, #tpu.memory_space<vmem>>, %arg1: memref<16x128xf32, #tpu.memory_space<vmem>>, %arg2: memref<16x128xf32, #tpu.memory_space<vmem>>, %arg3: memref<32x128xf32, #tpu.memory_space<vmem>>, %arg4: memref<32x128xf32, #tpu.memory_space<vmem>>, %arg5: memref<1x128xf32, #tpu.memory_space<vmem>>, %arg6: memref<1x128xf32, #tpu.memory_space<vmem>>, %arg7: memref<64x128xf32, #tpu.memory_space<vmem>>, %arg8: memref<64x128xf32, #tpu.memory_space<vmem>>, %arg9: memref<32x128xf32, #tpu.memory_space<vmem>>, %arg10: memref<32x128xf32, #tpu.memory_space<vmem>>, %arg11: memref<1x128xf32, #tpu.memory_space<vmem>>, %arg12: memref<1x128xf32, #tpu.memory_space<vmem>>, %arg13: memref<32x128xf32, #tpu.memory_space<vmem>>, %arg14: memref<32x128xf32, #tpu.memory_space<vmem>>, %arg15: memref<32x128xf32, #tpu.memory_space<vmem>>, %arg16: memref<1x128xf32, #tpu.memory_space<vmem>>, %arg17: memref<32x256xf32, #tpu.memory_space<vmem>>, %arg18: memref<1x256xf32, #tpu.memory_space<vmem>>, %arg19: memref<4x256xf32, #tpu.memory_space<vmem>>, %arg20: memref<32x128xf32, #tpu.memory_space<vmem>>, %arg21: memref<32x128xf32, #tpu.memory_space<vmem>>, %arg22: memref<32x64xf32, #tpu.memory_space<vmem>>, %arg23: memref<32x32xf32, #tpu.memory_space<vmem>>) attributes {dimension_semantics = [], scalar_prefetch = 0 : i64, scratch_operands = 4 : i64, tpu.core_type = #tpu.core_type<tc>} {
    %c0 = arith.constant 0 : index
    %c0_0 = arith.constant 0 : index
    %0 = vector.load %arg0[%c0, %c0_0] : memref<32x16xf32, #tpu.memory_space<vmem>>, vector<32x16xf32>
    %c0_1 = arith.constant 0 : index
    %c0_2 = arith.constant 0 : index
    %1 = vector.load %arg1[%c0_1, %c0_2] : memref<16x128xf32, #tpu.memory_space<vmem>>, vector<16x128xf32>
    %cst = arith.constant dense<0.000000e+00> : vector<32x128xf32>
    %2 = tpu.matmul %0, %1, %cst {dimension_numbers = #tpu.dot_dimension_numbers<[1], [0], [0], [1], [0, 0, 1, 1], [], []>} : vector<32x16xf32>, vector<16x128xf32>, vector<32x128xf32> -> vector<32x128xf32>
    %c0_3 = arith.constant 0 : index
    %c0_4 = arith.constant 0 : index
    %3 = vector.load %arg5[%c0_3, %c0_4] : memref<1x128xf32, #tpu.memory_space<vmem>>, vector<1x128xf32>
    %4 = vector.broadcast %3 : vector<1x128xf32> to vector<32x128xf32>
    %5 = arith.addf %2, %4 : vector<32x128xf32>
    %c0_5 = arith.constant 0 : index
    %c0_6 = arith.constant 0 : index
    %6 = vector.load %arg20[%c0_5, %c0_6] : memref<32x128xf32, #tpu.memory_space<vmem>>, vector<32x128xf32>
    tpu.vector_store %arg20[%c0_5, %c0_6], %5 {strides = array<i32>} : memref<32x128xf32, #tpu.memory_space<vmem>>, vector<32x128xf32>,
    %c0_7 = arith.constant 0 : index
    %c0_8 = arith.constant 0 : index
    %7 = vector.load %arg2[%c0_7, %c0_8] : memref<16x128xf32, #tpu.memory_space<vmem>>, vector<16x128xf32>
    %cst_9 = arith.constant dense<0.000000e+00> : vector<32x128xf32>
    %8 = tpu.matmul %0, %7, %cst_9 {dimension_numbers = #tpu.dot_dimension_numbers<[1], [0], [0], [1], [0, 0, 1, 1], [], []>} : vector<32x16xf32>, vector<16x128xf32>, vector<32x128xf32> -> vector<32x128xf32>
    %c0_10 = arith.constant 0 : index
    %c0_11 = arith.constant 0 : index
    %9 = vector.load %arg6[%c0_10, %c0_11] : memref<1x128xf32, #tpu.memory_space<vmem>>, vector<1x128xf32>
    %10 = vector.broadcast %9 : vector<1x128xf32> to vector<32x128xf32>
    %11 = arith.addf %8, %10 : vector<32x128xf32>
    %c0_12 = arith.constant 0 : index
    %c0_13 = arith.constant 0 : index
    %12 = vector.load %arg21[%c0_12, %c0_13] : memref<32x128xf32, #tpu.memory_space<vmem>>, vector<32x128xf32>
    tpu.vector_store %arg21[%c0_12, %c0_13], %11 {strides = array<i32>} : memref<32x128xf32, #tpu.memory_space<vmem>>, vector<32x128xf32>,
    %c0_14 = arith.constant 0 : index
    %c0_15 = arith.constant 0 : index
    %13 = vector.load %arg3[%c0_14, %c0_15] : memref<32x128xf32, #tpu.memory_space<vmem>>, vector<32x128xf32>
    %c0_16 = arith.constant 0 : index
    %c0_17 = arith.constant 0 : index
    %14 = vector.load %arg4[%c0_16, %c0_17] : memref<32x128xf32, #tpu.memory_space<vmem>>, vector<32x128xf32>
    %c0_18 = arith.constant 0 : index
    %c0_19 = arith.constant 0 : index
    %15 = vector.load %arg20[%c0_18, %c0_19] : memref<32x128xf32, #tpu.memory_space<vmem>>, vector<4x128xf32>
    %16 = vector.extract_strided_slice %15 {offsets = [0, 0], sizes = [4, 96], strides = [1, 1]} : vector<4x128xf32> to vector<4x96xf32>
    %17 = arith.negf %16 : vector<4x96xf32>
    %18 = math.exp %17 : vector<4x96xf32>
    %cst_20 = arith.constant 1.000000e+00 : f32
    %19 = vector.broadcast %cst_20 : f32 to vector<4x96xf32>
    %20 = arith.addf %19, %18 : vector<4x96xf32>
    %21 = arith.divf %19, %20 : vector<4x96xf32>
    %22 = vector.extract_strided_slice %21 {offsets = [0, 0], sizes = [4, 32], strides = [1, 1]} : vector<4x96xf32> to vector<4x32xf32>
    %23 = vector.extract_strided_slice %21 {offsets = [0, 64], sizes = [4, 32], strides = [1, 1]} : vector<4x96xf32> to vector<4x32xf32>
    %24 = vector.extract_strided_slice %15 {offsets = [0, 96], sizes = [4, 32], strides = [1, 1]} : vector<4x128xf32> to vector<4x32xf32>
    %25 = math.tanh %24 : vector<4x32xf32>
    %26 = arith.mulf %22, %25 : vector<4x32xf32>
    %27 = math.tanh %26 : vector<4x32xf32>
    %28 = arith.mulf %23, %27 : vector<4x32xf32>
    %c28 = arith.constant 28 : index
    %c0_21 = arith.constant 0 : index
    %29 = vector.load %arg21[%c28, %c0_21] : memref<32x128xf32, #tpu.memory_space<vmem>>, vector<4x128xf32>
    %30 = vector.extract_strided_slice %29 {offsets = [0, 0], sizes = [4, 96], strides = [1, 1]} : vector<4x128xf32> to vector<4x96xf32>
    %31 = arith.negf %30 : vector<4x96xf32>
    %32 = math.exp %31 : vector<4x96xf32>
    %cst_22 = arith.constant 1.000000e+00 : f32
    %33 = vector.broadcast %cst_22 : f32 to vector<4x96xf32>
    %34 = arith.addf %33, %32 : vector<4x96xf32>
    %35 = arith.divf %33, %34 : vector<4x96xf32>
    %36 = vector.extract_strided_slice %35 {offsets = [0, 0], sizes = [4, 32], strides = [1, 1]} : vector<4x96xf32> to vector<4x32xf32>
    %37 = vector.extract_strided_slice %35 {offsets = [0, 64], sizes = [4, 32], strides = [1, 1]} : vector<4x96xf32> to vector<4x32xf32>
    %38 = vector.extract_strided_slice %29 {offsets = [0, 96], sizes = [4, 32], strides = [1, 1]} : vector<4x128xf32> to vector<4x32xf32>
    %39 = math.tanh %38 : vector<4x32xf32>
    %40 = arith.mulf %36, %39 : vector<4x32xf32>
    %41 = math.tanh %40 : vector<4x32xf32>
    %42 = arith.mulf %37, %41 : vector<4x32xf32>
    %c0_23 = arith.constant 0 : index
    %c0_24 = arith.constant 0 : index
    %43 = vector.load %arg22[%c0_23, %c0_24] : memref<32x64xf32, #tpu.memory_space<vmem>>, vector<4x32xf32>
    tpu.vector_store %arg22[%c0_23, %c0_24], %28 {strides = array<i32>} : memref<32x64xf32, #tpu.memory_space<vmem>>, vector<4x32xf32>,
    %c28_25 = arith.constant 28 : index
    %c32 = arith.constant 32 : index
    %44 = vector.load %arg22[%c28_25, %c32] : memref<32x64xf32, #tpu.memory_space<vmem>>, vector<4x32xf32>
    tpu.vector_store %arg22[%c28_25, %c32], %42 {strides = array<i32>} : memref<32x64xf32, #tpu.memory_space<vmem>>, vector<4x32xf32>,
    %c4 = arith.constant 4 : index
    %c0_26 = arith.constant 0 : index
    %45 = vector.load %arg20[%c4, %c0_26] : memref<32x128xf32, #tpu.memory_space<vmem>>, vector<4x128xf32>
    %cst_27 = arith.constant dense<0.000000e+00> : vector<4x128xf32>
    %46 = tpu.matmul %28, %13, %cst_27 {dimension_numbers = #tpu.dot_dimension_numbers<[1], [0], [0], [1], [0, 0, 1, 1], [], []>} : vector<4x32xf32>, vector<32x128xf32>, vector<4x128xf32> -> vector<4x128xf32>
    %47 = arith.addf %45, %46 : vector<4x128xf32>
    %48 = vector.extract_strided_slice %47 {offsets = [0, 0], sizes = [4, 96], strides = [1, 1]} : vector<4x128xf32> to vector<4x96xf32>
    %49 = arith.negf %48 : vector<4x96xf32>
    %50 = math.exp %49 : vector<4x96xf32>
    %cst_28 = arith.constant 1.000000e+00 : f32
    %51 = vector.broadcast %cst_28 : f32 to vector<4x96xf32>
    %52 = arith.addf %51, %50 : vector<4x96xf32>
    %53 = arith.divf %51, %52 : vector<4x96xf32>
    %54 = vector.extract_strided_slice %53 {offsets = [0, 0], sizes = [4, 32], strides = [1, 1]} : vector<4x96xf32> to vector<4x32xf32>
    %55 = vector.extract_strided_slice %53 {offsets = [0, 32], sizes = [4, 32], strides = [1, 1]} : vector<4x96xf32> to vector<4x32xf32>
    %56 = vector.extract_strided_slice %53 {offsets = [0, 64], sizes = [4, 32], strides = [1, 1]} : vector<4x96xf32> to vector<4x32xf32>
    %57 = vector.extract_strided_slice %47 {offsets = [0, 96], sizes = [4, 32], strides = [1, 1]} : vector<4x128xf32> to vector<4x32xf32>
    %58 = math.tanh %57 : vector<4x32xf32>
    %59 = arith.mulf %55, %26 : vector<4x32xf32>
    %60 = arith.mulf %54, %58 : vector<4x32xf32>
    %61 = arith.addf %59, %60 : vector<4x32xf32>
    %62 = math.tanh %61 : vector<4x32xf32>
    %63 = arith.mulf %56, %62 : vector<4x32xf32>
    %c24 = arith.constant 24 : index
    %c0_29 = arith.constant 0 : index
    %64 = vector.load %arg21[%c24, %c0_29] : memref<32x128xf32, #tpu.memory_space<vmem>>, vector<4x128xf32>
    %cst_30 = arith.constant dense<0.000000e+00> : vector<4x128xf32>
    %65 = tpu.matmul %42, %14, %cst_30 {dimension_numbers = #tpu.dot_dimension_numbers<[1], [0], [0], [1], [0, 0, 1, 1], [], []>} : vector<4x32xf32>, vector<32x128xf32>, vector<4x128xf32> -> vector<4x128xf32>
    %66 = arith.addf %64, %65 : vector<4x128xf32>
    %67 = vector.extract_strided_slice %66 {offsets = [0, 0], sizes = [4, 96], strides = [1, 1]} : vector<4x128xf32> to vector<4x96xf32>
    %68 = arith.negf %67 : vector<4x96xf32>
    %69 = math.exp %68 : vector<4x96xf32>
    %cst_31 = arith.constant 1.000000e+00 : f32
    %70 = vector.broadcast %cst_31 : f32 to vector<4x96xf32>
    %71 = arith.addf %70, %69 : vector<4x96xf32>
    %72 = arith.divf %70, %71 : vector<4x96xf32>
    %73 = vector.extract_strided_slice %72 {offsets = [0, 0], sizes = [4, 32], strides = [1, 1]} : vector<4x96xf32> to vector<4x32xf32>
    %74 = vector.extract_strided_slice %72 {offsets = [0, 32], sizes = [4, 32], strides = [1, 1]} : vector<4x96xf32> to vector<4x32xf32>
    %75 = vector.extract_strided_slice %72 {offsets = [0, 64], sizes = [4, 32], strides = [1, 1]} : vector<4x96xf32> to vector<4x32xf32>
    %76 = vector.extract_strided_slice %66 {offsets = [0, 96], sizes = [4, 32], strides = [1, 1]} : vector<4x128xf32> to vector<4x32xf32>
    %77 = math.tanh %76 : vector<4x32xf32>
    %78 = arith.mulf %74, %40 : vector<4x32xf32>
    %79 = arith.mulf %73, %77 : vector<4x32xf32>
    %80 = arith.addf %78, %79 : vector<4x32xf32>
    %81 = math.tanh %80 : vector<4x32xf32>
    %82 = arith.mulf %75, %81 : vector<4x32xf32>
    %c4_32 = arith.constant 4 : index
    %c0_33 = arith.constant 0 : index
    %83 = vector.load %arg22[%c4_32, %c0_33] : memref<32x64xf32, #tpu.memory_space<vmem>>, vector<4x32xf32>
    tpu.vector_store %arg22[%c4_32, %c0_33], %63 {strides = array<i32>} : memref<32x64xf32, #tpu.memory_space<vmem>>, vector<4x32xf32>,
    %c24_34 = arith.constant 24 : index
    %c32_35 = arith.constant 32 : index
    %84 = vector.load %arg22[%c24_34, %c32_35] : memref<32x64xf32, #tpu.memory_space<vmem>>, vector<4x32xf32>
    tpu.vector_store %arg22[%c24_34, %c32_35], %82 {strides = array<i32>} : memref<32x64xf32, #tpu.memory_space<vmem>>, vector<4x32xf32>,
    %c8 = arith.constant 8 : index
    %c0_36 = arith.constant 0 : index
    %85 = vector.load %arg20[%c8, %c0_36] : memref<32x128xf32, #tpu.memory_space<vmem>>, vector<4x128xf32>
    %cst_37 = arith.constant dense<0.000000e+00> : vector<4x128xf32>
    %86 = tpu.matmul %63, %13, %cst_37 {dimension_numbers = #tpu.dot_dimension_numbers<[1], [0], [0], [1], [0, 0, 1, 1], [], []>} : vector<4x32xf32>, vector<32x128xf32>, vector<4x128xf32> -> vector<4x128xf32>
    %87 = arith.addf %85, %86 : vector<4x128xf32>
    %88 = vector.extract_strided_slice %87 {offsets = [0, 0], sizes = [4, 96], strides = [1, 1]} : vector<4x128xf32> to vector<4x96xf32>
    %89 = arith.negf %88 : vector<4x96xf32>
    %90 = math.exp %89 : vector<4x96xf32>
    %cst_38 = arith.constant 1.000000e+00 : f32
    %91 = vector.broadcast %cst_38 : f32 to vector<4x96xf32>
    %92 = arith.addf %91, %90 : vector<4x96xf32>
    %93 = arith.divf %91, %92 : vector<4x96xf32>
    %94 = vector.extract_strided_slice %93 {offsets = [0, 0], sizes = [4, 32], strides = [1, 1]} : vector<4x96xf32> to vector<4x32xf32>
    %95 = vector.extract_strided_slice %93 {offsets = [0, 32], sizes = [4, 32], strides = [1, 1]} : vector<4x96xf32> to vector<4x32xf32>
    %96 = vector.extract_strided_slice %93 {offsets = [0, 64], sizes = [4, 32], strides = [1, 1]} : vector<4x96xf32> to vector<4x32xf32>
    %97 = vector.extract_strided_slice %87 {offsets = [0, 96], sizes = [4, 32], strides = [1, 1]} : vector<4x128xf32> to vector<4x32xf32>
    %98 = math.tanh %97 : vector<4x32xf32>
    %99 = arith.mulf %95, %61 : vector<4x32xf32>
    %100 = arith.mulf %94, %98 : vector<4x32xf32>
    %101 = arith.addf %99, %100 : vector<4x32xf32>
    %102 = math.tanh %101 : vector<4x32xf32>
    %103 = arith.mulf %96, %102 : vector<4x32xf32>
    %c20 = arith.constant 20 : index
    %c0_39 = arith.constant 0 : index
    %104 = vector.load %arg21[%c20, %c0_39] : memref<32x128xf32, #tpu.memory_space<vmem>>, vector<4x128xf32>
    %cst_40 = arith.constant dense<0.000000e+00> : vector<4x128xf32>
    %105 = tpu.matmul %82, %14, %cst_40 {dimension_numbers = #tpu.dot_dimension_numbers<[1], [0], [0], [1], [0, 0, 1, 1], [], []>} : vector<4x32xf32>, vector<32x128xf32>, vector<4x128xf32> -> vector<4x128xf32>
    %106 = arith.addf %104, %105 : vector<4x128xf32>
    %107 = vector.extract_strided_slice %106 {offsets = [0, 0], sizes = [4, 96], strides = [1, 1]} : vector<4x128xf32> to vector<4x96xf32>
    %108 = arith.negf %107 : vector<4x96xf32>
    %109 = math.exp %108 : vector<4x96xf32>
    %cst_41 = arith.constant 1.000000e+00 : f32
    %110 = vector.broadcast %cst_41 : f32 to vector<4x96xf32>
    %111 = arith.addf %110, %109 : vector<4x96xf32>
    %112 = arith.divf %110, %111 : vector<4x96xf32>
    %113 = vector.extract_strided_slice %112 {offsets = [0, 0], sizes = [4, 32], strides = [1, 1]} : vector<4x96xf32> to vector<4x32xf32>
    %114 = vector.extract_strided_slice %112 {offsets = [0, 32], sizes = [4, 32], strides = [1, 1]} : vector<4x96xf32> to vector<4x32xf32>
    %115 = vector.extract_strided_slice %112 {offsets = [0, 64], sizes = [4, 32], strides = [1, 1]} : vector<4x96xf32> to vector<4x32xf32>
    %116 = vector.extract_strided_slice %106 {offsets = [0, 96], sizes = [4, 32], strides = [1, 1]} : vector<4x128xf32> to vector<4x32xf32>
    %117 = math.tanh %116 : vector<4x32xf32>
    %118 = arith.mulf %114, %80 : vector<4x32xf32>
    %119 = arith.mulf %113, %117 : vector<4x32xf32>
    %120 = arith.addf %118, %119 : vector<4x32xf32>
    %121 = math.tanh %120 : vector<4x32xf32>
    %122 = arith.mulf %115, %121 : vector<4x32xf32>
    %c8_42 = arith.constant 8 : index
    %c0_43 = arith.constant 0 : index
    %123 = vector.load %arg22[%c8_42, %c0_43] : memref<32x64xf32, #tpu.memory_space<vmem>>, vector<4x32xf32>
    tpu.vector_store %arg22[%c8_42, %c0_43], %103 {strides = array<i32>} : memref<32x64xf32, #tpu.memory_space<vmem>>, vector<4x32xf32>,
    %c20_44 = arith.constant 20 : index
    %c32_45 = arith.constant 32 : index
    %124 = vector.load %arg22[%c20_44, %c32_45] : memref<32x64xf32, #tpu.memory_space<vmem>>, vector<4x32xf32>
    tpu.vector_store %arg22[%c20_44, %c32_45], %122 {strides = array<i32>} : memref<32x64xf32, #tpu.memory_space<vmem>>, vector<4x32xf32>,
    %c12 = arith.constant 12 : index
    %c0_46 = arith.constant 0 : index
    %125 = vector.load %arg20[%c12, %c0_46] : memref<32x128xf32, #tpu.memory_space<vmem>>, vector<4x128xf32>
    %cst_47 = arith.constant dense<0.000000e+00> : vector<4x128xf32>
    %126 = tpu.matmul %103, %13, %cst_47 {dimension_numbers = #tpu.dot_dimension_numbers<[1], [0], [0], [1], [0, 0, 1, 1], [], []>} : vector<4x32xf32>, vector<32x128xf32>, vector<4x128xf32> -> vector<4x128xf32>
    %127 = arith.addf %125, %126 : vector<4x128xf32>
    %128 = vector.extract_strided_slice %127 {offsets = [0, 0], sizes = [4, 96], strides = [1, 1]} : vector<4x128xf32> to vector<4x96xf32>
    %129 = arith.negf %128 : vector<4x96xf32>
    %130 = math.exp %129 : vector<4x96xf32>
    %cst_48 = arith.constant 1.000000e+00 : f32
    %131 = vector.broadcast %cst_48 : f32 to vector<4x96xf32>
    %132 = arith.addf %131, %130 : vector<4x96xf32>
    %133 = arith.divf %131, %132 : vector<4x96xf32>
    %134 = vector.extract_strided_slice %133 {offsets = [0, 0], sizes = [4, 32], strides = [1, 1]} : vector<4x96xf32> to vector<4x32xf32>
    %135 = vector.extract_strided_slice %133 {offsets = [0, 32], sizes = [4, 32], strides = [1, 1]} : vector<4x96xf32> to vector<4x32xf32>
    %136 = vector.extract_strided_slice %133 {offsets = [0, 64], sizes = [4, 32], strides = [1, 1]} : vector<4x96xf32> to vector<4x32xf32>
    %137 = vector.extract_strided_slice %127 {offsets = [0, 96], sizes = [4, 32], strides = [1, 1]} : vector<4x128xf32> to vector<4x32xf32>
    %138 = math.tanh %137 : vector<4x32xf32>
    %139 = arith.mulf %135, %101 : vector<4x32xf32>
    %140 = arith.mulf %134, %138 : vector<4x32xf32>
    %141 = arith.addf %139, %140 : vector<4x32xf32>
    %142 = math.tanh %141 : vector<4x32xf32>
    %143 = arith.mulf %136, %142 : vector<4x32xf32>
    %c16 = arith.constant 16 : index
    %c0_49 = arith.constant 0 : index
    %144 = vector.load %arg21[%c16, %c0_49] : memref<32x128xf32, #tpu.memory_space<vmem>>, vector<4x128xf32>
    %cst_50 = arith.constant dense<0.000000e+00> : vector<4x128xf32>
    %145 = tpu.matmul %122, %14, %cst_50 {dimension_numbers = #tpu.dot_dimension_numbers<[1], [0], [0], [1], [0, 0, 1, 1], [], []>} : vector<4x32xf32>, vector<32x128xf32>, vector<4x128xf32> -> vector<4x128xf32>
    %146 = arith.addf %144, %145 : vector<4x128xf32>
    %147 = vector.extract_strided_slice %146 {offsets = [0, 0], sizes = [4, 96], strides = [1, 1]} : vector<4x128xf32> to vector<4x96xf32>
    %148 = arith.negf %147 : vector<4x96xf32>
    %149 = math.exp %148 : vector<4x96xf32>
    %cst_51 = arith.constant 1.000000e+00 : f32
    %150 = vector.broadcast %cst_51 : f32 to vector<4x96xf32>
    %151 = arith.addf %150, %149 : vector<4x96xf32>
    %152 = arith.divf %150, %151 : vector<4x96xf32>
    %153 = vector.extract_strided_slice %152 {offsets = [0, 0], sizes = [4, 32], strides = [1, 1]} : vector<4x96xf32> to vector<4x32xf32>
    %154 = vector.extract_strided_slice %152 {offsets = [0, 32], sizes = [4, 32], strides = [1, 1]} : vector<4x96xf32> to vector<4x32xf32>
    %155 = vector.extract_strided_slice %152 {offsets = [0, 64], sizes = [4, 32], strides = [1, 1]} : vector<4x96xf32> to vector<4x32xf32>
    %156 = vector.extract_strided_slice %146 {offsets = [0, 96], sizes = [4, 32], strides = [1, 1]} : vector<4x128xf32> to vector<4x32xf32>
    %157 = math.tanh %156 : vector<4x32xf32>
    %158 = arith.mulf %154, %120 : vector<4x32xf32>
    %159 = arith.mulf %153, %157 : vector<4x32xf32>
    %160 = arith.addf %158, %159 : vector<4x32xf32>
    %161 = math.tanh %160 : vector<4x32xf32>
    %162 = arith.mulf %155, %161 : vector<4x32xf32>
    %c12_52 = arith.constant 12 : index
    %c0_53 = arith.constant 0 : index
    %163 = vector.load %arg22[%c12_52, %c0_53] : memref<32x64xf32, #tpu.memory_space<vmem>>, vector<4x32xf32>
    tpu.vector_store %arg22[%c12_52, %c0_53], %143 {strides = array<i32>} : memref<32x64xf32, #tpu.memory_space<vmem>>, vector<4x32xf32>,
    %c16_54 = arith.constant 16 : index
    %c32_55 = arith.constant 32 : index
    %164 = vector.load %arg22[%c16_54, %c32_55] : memref<32x64xf32, #tpu.memory_space<vmem>>, vector<4x32xf32>
    tpu.vector_store %arg22[%c16_54, %c32_55], %162 {strides = array<i32>} : memref<32x64xf32, #tpu.memory_space<vmem>>, vector<4x32xf32>,
    %c16_56 = arith.constant 16 : index
    %c0_57 = arith.constant 0 : index
    %165 = vector.load %arg20[%c16_56, %c0_57] : memref<32x128xf32, #tpu.memory_space<vmem>>, vector<4x128xf32>
    %cst_58 = arith.constant dense<0.000000e+00> : vector<4x128xf32>
    %166 = tpu.matmul %143, %13, %cst_58 {dimension_numbers = #tpu.dot_dimension_numbers<[1], [0], [0], [1], [0, 0, 1, 1], [], []>} : vector<4x32xf32>, vector<32x128xf32>, vector<4x128xf32> -> vector<4x128xf32>
    %167 = arith.addf %165, %166 : vector<4x128xf32>
    %168 = vector.extract_strided_slice %167 {offsets = [0, 0], sizes = [4, 96], strides = [1, 1]} : vector<4x128xf32> to vector<4x96xf32>
    %169 = arith.negf %168 : vector<4x96xf32>
    %170 = math.exp %169 : vector<4x96xf32>
    %cst_59 = arith.constant 1.000000e+00 : f32
    %171 = vector.broadcast %cst_59 : f32 to vector<4x96xf32>
    %172 = arith.addf %171, %170 : vector<4x96xf32>
    %173 = arith.divf %171, %172 : vector<4x96xf32>
    %174 = vector.extract_strided_slice %173 {offsets = [0, 0], sizes = [4, 32], strides = [1, 1]} : vector<4x96xf32> to vector<4x32xf32>
    %175 = vector.extract_strided_slice %173 {offsets = [0, 32], sizes = [4, 32], strides = [1, 1]} : vector<4x96xf32> to vector<4x32xf32>
    %176 = vector.extract_strided_slice %173 {offsets = [0, 64], sizes = [4, 32], strides = [1, 1]} : vector<4x96xf32> to vector<4x32xf32>
    %177 = vector.extract_strided_slice %167 {offsets = [0, 96], sizes = [4, 32], strides = [1, 1]} : vector<4x128xf32> to vector<4x32xf32>
    %178 = math.tanh %177 : vector<4x32xf32>
    %179 = arith.mulf %175, %141 : vector<4x32xf32>
    %180 = arith.mulf %174, %178 : vector<4x32xf32>
    %181 = arith.addf %179, %180 : vector<4x32xf32>
    %182 = math.tanh %181 : vector<4x32xf32>
    %183 = arith.mulf %176, %182 : vector<4x32xf32>
    %c12_60 = arith.constant 12 : index
    %c0_61 = arith.constant 0 : index
    %184 = vector.load %arg21[%c12_60, %c0_61] : memref<32x128xf32, #tpu.memory_space<vmem>>, vector<4x128xf32>
    %cst_62 = arith.constant dense<0.000000e+00> : vector<4x128xf32>
    %185 = tpu.matmul %162, %14, %cst_62 {dimension_numbers = #tpu.dot_dimension_numbers<[1], [0], [0], [1], [0, 0, 1, 1], [], []>} : vector<4x32xf32>, vector<32x128xf32>, vector<4x128xf32> -> vector<4x128xf32>
    %186 = arith.addf %184, %185 : vector<4x128xf32>
    %187 = vector.extract_strided_slice %186 {offsets = [0, 0], sizes = [4, 96], strides = [1, 1]} : vector<4x128xf32> to vector<4x96xf32>
    %188 = arith.negf %187 : vector<4x96xf32>
    %189 = math.exp %188 : vector<4x96xf32>
    %cst_63 = arith.constant 1.000000e+00 : f32
    %190 = vector.broadcast %cst_63 : f32 to vector<4x96xf32>
    %191 = arith.addf %190, %189 : vector<4x96xf32>
    %192 = arith.divf %190, %191 : vector<4x96xf32>
    %193 = vector.extract_strided_slice %192 {offsets = [0, 0], sizes = [4, 32], strides = [1, 1]} : vector<4x96xf32> to vector<4x32xf32>
    %194 = vector.extract_strided_slice %192 {offsets = [0, 32], sizes = [4, 32], strides = [1, 1]} : vector<4x96xf32> to vector<4x32xf32>
    %195 = vector.extract_strided_slice %192 {offsets = [0, 64], sizes = [4, 32], strides = [1, 1]} : vector<4x96xf32> to vector<4x32xf32>
    %196 = vector.extract_strided_slice %186 {offsets = [0, 96], sizes = [4, 32], strides = [1, 1]} : vector<4x128xf32> to vector<4x32xf32>
    %197 = math.tanh %196 : vector<4x32xf32>
    %198 = arith.mulf %194, %160 : vector<4x32xf32>
    %199 = arith.mulf %193, %197 : vector<4x32xf32>
    %200 = arith.addf %198, %199 : vector<4x32xf32>
    %201 = math.tanh %200 : vector<4x32xf32>
    %202 = arith.mulf %195, %201 : vector<4x32xf32>
    %c16_64 = arith.constant 16 : index
    %c0_65 = arith.constant 0 : index
    %203 = vector.load %arg22[%c16_64, %c0_65] : memref<32x64xf32, #tpu.memory_space<vmem>>, vector<4x32xf32>
    tpu.vector_store %arg22[%c16_64, %c0_65], %183 {strides = array<i32>} : memref<32x64xf32, #tpu.memory_space<vmem>>, vector<4x32xf32>,
    %c12_66 = arith.constant 12 : index
    %c32_67 = arith.constant 32 : index
    %204 = vector.load %arg22[%c12_66, %c32_67] : memref<32x64xf32, #tpu.memory_space<vmem>>, vector<4x32xf32>
    tpu.vector_store %arg22[%c12_66, %c32_67], %202 {strides = array<i32>} : memref<32x64xf32, #tpu.memory_space<vmem>>, vector<4x32xf32>,
    %c20_68 = arith.constant 20 : index
    %c0_69 = arith.constant 0 : index
    %205 = vector.load %arg20[%c20_68, %c0_69] : memref<32x128xf32, #tpu.memory_space<vmem>>, vector<4x128xf32>
    %cst_70 = arith.constant dense<0.000000e+00> : vector<4x128xf32>
    %206 = tpu.matmul %183, %13, %cst_70 {dimension_numbers = #tpu.dot_dimension_numbers<[1], [0], [0], [1], [0, 0, 1, 1], [], []>} : vector<4x32xf32>, vector<32x128xf32>, vector<4x128xf32> -> vector<4x128xf32>
    %207 = arith.addf %205, %206 : vector<4x128xf32>
    %208 = vector.extract_strided_slice %207 {offsets = [0, 0], sizes = [4, 96], strides = [1, 1]} : vector<4x128xf32> to vector<4x96xf32>
    %209 = arith.negf %208 : vector<4x96xf32>
    %210 = math.exp %209 : vector<4x96xf32>
    %cst_71 = arith.constant 1.000000e+00 : f32
    %211 = vector.broadcast %cst_71 : f32 to vector<4x96xf32>
    %212 = arith.addf %211, %210 : vector<4x96xf32>
    %213 = arith.divf %211, %212 : vector<4x96xf32>
    %214 = vector.extract_strided_slice %213 {offsets = [0, 0], sizes = [4, 32], strides = [1, 1]} : vector<4x96xf32> to vector<4x32xf32>
    %215 = vector.extract_strided_slice %213 {offsets = [0, 32], sizes = [4, 32], strides = [1, 1]} : vector<4x96xf32> to vector<4x32xf32>
    %216 = vector.extract_strided_slice %213 {offsets = [0, 64], sizes = [4, 32], strides = [1, 1]} : vector<4x96xf32> to vector<4x32xf32>
    %217 = vector.extract_strided_slice %207 {offsets = [0, 96], sizes = [4, 32], strides = [1, 1]} : vector<4x128xf32> to vector<4x32xf32>
    %218 = math.tanh %217 : vector<4x32xf32>
    %219 = arith.mulf %215, %181 : vector<4x32xf32>
    %220 = arith.mulf %214, %218 : vector<4x32xf32>
    %221 = arith.addf %219, %220 : vector<4x32xf32>
    %222 = math.tanh %221 : vector<4x32xf32>
    %223 = arith.mulf %216, %222 : vector<4x32xf32>
    %c8_72 = arith.constant 8 : index
    %c0_73 = arith.constant 0 : index
    %224 = vector.load %arg21[%c8_72, %c0_73] : memref<32x128xf32, #tpu.memory_space<vmem>>, vector<4x128xf32>
    %cst_74 = arith.constant dense<0.000000e+00> : vector<4x128xf32>
    %225 = tpu.matmul %202, %14, %cst_74 {dimension_numbers = #tpu.dot_dimension_numbers<[1], [0], [0], [1], [0, 0, 1, 1], [], []>} : vector<4x32xf32>, vector<32x128xf32>, vector<4x128xf32> -> vector<4x128xf32>
    %226 = arith.addf %224, %225 : vector<4x128xf32>
    %227 = vector.extract_strided_slice %226 {offsets = [0, 0], sizes = [4, 96], strides = [1, 1]} : vector<4x128xf32> to vector<4x96xf32>
    %228 = arith.negf %227 : vector<4x96xf32>
    %229 = math.exp %228 : vector<4x96xf32>
    %cst_75 = arith.constant 1.000000e+00 : f32
    %230 = vector.broadcast %cst_75 : f32 to vector<4x96xf32>
    %231 = arith.addf %230, %229 : vector<4x96xf32>
    %232 = arith.divf %230, %231 : vector<4x96xf32>
    %233 = vector.extract_strided_slice %232 {offsets = [0, 0], sizes = [4, 32], strides = [1, 1]} : vector<4x96xf32> to vector<4x32xf32>
    %234 = vector.extract_strided_slice %232 {offsets = [0, 32], sizes = [4, 32], strides = [1, 1]} : vector<4x96xf32> to vector<4x32xf32>
    %235 = vector.extract_strided_slice %232 {offsets = [0, 64], sizes = [4, 32], strides = [1, 1]} : vector<4x96xf32> to vector<4x32xf32>
    %236 = vector.extract_strided_slice %226 {offsets = [0, 96], sizes = [4, 32], strides = [1, 1]} : vector<4x128xf32> to vector<4x32xf32>
    %237 = math.tanh %236 : vector<4x32xf32>
    %238 = arith.mulf %234, %200 : vector<4x32xf32>
    %239 = arith.mulf %233, %237 : vector<4x32xf32>
    %240 = arith.addf %238, %239 : vector<4x32xf32>
    %241 = math.tanh %240 : vector<4x32xf32>
    %242 = arith.mulf %235, %241 : vector<4x32xf32>
    %c20_76 = arith.constant 20 : index
    %c0_77 = arith.constant 0 : index
    %243 = vector.load %arg22[%c20_76, %c0_77] : memref<32x64xf32, #tpu.memory_space<vmem>>, vector<4x32xf32>
    tpu.vector_store %arg22[%c20_76, %c0_77], %223 {strides = array<i32>} : memref<32x64xf32, #tpu.memory_space<vmem>>, vector<4x32xf32>,
    %c8_78 = arith.constant 8 : index
    %c32_79 = arith.constant 32 : index
    %244 = vector.load %arg22[%c8_78, %c32_79] : memref<32x64xf32, #tpu.memory_space<vmem>>, vector<4x32xf32>
    tpu.vector_store %arg22[%c8_78, %c32_79], %242 {strides = array<i32>} : memref<32x64xf32, #tpu.memory_space<vmem>>, vector<4x32xf32>,
    %c24_80 = arith.constant 24 : index
    %c0_81 = arith.constant 0 : index
    %245 = vector.load %arg20[%c24_80, %c0_81] : memref<32x128xf32, #tpu.memory_space<vmem>>, vector<4x128xf32>
    %cst_82 = arith.constant dense<0.000000e+00> : vector<4x128xf32>
    %246 = tpu.matmul %223, %13, %cst_82 {dimension_numbers = #tpu.dot_dimension_numbers<[1], [0], [0], [1], [0, 0, 1, 1], [], []>} : vector<4x32xf32>, vector<32x128xf32>, vector<4x128xf32> -> vector<4x128xf32>
    %247 = arith.addf %245, %246 : vector<4x128xf32>
    %248 = vector.extract_strided_slice %247 {offsets = [0, 0], sizes = [4, 96], strides = [1, 1]} : vector<4x128xf32> to vector<4x96xf32>
    %249 = arith.negf %248 : vector<4x96xf32>
    %250 = math.exp %249 : vector<4x96xf32>
    %cst_83 = arith.constant 1.000000e+00 : f32
    %251 = vector.broadcast %cst_83 : f32 to vector<4x96xf32>
    %252 = arith.addf %251, %250 : vector<4x96xf32>
    %253 = arith.divf %251, %252 : vector<4x96xf32>
    %254 = vector.extract_strided_slice %253 {offsets = [0, 0], sizes = [4, 32], strides = [1, 1]} : vector<4x96xf32> to vector<4x32xf32>
    %255 = vector.extract_strided_slice %253 {offsets = [0, 32], sizes = [4, 32], strides = [1, 1]} : vector<4x96xf32> to vector<4x32xf32>
    %256 = vector.extract_strided_slice %253 {offsets = [0, 64], sizes = [4, 32], strides = [1, 1]} : vector<4x96xf32> to vector<4x32xf32>
    %257 = vector.extract_strided_slice %247 {offsets = [0, 96], sizes = [4, 32], strides = [1, 1]} : vector<4x128xf32> to vector<4x32xf32>
    %258 = math.tanh %257 : vector<4x32xf32>
    %259 = arith.mulf %255, %221 : vector<4x32xf32>
    %260 = arith.mulf %254, %258 : vector<4x32xf32>
    %261 = arith.addf %259, %260 : vector<4x32xf32>
    %262 = math.tanh %261 : vector<4x32xf32>
    %263 = arith.mulf %256, %262 : vector<4x32xf32>
    %c4_84 = arith.constant 4 : index
    %c0_85 = arith.constant 0 : index
    %264 = vector.load %arg21[%c4_84, %c0_85] : memref<32x128xf32, #tpu.memory_space<vmem>>, vector<4x128xf32>
    %cst_86 = arith.constant dense<0.000000e+00> : vector<4x128xf32>
    %265 = tpu.matmul %242, %14, %cst_86 {dimension_numbers = #tpu.dot_dimension_numbers<[1], [0], [0], [1], [0, 0, 1, 1], [], []>} : vector<4x32xf32>, vector<32x128xf32>, vector<4x128xf32> -> vector<4x128xf32>
    %266 = arith.addf %264, %265 : vector<4x128xf32>
    %267 = vector.extract_strided_slice %266 {offsets = [0, 0], sizes = [4, 96], strides = [1, 1]} : vector<4x128xf32> to vector<4x96xf32>
    %268 = arith.negf %267 : vector<4x96xf32>
    %269 = math.exp %268 : vector<4x96xf32>
    %cst_87 = arith.constant 1.000000e+00 : f32
    %270 = vector.broadcast %cst_87 : f32 to vector<4x96xf32>
    %271 = arith.addf %270, %269 : vector<4x96xf32>
    %272 = arith.divf %270, %271 : vector<4x96xf32>
    %273 = vector.extract_strided_slice %272 {offsets = [0, 0], sizes = [4, 32], strides = [1, 1]} : vector<4x96xf32> to vector<4x32xf32>
    %274 = vector.extract_strided_slice %272 {offsets = [0, 32], sizes = [4, 32], strides = [1, 1]} : vector<4x96xf32> to vector<4x32xf32>
    %275 = vector.extract_strided_slice %272 {offsets = [0, 64], sizes = [4, 32], strides = [1, 1]} : vector<4x96xf32> to vector<4x32xf32>
    %276 = vector.extract_strided_slice %266 {offsets = [0, 96], sizes = [4, 32], strides = [1, 1]} : vector<4x128xf32> to vector<4x32xf32>
    %277 = math.tanh %276 : vector<4x32xf32>
    %278 = arith.mulf %274, %240 : vector<4x32xf32>
    %279 = arith.mulf %273, %277 : vector<4x32xf32>
    %280 = arith.addf %278, %279 : vector<4x32xf32>
    %281 = math.tanh %280 : vector<4x32xf32>
    %282 = arith.mulf %275, %281 : vector<4x32xf32>
    %c24_88 = arith.constant 24 : index
    %c0_89 = arith.constant 0 : index
    %283 = vector.load %arg22[%c24_88, %c0_89] : memref<32x64xf32, #tpu.memory_space<vmem>>, vector<4x32xf32>
    tpu.vector_store %arg22[%c24_88, %c0_89], %263 {strides = array<i32>} : memref<32x64xf32, #tpu.memory_space<vmem>>, vector<4x32xf32>,
    %c4_90 = arith.constant 4 : index
    %c32_91 = arith.constant 32 : index
    %284 = vector.load %arg22[%c4_90, %c32_91] : memref<32x64xf32, #tpu.memory_space<vmem>>, vector<4x32xf32>
    tpu.vector_store %arg22[%c4_90, %c32_91], %282 {strides = array<i32>} : memref<32x64xf32, #tpu.memory_space<vmem>>, vector<4x32xf32>,
    %c28_92 = arith.constant 28 : index
    %c0_93 = arith.constant 0 : index
    %285 = vector.load %arg20[%c28_92, %c0_93] : memref<32x128xf32, #tpu.memory_space<vmem>>, vector<4x128xf32>
    %cst_94 = arith.constant dense<0.000000e+00> : vector<4x128xf32>
    %286 = tpu.matmul %263, %13, %cst_94 {dimension_numbers = #tpu.dot_dimension_numbers<[1], [0], [0], [1], [0, 0, 1, 1], [], []>} : vector<4x32xf32>, vector<32x128xf32>, vector<4x128xf32> -> vector<4x128xf32>
    %287 = arith.addf %285, %286 : vector<4x128xf32>
    %288 = vector.extract_strided_slice %287 {offsets = [0, 0], sizes = [4, 96], strides = [1, 1]} : vector<4x128xf32> to vector<4x96xf32>
    %289 = arith.negf %288 : vector<4x96xf32>
    %290 = math.exp %289 : vector<4x96xf32>
    %cst_95 = arith.constant 1.000000e+00 : f32
    %291 = vector.broadcast %cst_95 : f32 to vector<4x96xf32>
    %292 = arith.addf %291, %290 : vector<4x96xf32>
    %293 = arith.divf %291, %292 : vector<4x96xf32>
    %294 = vector.extract_strided_slice %293 {offsets = [0, 0], sizes = [4, 32], strides = [1, 1]} : vector<4x96xf32> to vector<4x32xf32>
    %295 = vector.extract_strided_slice %293 {offsets = [0, 32], sizes = [4, 32], strides = [1, 1]} : vector<4x96xf32> to vector<4x32xf32>
    %296 = vector.extract_strided_slice %293 {offsets = [0, 64], sizes = [4, 32], strides = [1, 1]} : vector<4x96xf32> to vector<4x32xf32>
    %297 = vector.extract_strided_slice %287 {offsets = [0, 96], sizes = [4, 32], strides = [1, 1]} : vector<4x128xf32> to vector<4x32xf32>
    %298 = math.tanh %297 : vector<4x32xf32>
    %299 = arith.mulf %295, %261 : vector<4x32xf32>
    %300 = arith.mulf %294, %298 : vector<4x32xf32>
    %301 = arith.addf %299, %300 : vector<4x32xf32>
    %302 = math.tanh %301 : vector<4x32xf32>
    %303 = arith.mulf %296, %302 : vector<4x32xf32>
    %c0_96 = arith.constant 0 : index
    %c0_97 = arith.constant 0 : index
    %304 = vector.load %arg21[%c0_96, %c0_97] : memref<32x128xf32, #tpu.memory_space<vmem>>, vector<4x128xf32>
    %cst_98 = arith.constant dense<0.000000e+00> : vector<4x128xf32>
    %305 = tpu.matmul %282, %14, %cst_98 {dimension_numbers = #tpu.dot_dimension_numbers<[1], [0], [0], [1], [0, 0, 1, 1], [], []>} : vector<4x32xf32>, vector<32x128xf32>, vector<4x128xf32> -> vector<4x128xf32>
    %306 = arith.addf %304, %305 : vector<4x128xf32>
    %307 = vector.extract_strided_slice %306 {offsets = [0, 0], sizes = [4, 96], strides = [1, 1]} : vector<4x128xf32> to vector<4x96xf32>
    %308 = arith.negf %307 : vector<4x96xf32>
    %309 = math.exp %308 : vector<4x96xf32>
    %cst_99 = arith.constant 1.000000e+00 : f32
    %310 = vector.broadcast %cst_99 : f32 to vector<4x96xf32>
    %311 = arith.addf %310, %309 : vector<4x96xf32>
    %312 = arith.divf %310, %311 : vector<4x96xf32>
    %313 = vector.extract_strided_slice %312 {offsets = [0, 0], sizes = [4, 32], strides = [1, 1]} : vector<4x96xf32> to vector<4x32xf32>
    %314 = vector.extract_strided_slice %312 {offsets = [0, 32], sizes = [4, 32], strides = [1, 1]} : vector<4x96xf32> to vector<4x32xf32>
    %315 = vector.extract_strided_slice %312 {offsets = [0, 64], sizes = [4, 32], strides = [1, 1]} : vector<4x96xf32> to vector<4x32xf32>
    %316 = vector.extract_strided_slice %306 {offsets = [0, 96], sizes = [4, 32], strides = [1, 1]} : vector<4x128xf32> to vector<4x32xf32>
    %317 = math.tanh %316 : vector<4x32xf32>
    %318 = arith.mulf %314, %280 : vector<4x32xf32>
    %319 = arith.mulf %313, %317 : vector<4x32xf32>
    %320 = arith.addf %318, %319 : vector<4x32xf32>
    %321 = math.tanh %320 : vector<4x32xf32>
    %322 = arith.mulf %315, %321 : vector<4x32xf32>
    %c28_100 = arith.constant 28 : index
    %c0_101 = arith.constant 0 : index
    %323 = vector.load %arg22[%c28_100, %c0_101] : memref<32x64xf32, #tpu.memory_space<vmem>>, vector<4x32xf32>
    tpu.vector_store %arg22[%c28_100, %c0_101], %303 {strides = array<i32>} : memref<32x64xf32, #tpu.memory_space<vmem>>, vector<4x32xf32>,
    %c0_102 = arith.constant 0 : index
    %c32_103 = arith.constant 32 : index
    %324 = vector.load %arg22[%c0_102, %c32_103] : memref<32x64xf32, #tpu.memory_space<vmem>>, vector<4x32xf32>
    tpu.vector_store %arg22[%c0_102, %c32_103], %322 {strides = array<i32>} : memref<32x64xf32, #tpu.memory_space<vmem>>, vector<4x32xf32>,
    %c0_104 = arith.constant 0 : index
    %c0_105 = arith.constant 0 : index
    %325 = vector.load %arg22[%c0_104, %c0_105] : memref<32x64xf32, #tpu.memory_space<vmem>>, vector<32x64xf32>
    %c0_106 = arith.constant 0 : index
    %c0_107 = arith.constant 0 : index
    %326 = vector.load %arg7[%c0_106, %c0_107] : memref<64x128xf32, #tpu.memory_space<vmem>>, vector<64x128xf32>
    %cst_108 = arith.constant dense<0.000000e+00> : vector<32x128xf32>
    %327 = tpu.matmul %325, %326, %cst_108 {dimension_numbers = #tpu.dot_dimension_numbers<[1], [0], [0], [1], [0, 0, 1, 1], [], []>} : vector<32x64xf32>, vector<64x128xf32>, vector<32x128xf32> -> vector<32x128xf32>
    %c0_109 = arith.constant 0 : index
    %c0_110 = arith.constant 0 : index
    %328 = vector.load %arg11[%c0_109, %c0_110] : memref<1x128xf32, #tpu.memory_space<vmem>>, vector<1x128xf32>
    %329 = vector.broadcast %328 : vector<1x128xf32> to vector<32x128xf32>
    %330 = arith.addf %327, %329 : vector<32x128xf32>
    %c0_111 = arith.constant 0 : index
    %c0_112 = arith.constant 0 : index
    %331 = vector.load %arg20[%c0_111, %c0_112] : memref<32x128xf32, #tpu.memory_space<vmem>>, vector<32x128xf32>
    tpu.vector_store %arg20[%c0_111, %c0_112], %330 {strides = array<i32>} : memref<32x128xf32, #tpu.memory_space<vmem>>, vector<32x128xf32>,
    %c0_113 = arith.constant 0 : index
    %c0_114 = arith.constant 0 : index
    %332 = vector.load %arg8[%c0_113, %c0_114] : memref<64x128xf32, #tpu.memory_space<vmem>>, vector<64x128xf32>
    %cst_115 = arith.constant dense<0.000000e+00> : vector<32x128xf32>
    %333 = tpu.matmul %325, %332, %cst_115 {dimension_numbers = #tpu.dot_dimension_numbers<[1], [0], [0], [1], [0, 0, 1, 1], [], []>} : vector<32x64xf32>, vector<64x128xf32>, vector<32x128xf32> -> vector<32x128xf32>
    %c0_116 = arith.constant 0 : index
    %c0_117 = arith.constant 0 : index
    %334 = vector.load %arg12[%c0_116, %c0_117] : memref<1x128xf32, #tpu.memory_space<vmem>>, vector<1x128xf32>
    %335 = vector.broadcast %334 : vector<1x128xf32> to vector<32x128xf32>
    %336 = arith.addf %333, %335 : vector<32x128xf32>
    %c0_118 = arith.constant 0 : index
    %c0_119 = arith.constant 0 : index
    %337 = vector.load %arg21[%c0_118, %c0_119] : memref<32x128xf32, #tpu.memory_space<vmem>>, vector<32x128xf32>
    tpu.vector_store %arg21[%c0_118, %c0_119], %336 {strides = array<i32>} : memref<32x128xf32, #tpu.memory_space<vmem>>, vector<32x128xf32>,
    %c0_120 = arith.constant 0 : index
    %c0_121 = arith.constant 0 : index
    %338 = vector.load %arg9[%c0_120, %c0_121] : memref<32x128xf32, #tpu.memory_space<vmem>>, vector<32x128xf32>
    %c0_122 = arith.constant 0 : index
    %c0_123 = arith.constant 0 : index
    %339 = vector.load %arg20[%c0_122, %c0_123] : memref<32x128xf32, #tpu.memory_space<vmem>>, vector<4x128xf32>
    %340 = vector.extract_strided_slice %339 {offsets = [0, 0], sizes = [4, 96], strides = [1, 1]} : vector<4x128xf32> to vector<4x96xf32>
    %341 = arith.negf %340 : vector<4x96xf32>
    %342 = math.exp %341 : vector<4x96xf32>
    %cst_124 = arith.constant 1.000000e+00 : f32
    %343 = vector.broadcast %cst_124 : f32 to vector<4x96xf32>
    %344 = arith.addf %343, %342 : vector<4x96xf32>
    %345 = arith.divf %343, %344 : vector<4x96xf32>
    %346 = vector.extract_strided_slice %345 {offsets = [0, 0], sizes = [4, 32], strides = [1, 1]} : vector<4x96xf32> to vector<4x32xf32>
    %347 = vector.extract_strided_slice %345 {offsets = [0, 64], sizes = [4, 32], strides = [1, 1]} : vector<4x96xf32> to vector<4x32xf32>
    %348 = vector.extract_strided_slice %339 {offsets = [0, 96], sizes = [4, 32], strides = [1, 1]} : vector<4x128xf32> to vector<4x32xf32>
    %349 = math.tanh %348 : vector<4x32xf32>
    %350 = arith.mulf %346, %349 : vector<4x32xf32>
    %351 = math.tanh %350 : vector<4x32xf32>
    %352 = arith.mulf %347, %351 : vector<4x32xf32>
    %c0_125 = arith.constant 0 : index
    %c0_126 = arith.constant 0 : index
    %353 = vector.load %arg23[%c0_125, %c0_126] : memref<32x32xf32, #tpu.memory_space<vmem>>, vector<4x32xf32>
    tpu.vector_store %arg23[%c0_125, %c0_126], %352 {strides = array<i32>} : memref<32x32xf32, #tpu.memory_space<vmem>>, vector<4x32xf32>,
    %c4_127 = arith.constant 4 : index
    %c0_128 = arith.constant 0 : index
    %354 = vector.load %arg20[%c4_127, %c0_128] : memref<32x128xf32, #tpu.memory_space<vmem>>, vector<4x128xf32>
    %cst_129 = arith.constant dense<0.000000e+00> : vector<4x128xf32>
    %355 = tpu.matmul %352, %338, %cst_129 {dimension_numbers = #tpu.dot_dimension_numbers<[1], [0], [0], [1], [0, 0, 1, 1], [], []>} : vector<4x32xf32>, vector<32x128xf32>, vector<4x128xf32> -> vector<4x128xf32>
    %356 = arith.addf %354, %355 : vector<4x128xf32>
    %357 = vector.extract_strided_slice %356 {offsets = [0, 0], sizes = [4, 96], strides = [1, 1]} : vector<4x128xf32> to vector<4x96xf32>
    %358 = arith.negf %357 : vector<4x96xf32>
    %359 = math.exp %358 : vector<4x96xf32>
    %cst_130 = arith.constant 1.000000e+00 : f32
    %360 = vector.broadcast %cst_130 : f32 to vector<4x96xf32>
    %361 = arith.addf %360, %359 : vector<4x96xf32>
    %362 = arith.divf %360, %361 : vector<4x96xf32>
    %363 = vector.extract_strided_slice %362 {offsets = [0, 0], sizes = [4, 32], strides = [1, 1]} : vector<4x96xf32> to vector<4x32xf32>
    %364 = vector.extract_strided_slice %362 {offsets = [0, 32], sizes = [4, 32], strides = [1, 1]} : vector<4x96xf32> to vector<4x32xf32>
    %365 = vector.extract_strided_slice %362 {offsets = [0, 64], sizes = [4, 32], strides = [1, 1]} : vector<4x96xf32> to vector<4x32xf32>
    %366 = vector.extract_strided_slice %356 {offsets = [0, 96], sizes = [4, 32], strides = [1, 1]} : vector<4x128xf32> to vector<4x32xf32>
    %367 = math.tanh %366 : vector<4x32xf32>
    %368 = arith.mulf %364, %350 : vector<4x32xf32>
    %369 = arith.mulf %363, %367 : vector<4x32xf32>
    %370 = arith.addf %368, %369 : vector<4x32xf32>
    %371 = math.tanh %370 : vector<4x32xf32>
    %372 = arith.mulf %365, %371 : vector<4x32xf32>
    %c4_131 = arith.constant 4 : index
    %c0_132 = arith.constant 0 : index
    %373 = vector.load %arg23[%c4_131, %c0_132] : memref<32x32xf32, #tpu.memory_space<vmem>>, vector<4x32xf32>
    tpu.vector_store %arg23[%c4_131, %c0_132], %372 {strides = array<i32>} : memref<32x32xf32, #tpu.memory_space<vmem>>, vector<4x32xf32>,
    %c8_133 = arith.constant 8 : index
    %c0_134 = arith.constant 0 : index
    %374 = vector.load %arg20[%c8_133, %c0_134] : memref<32x128xf32, #tpu.memory_space<vmem>>, vector<4x128xf32>
    %cst_135 = arith.constant dense<0.000000e+00> : vector<4x128xf32>
    %375 = tpu.matmul %372, %338, %cst_135 {dimension_numbers = #tpu.dot_dimension_numbers<[1], [0], [0], [1], [0, 0, 1, 1], [], []>} : vector<4x32xf32>, vector<32x128xf32>, vector<4x128xf32> -> vector<4x128xf32>
    %376 = arith.addf %374, %375 : vector<4x128xf32>
    %377 = vector.extract_strided_slice %376 {offsets = [0, 0], sizes = [4, 96], strides = [1, 1]} : vector<4x128xf32> to vector<4x96xf32>
    %378 = arith.negf %377 : vector<4x96xf32>
    %379 = math.exp %378 : vector<4x96xf32>
    %cst_136 = arith.constant 1.000000e+00 : f32
    %380 = vector.broadcast %cst_136 : f32 to vector<4x96xf32>
    %381 = arith.addf %380, %379 : vector<4x96xf32>
    %382 = arith.divf %380, %381 : vector<4x96xf32>
    %383 = vector.extract_strided_slice %382 {offsets = [0, 0], sizes = [4, 32], strides = [1, 1]} : vector<4x96xf32> to vector<4x32xf32>
    %384 = vector.extract_strided_slice %382 {offsets = [0, 32], sizes = [4, 32], strides = [1, 1]} : vector<4x96xf32> to vector<4x32xf32>
    %385 = vector.extract_strided_slice %382 {offsets = [0, 64], sizes = [4, 32], strides = [1, 1]} : vector<4x96xf32> to vector<4x32xf32>
    %386 = vector.extract_strided_slice %376 {offsets = [0, 96], sizes = [4, 32], strides = [1, 1]} : vector<4x128xf32> to vector<4x32xf32>
    %387 = math.tanh %386 : vector<4x32xf32>
    %388 = arith.mulf %384, %370 : vector<4x32xf32>
    %389 = arith.mulf %383, %387 : vector<4x32xf32>
    %390 = arith.addf %388, %389 : vector<4x32xf32>
    %391 = math.tanh %390 : vector<4x32xf32>
    %392 = arith.mulf %385, %391 : vector<4x32xf32>
    %c8_137 = arith.constant 8 : index
    %c0_138 = arith.constant 0 : index
    %393 = vector.load %arg23[%c8_137, %c0_138] : memref<32x32xf32, #tpu.memory_space<vmem>>, vector<4x32xf32>
    tpu.vector_store %arg23[%c8_137, %c0_138], %392 {strides = array<i32>} : memref<32x32xf32, #tpu.memory_space<vmem>>, vector<4x32xf32>,
    %c12_139 = arith.constant 12 : index
    %c0_140 = arith.constant 0 : index
    %394 = vector.load %arg20[%c12_139, %c0_140] : memref<32x128xf32, #tpu.memory_space<vmem>>, vector<4x128xf32>
    %cst_141 = arith.constant dense<0.000000e+00> : vector<4x128xf32>
    %395 = tpu.matmul %392, %338, %cst_141 {dimension_numbers = #tpu.dot_dimension_numbers<[1], [0], [0], [1], [0, 0, 1, 1], [], []>} : vector<4x32xf32>, vector<32x128xf32>, vector<4x128xf32> -> vector<4x128xf32>
    %396 = arith.addf %394, %395 : vector<4x128xf32>
    %397 = vector.extract_strided_slice %396 {offsets = [0, 0], sizes = [4, 96], strides = [1, 1]} : vector<4x128xf32> to vector<4x96xf32>
    %398 = arith.negf %397 : vector<4x96xf32>
    %399 = math.exp %398 : vector<4x96xf32>
    %cst_142 = arith.constant 1.000000e+00 : f32
    %400 = vector.broadcast %cst_142 : f32 to vector<4x96xf32>
    %401 = arith.addf %400, %399 : vector<4x96xf32>
    %402 = arith.divf %400, %401 : vector<4x96xf32>
    %403 = vector.extract_strided_slice %402 {offsets = [0, 0], sizes = [4, 32], strides = [1, 1]} : vector<4x96xf32> to vector<4x32xf32>
    %404 = vector.extract_strided_slice %402 {offsets = [0, 32], sizes = [4, 32], strides = [1, 1]} : vector<4x96xf32> to vector<4x32xf32>
    %405 = vector.extract_strided_slice %402 {offsets = [0, 64], sizes = [4, 32], strides = [1, 1]} : vector<4x96xf32> to vector<4x32xf32>
    %406 = vector.extract_strided_slice %396 {offsets = [0, 96], sizes = [4, 32], strides = [1, 1]} : vector<4x128xf32> to vector<4x32xf32>
    %407 = math.tanh %406 : vector<4x32xf32>
    %408 = arith.mulf %404, %390 : vector<4x32xf32>
    %409 = arith.mulf %403, %407 : vector<4x32xf32>
    %410 = arith.addf %408, %409 : vector<4x32xf32>
    %411 = math.tanh %410 : vector<4x32xf32>
    %412 = arith.mulf %405, %411 : vector<4x32xf32>
    %c12_143 = arith.constant 12 : index
    %c0_144 = arith.constant 0 : index
    %413 = vector.load %arg23[%c12_143, %c0_144] : memref<32x32xf32, #tpu.memory_space<vmem>>, vector<4x32xf32>
    tpu.vector_store %arg23[%c12_143, %c0_144], %412 {strides = array<i32>} : memref<32x32xf32, #tpu.memory_space<vmem>>, vector<4x32xf32>,
    %c16_145 = arith.constant 16 : index
    %c0_146 = arith.constant 0 : index
    %414 = vector.load %arg20[%c16_145, %c0_146] : memref<32x128xf32, #tpu.memory_space<vmem>>, vector<4x128xf32>
    %cst_147 = arith.constant dense<0.000000e+00> : vector<4x128xf32>
    %415 = tpu.matmul %412, %338, %cst_147 {dimension_numbers = #tpu.dot_dimension_numbers<[1], [0], [0], [1], [0, 0, 1, 1], [], []>} : vector<4x32xf32>, vector<32x128xf32>, vector<4x128xf32> -> vector<4x128xf32>
    %416 = arith.addf %414, %415 : vector<4x128xf32>
    %417 = vector.extract_strided_slice %416 {offsets = [0, 0], sizes = [4, 96], strides = [1, 1]} : vector<4x128xf32> to vector<4x96xf32>
    %418 = arith.negf %417 : vector<4x96xf32>
    %419 = math.exp %418 : vector<4x96xf32>
    %cst_148 = arith.constant 1.000000e+00 : f32
    %420 = vector.broadcast %cst_148 : f32 to vector<4x96xf32>
    %421 = arith.addf %420, %419 : vector<4x96xf32>
    %422 = arith.divf %420, %421 : vector<4x96xf32>
    %423 = vector.extract_strided_slice %422 {offsets = [0, 0], sizes = [4, 32], strides = [1, 1]} : vector<4x96xf32> to vector<4x32xf32>
    %424 = vector.extract_strided_slice %422 {offsets = [0, 32], sizes = [4, 32], strides = [1, 1]} : vector<4x96xf32> to vector<4x32xf32>
    %425 = vector.extract_strided_slice %422 {offsets = [0, 64], sizes = [4, 32], strides = [1, 1]} : vector<4x96xf32> to vector<4x32xf32>
    %426 = vector.extract_strided_slice %416 {offsets = [0, 96], sizes = [4, 32], strides = [1, 1]} : vector<4x128xf32> to vector<4x32xf32>
    %427 = math.tanh %426 : vector<4x32xf32>
    %428 = arith.mulf %424, %410 : vector<4x32xf32>
    %429 = arith.mulf %423, %427 : vector<4x32xf32>
    %430 = arith.addf %428, %429 : vector<4x32xf32>
    %431 = math.tanh %430 : vector<4x32xf32>
    %432 = arith.mulf %425, %431 : vector<4x32xf32>
    %c16_149 = arith.constant 16 : index
    %c0_150 = arith.constant 0 : index
    %433 = vector.load %arg23[%c16_149, %c0_150] : memref<32x32xf32, #tpu.memory_space<vmem>>, vector<4x32xf32>
    tpu.vector_store %arg23[%c16_149, %c0_150], %432 {strides = array<i32>} : memref<32x32xf32, #tpu.memory_space<vmem>>, vector<4x32xf32>,
    %c20_151 = arith.constant 20 : index
    %c0_152 = arith.constant 0 : index
    %434 = vector.load %arg20[%c20_151, %c0_152] : memref<32x128xf32, #tpu.memory_space<vmem>>, vector<4x128xf32>
    %cst_153 = arith.constant dense<0.000000e+00> : vector<4x128xf32>
    %435 = tpu.matmul %432, %338, %cst_153 {dimension_numbers = #tpu.dot_dimension_numbers<[1], [0], [0], [1], [0, 0, 1, 1], [], []>} : vector<4x32xf32>, vector<32x128xf32>, vector<4x128xf32> -> vector<4x128xf32>
    %436 = arith.addf %434, %435 : vector<4x128xf32>
    %437 = vector.extract_strided_slice %436 {offsets = [0, 0], sizes = [4, 96], strides = [1, 1]} : vector<4x128xf32> to vector<4x96xf32>
    %438 = arith.negf %437 : vector<4x96xf32>
    %439 = math.exp %438 : vector<4x96xf32>
    %cst_154 = arith.constant 1.000000e+00 : f32
    %440 = vector.broadcast %cst_154 : f32 to vector<4x96xf32>
    %441 = arith.addf %440, %439 : vector<4x96xf32>
    %442 = arith.divf %440, %441 : vector<4x96xf32>
    %443 = vector.extract_strided_slice %442 {offsets = [0, 0], sizes = [4, 32], strides = [1, 1]} : vector<4x96xf32> to vector<4x32xf32>
    %444 = vector.extract_strided_slice %442 {offsets = [0, 32], sizes = [4, 32], strides = [1, 1]} : vector<4x96xf32> to vector<4x32xf32>
    %445 = vector.extract_strided_slice %442 {offsets = [0, 64], sizes = [4, 32], strides = [1, 1]} : vector<4x96xf32> to vector<4x32xf32>
    %446 = vector.extract_strided_slice %436 {offsets = [0, 96], sizes = [4, 32], strides = [1, 1]} : vector<4x128xf32> to vector<4x32xf32>
    %447 = math.tanh %446 : vector<4x32xf32>
    %448 = arith.mulf %444, %430 : vector<4x32xf32>
    %449 = arith.mulf %443, %447 : vector<4x32xf32>
    %450 = arith.addf %448, %449 : vector<4x32xf32>
    %451 = math.tanh %450 : vector<4x32xf32>
    %452 = arith.mulf %445, %451 : vector<4x32xf32>
    %c20_155 = arith.constant 20 : index
    %c0_156 = arith.constant 0 : index
    %453 = vector.load %arg23[%c20_155, %c0_156] : memref<32x32xf32, #tpu.memory_space<vmem>>, vector<4x32xf32>
    tpu.vector_store %arg23[%c20_155, %c0_156], %452 {strides = array<i32>} : memref<32x32xf32, #tpu.memory_space<vmem>>, vector<4x32xf32>,
    %c24_157 = arith.constant 24 : index
    %c0_158 = arith.constant 0 : index
    %454 = vector.load %arg20[%c24_157, %c0_158] : memref<32x128xf32, #tpu.memory_space<vmem>>, vector<4x128xf32>
    %cst_159 = arith.constant dense<0.000000e+00> : vector<4x128xf32>
    %455 = tpu.matmul %452, %338, %cst_159 {dimension_numbers = #tpu.dot_dimension_numbers<[1], [0], [0], [1], [0, 0, 1, 1], [], []>} : vector<4x32xf32>, vector<32x128xf32>, vector<4x128xf32> -> vector<4x128xf32>
    %456 = arith.addf %454, %455 : vector<4x128xf32>
    %457 = vector.extract_strided_slice %456 {offsets = [0, 0], sizes = [4, 96], strides = [1, 1]} : vector<4x128xf32> to vector<4x96xf32>
    %458 = arith.negf %457 : vector<4x96xf32>
    %459 = math.exp %458 : vector<4x96xf32>
    %cst_160 = arith.constant 1.000000e+00 : f32
    %460 = vector.broadcast %cst_160 : f32 to vector<4x96xf32>
    %461 = arith.addf %460, %459 : vector<4x96xf32>
    %462 = arith.divf %460, %461 : vector<4x96xf32>
    %463 = vector.extract_strided_slice %462 {offsets = [0, 0], sizes = [4, 32], strides = [1, 1]} : vector<4x96xf32> to vector<4x32xf32>
    %464 = vector.extract_strided_slice %462 {offsets = [0, 32], sizes = [4, 32], strides = [1, 1]} : vector<4x96xf32> to vector<4x32xf32>
    %465 = vector.extract_strided_slice %462 {offsets = [0, 64], sizes = [4, 32], strides = [1, 1]} : vector<4x96xf32> to vector<4x32xf32>
    %466 = vector.extract_strided_slice %456 {offsets = [0, 96], sizes = [4, 32], strides = [1, 1]} : vector<4x128xf32> to vector<4x32xf32>
    %467 = math.tanh %466 : vector<4x32xf32>
    %468 = arith.mulf %464, %450 : vector<4x32xf32>
    %469 = arith.mulf %463, %467 : vector<4x32xf32>
    %470 = arith.addf %468, %469 : vector<4x32xf32>
    %471 = math.tanh %470 : vector<4x32xf32>
    %472 = arith.mulf %465, %471 : vector<4x32xf32>
    %c24_161 = arith.constant 24 : index
    %c0_162 = arith.constant 0 : index
    %473 = vector.load %arg23[%c24_161, %c0_162] : memref<32x32xf32, #tpu.memory_space<vmem>>, vector<4x32xf32>
    tpu.vector_store %arg23[%c24_161, %c0_162], %472 {strides = array<i32>} : memref<32x32xf32, #tpu.memory_space<vmem>>, vector<4x32xf32>,
    %c28_163 = arith.constant 28 : index
    %c0_164 = arith.constant 0 : index
    %474 = vector.load %arg20[%c28_163, %c0_164] : memref<32x128xf32, #tpu.memory_space<vmem>>, vector<4x128xf32>
    %cst_165 = arith.constant dense<0.000000e+00> : vector<4x128xf32>
    %475 = tpu.matmul %472, %338, %cst_165 {dimension_numbers = #tpu.dot_dimension_numbers<[1], [0], [0], [1], [0, 0, 1, 1], [], []>} : vector<4x32xf32>, vector<32x128xf32>, vector<4x128xf32> -> vector<4x128xf32>
    %476 = arith.addf %474, %475 : vector<4x128xf32>
    %477 = vector.extract_strided_slice %476 {offsets = [0, 0], sizes = [4, 96], strides = [1, 1]} : vector<4x128xf32> to vector<4x96xf32>
    %478 = arith.negf %477 : vector<4x96xf32>
    %479 = math.exp %478 : vector<4x96xf32>
    %cst_166 = arith.constant 1.000000e+00 : f32
    %480 = vector.broadcast %cst_166 : f32 to vector<4x96xf32>
    %481 = arith.addf %480, %479 : vector<4x96xf32>
    %482 = arith.divf %480, %481 : vector<4x96xf32>
    %483 = vector.extract_strided_slice %482 {offsets = [0, 0], sizes = [4, 32], strides = [1, 1]} : vector<4x96xf32> to vector<4x32xf32>
    %484 = vector.extract_strided_slice %482 {offsets = [0, 32], sizes = [4, 32], strides = [1, 1]} : vector<4x96xf32> to vector<4x32xf32>
    %485 = vector.extract_strided_slice %482 {offsets = [0, 64], sizes = [4, 32], strides = [1, 1]} : vector<4x96xf32> to vector<4x32xf32>
    %486 = vector.extract_strided_slice %476 {offsets = [0, 96], sizes = [4, 32], strides = [1, 1]} : vector<4x128xf32> to vector<4x32xf32>
    %487 = math.tanh %486 : vector<4x32xf32>
    %488 = arith.mulf %484, %470 : vector<4x32xf32>
    %489 = arith.mulf %483, %487 : vector<4x32xf32>
    %490 = arith.addf %488, %489 : vector<4x32xf32>
    %491 = math.tanh %490 : vector<4x32xf32>
    %492 = arith.mulf %485, %491 : vector<4x32xf32>
    %c28_167 = arith.constant 28 : index
    %c0_168 = arith.constant 0 : index
    %493 = vector.load %arg23[%c28_167, %c0_168] : memref<32x32xf32, #tpu.memory_space<vmem>>, vector<4x32xf32>
    tpu.vector_store %arg23[%c28_167, %c0_168], %492 {strides = array<i32>} : memref<32x32xf32, #tpu.memory_space<vmem>>, vector<4x32xf32>,
    %c0_169 = arith.constant 0 : index
    %c0_170 = arith.constant 0 : index
    %494 = vector.load %arg23[%c0_169, %c0_170] : memref<32x32xf32, #tpu.memory_space<vmem>>, vector<32x32xf32>
    %c0_171 = arith.constant 0 : index
    %c0_172 = arith.constant 0 : index
    %495 = vector.load %arg13[%c0_171, %c0_172] : memref<32x128xf32, #tpu.memory_space<vmem>>, vector<32x128xf32>
    %cst_173 = arith.constant dense<0.000000e+00> : vector<32x128xf32>
    %496 = tpu.matmul %494, %495, %cst_173 {dimension_numbers = #tpu.dot_dimension_numbers<[1], [0], [0], [1], [0, 0, 1, 1], [], []>} : vector<32x32xf32>, vector<32x128xf32>, vector<32x128xf32> -> vector<32x128xf32>
    %c0_174 = arith.constant 0 : index
    %c0_175 = arith.constant 0 : index
    %497 = vector.load %arg16[%c0_174, %c0_175] : memref<1x128xf32, #tpu.memory_space<vmem>>, vector<1x128xf32>
    %498 = vector.broadcast %497 : vector<1x128xf32> to vector<32x128xf32>
    %499 = arith.addf %496, %498 : vector<32x128xf32>
    %c0_176 = arith.constant 0 : index
    %c0_177 = arith.constant 0 : index
    %500 = vector.load %arg20[%c0_176, %c0_177] : memref<32x128xf32, #tpu.memory_space<vmem>>, vector<32x128xf32>
    tpu.vector_store %arg20[%c0_176, %c0_177], %499 {strides = array<i32>} : memref<32x128xf32, #tpu.memory_space<vmem>>, vector<32x128xf32>,
    %c0_178 = arith.constant 0 : index
    %c0_179 = arith.constant 0 : index
    %501 = vector.load %arg10[%c0_178, %c0_179] : memref<32x128xf32, #tpu.memory_space<vmem>>, vector<32x128xf32>
    %c0_180 = arith.constant 0 : index
    %c0_181 = arith.constant 0 : index
    %502 = vector.load %arg14[%c0_180, %c0_181] : memref<32x128xf32, #tpu.memory_space<vmem>>, vector<32x128xf32>
    %c0_182 = arith.constant 0 : index
    %c0_183 = arith.constant 0 : index
    %503 = vector.load %arg15[%c0_182, %c0_183] : memref<32x128xf32, #tpu.memory_space<vmem>>, vector<32x128xf32>
    %c28_184 = arith.constant 28 : index
    %c0_185 = arith.constant 0 : index
    %504 = vector.load %arg21[%c28_184, %c0_185] : memref<32x128xf32, #tpu.memory_space<vmem>>, vector<4x128xf32>
    %505 = vector.extract_strided_slice %504 {offsets = [0, 0], sizes = [4, 96], strides = [1, 1]} : vector<4x128xf32> to vector<4x96xf32>
    %506 = arith.negf %505 : vector<4x96xf32>
    %507 = math.exp %506 : vector<4x96xf32>
    %cst_186 = arith.constant 1.000000e+00 : f32
    %508 = vector.broadcast %cst_186 : f32 to vector<4x96xf32>
    %509 = arith.addf %508, %507 : vector<4x96xf32>
    %510 = arith.divf %508, %509 : vector<4x96xf32>
    %511 = vector.extract_strided_slice %510 {offsets = [0, 0], sizes = [4, 32], strides = [1, 1]} : vector<4x96xf32> to vector<4x32xf32>
    %512 = vector.extract_strided_slice %510 {offsets = [0, 64], sizes = [4, 32], strides = [1, 1]} : vector<4x96xf32> to vector<4x32xf32>
    %513 = vector.extract_strided_slice %504 {offsets = [0, 96], sizes = [4, 32], strides = [1, 1]} : vector<4x128xf32> to vector<4x32xf32>
    %514 = math.tanh %513 : vector<4x32xf32>
    %515 = arith.mulf %511, %514 : vector<4x32xf32>
    %516 = math.tanh %515 : vector<4x32xf32>
    %517 = arith.mulf %512, %516 : vector<4x32xf32>
    %c28_187 = arith.constant 28 : index
    %c0_188 = arith.constant 0 : index
    %518 = vector.load %arg20[%c28_187, %c0_188] : memref<32x128xf32, #tpu.memory_space<vmem>>, vector<4x128xf32>
    %cst_189 = arith.constant dense<0.000000e+00> : vector<4x128xf32>
    %519 = tpu.matmul %517, %502, %cst_189 {dimension_numbers = #tpu.dot_dimension_numbers<[1], [0], [0], [1], [0, 0, 1, 1], [], []>} : vector<4x32xf32>, vector<32x128xf32>, vector<4x128xf32> -> vector<4x128xf32>
    %520 = arith.addf %518, %519 : vector<4x128xf32>
    %521 = vector.extract_strided_slice %520 {offsets = [0, 0], sizes = [4, 96], strides = [1, 1]} : vector<4x128xf32> to vector<4x96xf32>
    %522 = arith.negf %521 : vector<4x96xf32>
    %523 = math.exp %522 : vector<4x96xf32>
    %cst_190 = arith.constant 1.000000e+00 : f32
    %524 = vector.broadcast %cst_190 : f32 to vector<4x96xf32>
    %525 = arith.addf %524, %523 : vector<4x96xf32>
    %526 = arith.divf %524, %525 : vector<4x96xf32>
    %527 = vector.extract_strided_slice %526 {offsets = [0, 0], sizes = [4, 32], strides = [1, 1]} : vector<4x96xf32> to vector<4x32xf32>
    %528 = vector.extract_strided_slice %526 {offsets = [0, 64], sizes = [4, 32], strides = [1, 1]} : vector<4x96xf32> to vector<4x32xf32>
    %529 = vector.extract_strided_slice %520 {offsets = [0, 96], sizes = [4, 32], strides = [1, 1]} : vector<4x128xf32> to vector<4x32xf32>
    %530 = math.tanh %529 : vector<4x32xf32>
    %531 = arith.mulf %527, %530 : vector<4x32xf32>
    %532 = math.tanh %531 : vector<4x32xf32>
    %533 = arith.mulf %528, %532 : vector<4x32xf32>
    %c24_191 = arith.constant 24 : index
    %c0_192 = arith.constant 0 : index
    %534 = vector.load %arg21[%c24_191, %c0_192] : memref<32x128xf32, #tpu.memory_space<vmem>>, vector<4x128xf32>
    %cst_193 = arith.constant dense<0.000000e+00> : vector<4x128xf32>
    %535 = tpu.matmul %517, %501, %cst_193 {dimension_numbers = #tpu.dot_dimension_numbers<[1], [0], [0], [1], [0, 0, 1, 1], [], []>} : vector<4x32xf32>, vector<32x128xf32>, vector<4x128xf32> -> vector<4x128xf32>
    %536 = arith.addf %534, %535 : vector<4x128xf32>
    %537 = vector.extract_strided_slice %536 {offsets = [0, 0], sizes = [4, 96], strides = [1, 1]} : vector<4x128xf32> to vector<4x96xf32>
    %538 = arith.negf %537 : vector<4x96xf32>
    %539 = math.exp %538 : vector<4x96xf32>
    %cst_194 = arith.constant 1.000000e+00 : f32
    %540 = vector.broadcast %cst_194 : f32 to vector<4x96xf32>
    %541 = arith.addf %540, %539 : vector<4x96xf32>
    %542 = arith.divf %540, %541 : vector<4x96xf32>
    %543 = vector.extract_strided_slice %542 {offsets = [0, 0], sizes = [4, 32], strides = [1, 1]} : vector<4x96xf32> to vector<4x32xf32>
    %544 = vector.extract_strided_slice %542 {offsets = [0, 32], sizes = [4, 32], strides = [1, 1]} : vector<4x96xf32> to vector<4x32xf32>
    %545 = vector.extract_strided_slice %542 {offsets = [0, 64], sizes = [4, 32], strides = [1, 1]} : vector<4x96xf32> to vector<4x32xf32>
    %546 = vector.extract_strided_slice %536 {offsets = [0, 96], sizes = [4, 32], strides = [1, 1]} : vector<4x128xf32> to vector<4x32xf32>
    %547 = math.tanh %546 : vector<4x32xf32>
    %548 = arith.mulf %544, %515 : vector<4x32xf32>
    %549 = arith.mulf %543, %547 : vector<4x32xf32>
    %550 = arith.addf %548, %549 : vector<4x32xf32>
    %551 = math.tanh %550 : vector<4x32xf32>
    %552 = arith.mulf %545, %551 : vector<4x32xf32>
    %c24_195 = arith.constant 24 : index
    %c0_196 = arith.constant 0 : index
    %553 = vector.load %arg20[%c24_195, %c0_196] : memref<32x128xf32, #tpu.memory_space<vmem>>, vector<4x128xf32>
    %cst_197 = arith.constant dense<0.000000e+00> : vector<4x128xf32>
    %554 = tpu.matmul %552, %502, %cst_197 {dimension_numbers = #tpu.dot_dimension_numbers<[1], [0], [0], [1], [0, 0, 1, 1], [], []>} : vector<4x32xf32>, vector<32x128xf32>, vector<4x128xf32> -> vector<4x128xf32>
    %555 = arith.addf %553, %554 : vector<4x128xf32>
    %cst_198 = arith.constant dense<0.000000e+00> : vector<4x128xf32>
    %556 = tpu.matmul %533, %503, %cst_198 {dimension_numbers = #tpu.dot_dimension_numbers<[1], [0], [0], [1], [0, 0, 1, 1], [], []>} : vector<4x32xf32>, vector<32x128xf32>, vector<4x128xf32> -> vector<4x128xf32>
    %557 = arith.addf %555, %556 : vector<4x128xf32>
    %558 = vector.extract_strided_slice %557 {offsets = [0, 0], sizes = [4, 96], strides = [1, 1]} : vector<4x128xf32> to vector<4x96xf32>
    %559 = arith.negf %558 : vector<4x96xf32>
    %560 = math.exp %559 : vector<4x96xf32>
    %cst_199 = arith.constant 1.000000e+00 : f32
    %561 = vector.broadcast %cst_199 : f32 to vector<4x96xf32>
    %562 = arith.addf %561, %560 : vector<4x96xf32>
    %563 = arith.divf %561, %562 : vector<4x96xf32>
    %564 = vector.extract_strided_slice %563 {offsets = [0, 0], sizes = [4, 32], strides = [1, 1]} : vector<4x96xf32> to vector<4x32xf32>
    %565 = vector.extract_strided_slice %563 {offsets = [0, 32], sizes = [4, 32], strides = [1, 1]} : vector<4x96xf32> to vector<4x32xf32>
    %566 = vector.extract_strided_slice %563 {offsets = [0, 64], sizes = [4, 32], strides = [1, 1]} : vector<4x96xf32> to vector<4x32xf32>
    %567 = vector.extract_strided_slice %557 {offsets = [0, 96], sizes = [4, 32], strides = [1, 1]} : vector<4x128xf32> to vector<4x32xf32>
    %568 = math.tanh %567 : vector<4x32xf32>
    %569 = arith.mulf %565, %531 : vector<4x32xf32>
    %570 = arith.mulf %564, %568 : vector<4x32xf32>
    %571 = arith.addf %569, %570 : vector<4x32xf32>
    %572 = math.tanh %571 : vector<4x32xf32>
    %573 = arith.mulf %566, %572 : vector<4x32xf32>
    %c20_200 = arith.constant 20 : index
    %c0_201 = arith.constant 0 : index
    %574 = vector.load %arg21[%c20_200, %c0_201] : memref<32x128xf32, #tpu.memory_space<vmem>>, vector<4x128xf32>
    %cst_202 = arith.constant dense<0.000000e+00> : vector<4x128xf32>
    %575 = tpu.matmul %552, %501, %cst_202 {dimension_numbers = #tpu.dot_dimension_numbers<[1], [0], [0], [1], [0, 0, 1, 1], [], []>} : vector<4x32xf32>, vector<32x128xf32>, vector<4x128xf32> -> vector<4x128xf32>
    %576 = arith.addf %574, %575 : vector<4x128xf32>
    %577 = vector.extract_strided_slice %576 {offsets = [0, 0], sizes = [4, 96], strides = [1, 1]} : vector<4x128xf32> to vector<4x96xf32>
    %578 = arith.negf %577 : vector<4x96xf32>
    %579 = math.exp %578 : vector<4x96xf32>
    %cst_203 = arith.constant 1.000000e+00 : f32
    %580 = vector.broadcast %cst_203 : f32 to vector<4x96xf32>
    %581 = arith.addf %580, %579 : vector<4x96xf32>
    %582 = arith.divf %580, %581 : vector<4x96xf32>
    %583 = vector.extract_strided_slice %582 {offsets = [0, 0], sizes = [4, 32], strides = [1, 1]} : vector<4x96xf32> to vector<4x32xf32>
    %584 = vector.extract_strided_slice %582 {offsets = [0, 32], sizes = [4, 32], strides = [1, 1]} : vector<4x96xf32> to vector<4x32xf32>
    %585 = vector.extract_strided_slice %582 {offsets = [0, 64], sizes = [4, 32], strides = [1, 1]} : vector<4x96xf32> to vector<4x32xf32>
    %586 = vector.extract_strided_slice %576 {offsets = [0, 96], sizes = [4, 32], strides = [1, 1]} : vector<4x128xf32> to vector<4x32xf32>
    %587 = math.tanh %586 : vector<4x32xf32>
    %588 = arith.mulf %584, %550 : vector<4x32xf32>
    %589 = arith.mulf %583, %587 : vector<4x32xf32>
    %590 = arith.addf %588, %589 : vector<4x32xf32>
    %591 = math.tanh %590 : vector<4x32xf32>
    %592 = arith.mulf %585, %591 : vector<4x32xf32>
    %c20_204 = arith.constant 20 : index
    %c0_205 = arith.constant 0 : index
    %593 = vector.load %arg20[%c20_204, %c0_205] : memref<32x128xf32, #tpu.memory_space<vmem>>, vector<4x128xf32>
    %cst_206 = arith.constant dense<0.000000e+00> : vector<4x128xf32>
    %594 = tpu.matmul %592, %502, %cst_206 {dimension_numbers = #tpu.dot_dimension_numbers<[1], [0], [0], [1], [0, 0, 1, 1], [], []>} : vector<4x32xf32>, vector<32x128xf32>, vector<4x128xf32> -> vector<4x128xf32>
    %595 = arith.addf %593, %594 : vector<4x128xf32>
    %cst_207 = arith.constant dense<0.000000e+00> : vector<4x128xf32>
    %596 = tpu.matmul %573, %503, %cst_207 {dimension_numbers = #tpu.dot_dimension_numbers<[1], [0], [0], [1], [0, 0, 1, 1], [], []>} : vector<4x32xf32>, vector<32x128xf32>, vector<4x128xf32> -> vector<4x128xf32>
    %597 = arith.addf %595, %596 : vector<4x128xf32>
    %598 = vector.extract_strided_slice %597 {offsets = [0, 0], sizes = [4, 96], strides = [1, 1]} : vector<4x128xf32> to vector<4x96xf32>
    %599 = arith.negf %598 : vector<4x96xf32>
    %600 = math.exp %599 : vector<4x96xf32>
    %cst_208 = arith.constant 1.000000e+00 : f32
    %601 = vector.broadcast %cst_208 : f32 to vector<4x96xf32>
    %602 = arith.addf %601, %600 : vector<4x96xf32>
    %603 = arith.divf %601, %602 : vector<4x96xf32>
    %604 = vector.extract_strided_slice %603 {offsets = [0, 0], sizes = [4, 32], strides = [1, 1]} : vector<4x96xf32> to vector<4x32xf32>
    %605 = vector.extract_strided_slice %603 {offsets = [0, 32], sizes = [4, 32], strides = [1, 1]} : vector<4x96xf32> to vector<4x32xf32>
    %606 = vector.extract_strided_slice %603 {offsets = [0, 64], sizes = [4, 32], strides = [1, 1]} : vector<4x96xf32> to vector<4x32xf32>
    %607 = vector.extract_strided_slice %597 {offsets = [0, 96], sizes = [4, 32], strides = [1, 1]} : vector<4x128xf32> to vector<4x32xf32>
    %608 = math.tanh %607 : vector<4x32xf32>
    %609 = arith.mulf %605, %571 : vector<4x32xf32>
    %610 = arith.mulf %604, %608 : vector<4x32xf32>
    %611 = arith.addf %609, %610 : vector<4x32xf32>
    %612 = math.tanh %611 : vector<4x32xf32>
    %613 = arith.mulf %606, %612 : vector<4x32xf32>
    %c16_209 = arith.constant 16 : index
    %c0_210 = arith.constant 0 : index
    %614 = vector.load %arg21[%c16_209, %c0_210] : memref<32x128xf32, #tpu.memory_space<vmem>>, vector<4x128xf32>
    %cst_211 = arith.constant dense<0.000000e+00> : vector<4x128xf32>
    %615 = tpu.matmul %592, %501, %cst_211 {dimension_numbers = #tpu.dot_dimension_numbers<[1], [0], [0], [1], [0, 0, 1, 1], [], []>} : vector<4x32xf32>, vector<32x128xf32>, vector<4x128xf32> -> vector<4x128xf32>
    %616 = arith.addf %614, %615 : vector<4x128xf32>
    %617 = vector.extract_strided_slice %616 {offsets = [0, 0], sizes = [4, 96], strides = [1, 1]} : vector<4x128xf32> to vector<4x96xf32>
    %618 = arith.negf %617 : vector<4x96xf32>
    %619 = math.exp %618 : vector<4x96xf32>
    %cst_212 = arith.constant 1.000000e+00 : f32
    %620 = vector.broadcast %cst_212 : f32 to vector<4x96xf32>
    %621 = arith.addf %620, %619 : vector<4x96xf32>
    %622 = arith.divf %620, %621 : vector<4x96xf32>
    %623 = vector.extract_strided_slice %622 {offsets = [0, 0], sizes = [4, 32], strides = [1, 1]} : vector<4x96xf32> to vector<4x32xf32>
    %624 = vector.extract_strided_slice %622 {offsets = [0, 32], sizes = [4, 32], strides = [1, 1]} : vector<4x96xf32> to vector<4x32xf32>
    %625 = vector.extract_strided_slice %622 {offsets = [0, 64], sizes = [4, 32], strides = [1, 1]} : vector<4x96xf32> to vector<4x32xf32>
    %626 = vector.extract_strided_slice %616 {offsets = [0, 96], sizes = [4, 32], strides = [1, 1]} : vector<4x128xf32> to vector<4x32xf32>
    %627 = math.tanh %626 : vector<4x32xf32>
    %628 = arith.mulf %624, %590 : vector<4x32xf32>
    %629 = arith.mulf %623, %627 : vector<4x32xf32>
    %630 = arith.addf %628, %629 : vector<4x32xf32>
    %631 = math.tanh %630 : vector<4x32xf32>
    %632 = arith.mulf %625, %631 : vector<4x32xf32>
    %c16_213 = arith.constant 16 : index
    %c0_214 = arith.constant 0 : index
    %633 = vector.load %arg20[%c16_213, %c0_214] : memref<32x128xf32, #tpu.memory_space<vmem>>, vector<4x128xf32>
    %cst_215 = arith.constant dense<0.000000e+00> : vector<4x128xf32>
    %634 = tpu.matmul %632, %502, %cst_215 {dimension_numbers = #tpu.dot_dimension_numbers<[1], [0], [0], [1], [0, 0, 1, 1], [], []>} : vector<4x32xf32>, vector<32x128xf32>, vector<4x128xf32> -> vector<4x128xf32>
    %635 = arith.addf %633, %634 : vector<4x128xf32>
    %cst_216 = arith.constant dense<0.000000e+00> : vector<4x128xf32>
    %636 = tpu.matmul %613, %503, %cst_216 {dimension_numbers = #tpu.dot_dimension_numbers<[1], [0], [0], [1], [0, 0, 1, 1], [], []>} : vector<4x32xf32>, vector<32x128xf32>, vector<4x128xf32> -> vector<4x128xf32>
    %637 = arith.addf %635, %636 : vector<4x128xf32>
    %638 = vector.extract_strided_slice %637 {offsets = [0, 0], sizes = [4, 96], strides = [1, 1]} : vector<4x128xf32> to vector<4x96xf32>
    %639 = arith.negf %638 : vector<4x96xf32>
    %640 = math.exp %639 : vector<4x96xf32>
    %cst_217 = arith.constant 1.000000e+00 : f32
    %641 = vector.broadcast %cst_217 : f32 to vector<4x96xf32>
    %642 = arith.addf %641, %640 : vector<4x96xf32>
    %643 = arith.divf %641, %642 : vector<4x96xf32>
    %644 = vector.extract_strided_slice %643 {offsets = [0, 0], sizes = [4, 32], strides = [1, 1]} : vector<4x96xf32> to vector<4x32xf32>
    %645 = vector.extract_strided_slice %643 {offsets = [0, 32], sizes = [4, 32], strides = [1, 1]} : vector<4x96xf32> to vector<4x32xf32>
    %646 = vector.extract_strided_slice %643 {offsets = [0, 64], sizes = [4, 32], strides = [1, 1]} : vector<4x96xf32> to vector<4x32xf32>
    %647 = vector.extract_strided_slice %637 {offsets = [0, 96], sizes = [4, 32], strides = [1, 1]} : vector<4x128xf32> to vector<4x32xf32>
    %648 = math.tanh %647 : vector<4x32xf32>
    %649 = arith.mulf %645, %611 : vector<4x32xf32>
    %650 = arith.mulf %644, %648 : vector<4x32xf32>
    %651 = arith.addf %649, %650 : vector<4x32xf32>
    %652 = math.tanh %651 : vector<4x32xf32>
    %653 = arith.mulf %646, %652 : vector<4x32xf32>
    %c12_218 = arith.constant 12 : index
    %c0_219 = arith.constant 0 : index
    %654 = vector.load %arg21[%c12_218, %c0_219] : memref<32x128xf32, #tpu.memory_space<vmem>>, vector<4x128xf32>
    %cst_220 = arith.constant dense<0.000000e+00> : vector<4x128xf32>
    %655 = tpu.matmul %632, %501, %cst_220 {dimension_numbers = #tpu.dot_dimension_numbers<[1], [0], [0], [1], [0, 0, 1, 1], [], []>} : vector<4x32xf32>, vector<32x128xf32>, vector<4x128xf32> -> vector<4x128xf32>
    %656 = arith.addf %654, %655 : vector<4x128xf32>
    %657 = vector.extract_strided_slice %656 {offsets = [0, 0], sizes = [4, 96], strides = [1, 1]} : vector<4x128xf32> to vector<4x96xf32>
    %658 = arith.negf %657 : vector<4x96xf32>
    %659 = math.exp %658 : vector<4x96xf32>
    %cst_221 = arith.constant 1.000000e+00 : f32
    %660 = vector.broadcast %cst_221 : f32 to vector<4x96xf32>
    %661 = arith.addf %660, %659 : vector<4x96xf32>
    %662 = arith.divf %660, %661 : vector<4x96xf32>
    %663 = vector.extract_strided_slice %662 {offsets = [0, 0], sizes = [4, 32], strides = [1, 1]} : vector<4x96xf32> to vector<4x32xf32>
    %664 = vector.extract_strided_slice %662 {offsets = [0, 32], sizes = [4, 32], strides = [1, 1]} : vector<4x96xf32> to vector<4x32xf32>
    %665 = vector.extract_strided_slice %662 {offsets = [0, 64], sizes = [4, 32], strides = [1, 1]} : vector<4x96xf32> to vector<4x32xf32>
    %666 = vector.extract_strided_slice %656 {offsets = [0, 96], sizes = [4, 32], strides = [1, 1]} : vector<4x128xf32> to vector<4x32xf32>
    %667 = math.tanh %666 : vector<4x32xf32>
    %668 = arith.mulf %664, %630 : vector<4x32xf32>
    %669 = arith.mulf %663, %667 : vector<4x32xf32>
    %670 = arith.addf %668, %669 : vector<4x32xf32>
    %671 = math.tanh %670 : vector<4x32xf32>
    %672 = arith.mulf %665, %671 : vector<4x32xf32>
    %c12_222 = arith.constant 12 : index
    %c0_223 = arith.constant 0 : index
    %673 = vector.load %arg20[%c12_222, %c0_223] : memref<32x128xf32, #tpu.memory_space<vmem>>, vector<4x128xf32>
    %cst_224 = arith.constant dense<0.000000e+00> : vector<4x128xf32>
    %674 = tpu.matmul %672, %502, %cst_224 {dimension_numbers = #tpu.dot_dimension_numbers<[1], [0], [0], [1], [0, 0, 1, 1], [], []>} : vector<4x32xf32>, vector<32x128xf32>, vector<4x128xf32> -> vector<4x128xf32>
    %675 = arith.addf %673, %674 : vector<4x128xf32>
    %cst_225 = arith.constant dense<0.000000e+00> : vector<4x128xf32>
    %676 = tpu.matmul %653, %503, %cst_225 {dimension_numbers = #tpu.dot_dimension_numbers<[1], [0], [0], [1], [0, 0, 1, 1], [], []>} : vector<4x32xf32>, vector<32x128xf32>, vector<4x128xf32> -> vector<4x128xf32>
    %677 = arith.addf %675, %676 : vector<4x128xf32>
    %678 = vector.extract_strided_slice %677 {offsets = [0, 0], sizes = [4, 96], strides = [1, 1]} : vector<4x128xf32> to vector<4x96xf32>
    %679 = arith.negf %678 : vector<4x96xf32>
    %680 = math.exp %679 : vector<4x96xf32>
    %cst_226 = arith.constant 1.000000e+00 : f32
    %681 = vector.broadcast %cst_226 : f32 to vector<4x96xf32>
    %682 = arith.addf %681, %680 : vector<4x96xf32>
    %683 = arith.divf %681, %682 : vector<4x96xf32>
    %684 = vector.extract_strided_slice %683 {offsets = [0, 0], sizes = [4, 32], strides = [1, 1]} : vector<4x96xf32> to vector<4x32xf32>
    %685 = vector.extract_strided_slice %683 {offsets = [0, 32], sizes = [4, 32], strides = [1, 1]} : vector<4x96xf32> to vector<4x32xf32>
    %686 = vector.extract_strided_slice %683 {offsets = [0, 64], sizes = [4, 32], strides = [1, 1]} : vector<4x96xf32> to vector<4x32xf32>
    %687 = vector.extract_strided_slice %677 {offsets = [0, 96], sizes = [4, 32], strides = [1, 1]} : vector<4x128xf32> to vector<4x32xf32>
    %688 = math.tanh %687 : vector<4x32xf32>
    %689 = arith.mulf %685, %651 : vector<4x32xf32>
    %690 = arith.mulf %684, %688 : vector<4x32xf32>
    %691 = arith.addf %689, %690 : vector<4x32xf32>
    %692 = math.tanh %691 : vector<4x32xf32>
    %693 = arith.mulf %686, %692 : vector<4x32xf32>
    %c8_227 = arith.constant 8 : index
    %c0_228 = arith.constant 0 : index
    %694 = vector.load %arg21[%c8_227, %c0_228] : memref<32x128xf32, #tpu.memory_space<vmem>>, vector<4x128xf32>
    %cst_229 = arith.constant dense<0.000000e+00> : vector<4x128xf32>
    %695 = tpu.matmul %672, %501, %cst_229 {dimension_numbers = #tpu.dot_dimension_numbers<[1], [0], [0], [1], [0, 0, 1, 1], [], []>} : vector<4x32xf32>, vector<32x128xf32>, vector<4x128xf32> -> vector<4x128xf32>
    %696 = arith.addf %694, %695 : vector<4x128xf32>
    %697 = vector.extract_strided_slice %696 {offsets = [0, 0], sizes = [4, 96], strides = [1, 1]} : vector<4x128xf32> to vector<4x96xf32>
    %698 = arith.negf %697 : vector<4x96xf32>
    %699 = math.exp %698 : vector<4x96xf32>
    %cst_230 = arith.constant 1.000000e+00 : f32
    %700 = vector.broadcast %cst_230 : f32 to vector<4x96xf32>
    %701 = arith.addf %700, %699 : vector<4x96xf32>
    %702 = arith.divf %700, %701 : vector<4x96xf32>
    %703 = vector.extract_strided_slice %702 {offsets = [0, 0], sizes = [4, 32], strides = [1, 1]} : vector<4x96xf32> to vector<4x32xf32>
    %704 = vector.extract_strided_slice %702 {offsets = [0, 32], sizes = [4, 32], strides = [1, 1]} : vector<4x96xf32> to vector<4x32xf32>
    %705 = vector.extract_strided_slice %702 {offsets = [0, 64], sizes = [4, 32], strides = [1, 1]} : vector<4x96xf32> to vector<4x32xf32>
    %706 = vector.extract_strided_slice %696 {offsets = [0, 96], sizes = [4, 32], strides = [1, 1]} : vector<4x128xf32> to vector<4x32xf32>
    %707 = math.tanh %706 : vector<4x32xf32>
    %708 = arith.mulf %704, %670 : vector<4x32xf32>
    %709 = arith.mulf %703, %707 : vector<4x32xf32>
    %710 = arith.addf %708, %709 : vector<4x32xf32>
    %711 = math.tanh %710 : vector<4x32xf32>
    %712 = arith.mulf %705, %711 : vector<4x32xf32>
    %c8_231 = arith.constant 8 : index
    %c0_232 = arith.constant 0 : index
    %713 = vector.load %arg20[%c8_231, %c0_232] : memref<32x128xf32, #tpu.memory_space<vmem>>, vector<4x128xf32>
    %cst_233 = arith.constant dense<0.000000e+00> : vector<4x128xf32>
    %714 = tpu.matmul %712, %502, %cst_233 {dimension_numbers = #tpu.dot_dimension_numbers<[1], [0], [0], [1], [0, 0, 1, 1], [], []>} : vector<4x32xf32>, vector<32x128xf32>, vector<4x128xf32> -> vector<4x128xf32>
    %715 = arith.addf %713, %714 : vector<4x128xf32>
    %cst_234 = arith.constant dense<0.000000e+00> : vector<4x128xf32>
    %716 = tpu.matmul %693, %503, %cst_234 {dimension_numbers = #tpu.dot_dimension_numbers<[1], [0], [0], [1], [0, 0, 1, 1], [], []>} : vector<4x32xf32>, vector<32x128xf32>, vector<4x128xf32> -> vector<4x128xf32>
    %717 = arith.addf %715, %716 : vector<4x128xf32>
    %718 = vector.extract_strided_slice %717 {offsets = [0, 0], sizes = [4, 96], strides = [1, 1]} : vector<4x128xf32> to vector<4x96xf32>
    %719 = arith.negf %718 : vector<4x96xf32>
    %720 = math.exp %719 : vector<4x96xf32>
    %cst_235 = arith.constant 1.000000e+00 : f32
    %721 = vector.broadcast %cst_235 : f32 to vector<4x96xf32>
    %722 = arith.addf %721, %720 : vector<4x96xf32>
    %723 = arith.divf %721, %722 : vector<4x96xf32>
    %724 = vector.extract_strided_slice %723 {offsets = [0, 0], sizes = [4, 32], strides = [1, 1]} : vector<4x96xf32> to vector<4x32xf32>
    %725 = vector.extract_strided_slice %723 {offsets = [0, 32], sizes = [4, 32], strides = [1, 1]} : vector<4x96xf32> to vector<4x32xf32>
    %726 = vector.extract_strided_slice %723 {offsets = [0, 64], sizes = [4, 32], strides = [1, 1]} : vector<4x96xf32> to vector<4x32xf32>
    %727 = vector.extract_strided_slice %717 {offsets = [0, 96], sizes = [4, 32], strides = [1, 1]} : vector<4x128xf32> to vector<4x32xf32>
    %728 = math.tanh %727 : vector<4x32xf32>
    %729 = arith.mulf %725, %691 : vector<4x32xf32>
    %730 = arith.mulf %724, %728 : vector<4x32xf32>
    %731 = arith.addf %729, %730 : vector<4x32xf32>
    %732 = math.tanh %731 : vector<4x32xf32>
    %733 = arith.mulf %726, %732 : vector<4x32xf32>
    %c4_236 = arith.constant 4 : index
    %c0_237 = arith.constant 0 : index
    %734 = vector.load %arg21[%c4_236, %c0_237] : memref<32x128xf32, #tpu.memory_space<vmem>>, vector<4x128xf32>
    %cst_238 = arith.constant dense<0.000000e+00> : vector<4x128xf32>
    %735 = tpu.matmul %712, %501, %cst_238 {dimension_numbers = #tpu.dot_dimension_numbers<[1], [0], [0], [1], [0, 0, 1, 1], [], []>} : vector<4x32xf32>, vector<32x128xf32>, vector<4x128xf32> -> vector<4x128xf32>
    %736 = arith.addf %734, %735 : vector<4x128xf32>
    %737 = vector.extract_strided_slice %736 {offsets = [0, 0], sizes = [4, 96], strides = [1, 1]} : vector<4x128xf32> to vector<4x96xf32>
    %738 = arith.negf %737 : vector<4x96xf32>
    %739 = math.exp %738 : vector<4x96xf32>
    %cst_239 = arith.constant 1.000000e+00 : f32
    %740 = vector.broadcast %cst_239 : f32 to vector<4x96xf32>
    %741 = arith.addf %740, %739 : vector<4x96xf32>
    %742 = arith.divf %740, %741 : vector<4x96xf32>
    %743 = vector.extract_strided_slice %742 {offsets = [0, 0], sizes = [4, 32], strides = [1, 1]} : vector<4x96xf32> to vector<4x32xf32>
    %744 = vector.extract_strided_slice %742 {offsets = [0, 32], sizes = [4, 32], strides = [1, 1]} : vector<4x96xf32> to vector<4x32xf32>
    %745 = vector.extract_strided_slice %742 {offsets = [0, 64], sizes = [4, 32], strides = [1, 1]} : vector<4x96xf32> to vector<4x32xf32>
    %746 = vector.extract_strided_slice %736 {offsets = [0, 96], sizes = [4, 32], strides = [1, 1]} : vector<4x128xf32> to vector<4x32xf32>
    %747 = math.tanh %746 : vector<4x32xf32>
    %748 = arith.mulf %744, %710 : vector<4x32xf32>
    %749 = arith.mulf %743, %747 : vector<4x32xf32>
    %750 = arith.addf %748, %749 : vector<4x32xf32>
    %751 = math.tanh %750 : vector<4x32xf32>
    %752 = arith.mulf %745, %751 : vector<4x32xf32>
    %c4_240 = arith.constant 4 : index
    %c0_241 = arith.constant 0 : index
    %753 = vector.load %arg20[%c4_240, %c0_241] : memref<32x128xf32, #tpu.memory_space<vmem>>, vector<4x128xf32>
    %cst_242 = arith.constant dense<0.000000e+00> : vector<4x128xf32>
    %754 = tpu.matmul %752, %502, %cst_242 {dimension_numbers = #tpu.dot_dimension_numbers<[1], [0], [0], [1], [0, 0, 1, 1], [], []>} : vector<4x32xf32>, vector<32x128xf32>, vector<4x128xf32> -> vector<4x128xf32>
    %755 = arith.addf %753, %754 : vector<4x128xf32>
    %cst_243 = arith.constant dense<0.000000e+00> : vector<4x128xf32>
    %756 = tpu.matmul %733, %503, %cst_243 {dimension_numbers = #tpu.dot_dimension_numbers<[1], [0], [0], [1], [0, 0, 1, 1], [], []>} : vector<4x32xf32>, vector<32x128xf32>, vector<4x128xf32> -> vector<4x128xf32>
    %757 = arith.addf %755, %756 : vector<4x128xf32>
    %758 = vector.extract_strided_slice %757 {offsets = [0, 0], sizes = [4, 96], strides = [1, 1]} : vector<4x128xf32> to vector<4x96xf32>
    %759 = arith.negf %758 : vector<4x96xf32>
    %760 = math.exp %759 : vector<4x96xf32>
    %cst_244 = arith.constant 1.000000e+00 : f32
    %761 = vector.broadcast %cst_244 : f32 to vector<4x96xf32>
    %762 = arith.addf %761, %760 : vector<4x96xf32>
    %763 = arith.divf %761, %762 : vector<4x96xf32>
    %764 = vector.extract_strided_slice %763 {offsets = [0, 0], sizes = [4, 32], strides = [1, 1]} : vector<4x96xf32> to vector<4x32xf32>
    %765 = vector.extract_strided_slice %763 {offsets = [0, 32], sizes = [4, 32], strides = [1, 1]} : vector<4x96xf32> to vector<4x32xf32>
    %766 = vector.extract_strided_slice %763 {offsets = [0, 64], sizes = [4, 32], strides = [1, 1]} : vector<4x96xf32> to vector<4x32xf32>
    %767 = vector.extract_strided_slice %757 {offsets = [0, 96], sizes = [4, 32], strides = [1, 1]} : vector<4x128xf32> to vector<4x32xf32>
    %768 = math.tanh %767 : vector<4x32xf32>
    %769 = arith.mulf %765, %731 : vector<4x32xf32>
    %770 = arith.mulf %764, %768 : vector<4x32xf32>
    %771 = arith.addf %769, %770 : vector<4x32xf32>
    %772 = math.tanh %771 : vector<4x32xf32>
    %773 = arith.mulf %766, %772 : vector<4x32xf32>
    %c0_245 = arith.constant 0 : index
    %c0_246 = arith.constant 0 : index
    %774 = vector.load %arg21[%c0_245, %c0_246] : memref<32x128xf32, #tpu.memory_space<vmem>>, vector<4x128xf32>
    %cst_247 = arith.constant dense<0.000000e+00> : vector<4x128xf32>
    %775 = tpu.matmul %752, %501, %cst_247 {dimension_numbers = #tpu.dot_dimension_numbers<[1], [0], [0], [1], [0, 0, 1, 1], [], []>} : vector<4x32xf32>, vector<32x128xf32>, vector<4x128xf32> -> vector<4x128xf32>
    %776 = arith.addf %774, %775 : vector<4x128xf32>
    %777 = vector.extract_strided_slice %776 {offsets = [0, 0], sizes = [4, 96], strides = [1, 1]} : vector<4x128xf32> to vector<4x96xf32>
    %778 = arith.negf %777 : vector<4x96xf32>
    %779 = math.exp %778 : vector<4x96xf32>
    %cst_248 = arith.constant 1.000000e+00 : f32
    %780 = vector.broadcast %cst_248 : f32 to vector<4x96xf32>
    %781 = arith.addf %780, %779 : vector<4x96xf32>
    %782 = arith.divf %780, %781 : vector<4x96xf32>
    %783 = vector.extract_strided_slice %782 {offsets = [0, 0], sizes = [4, 32], strides = [1, 1]} : vector<4x96xf32> to vector<4x32xf32>
    %784 = vector.extract_strided_slice %782 {offsets = [0, 32], sizes = [4, 32], strides = [1, 1]} : vector<4x96xf32> to vector<4x32xf32>
    %785 = vector.extract_strided_slice %782 {offsets = [0, 64], sizes = [4, 32], strides = [1, 1]} : vector<4x96xf32> to vector<4x32xf32>
    %786 = vector.extract_strided_slice %776 {offsets = [0, 96], sizes = [4, 32], strides = [1, 1]} : vector<4x128xf32> to vector<4x32xf32>
    %787 = math.tanh %786 : vector<4x32xf32>
    %788 = arith.mulf %784, %750 : vector<4x32xf32>
    %789 = arith.mulf %783, %787 : vector<4x32xf32>
    %790 = arith.addf %788, %789 : vector<4x32xf32>
    %791 = math.tanh %790 : vector<4x32xf32>
    %792 = arith.mulf %785, %791 : vector<4x32xf32>
    %c0_249 = arith.constant 0 : index
    %c0_250 = arith.constant 0 : index
    %793 = vector.load %arg20[%c0_249, %c0_250] : memref<32x128xf32, #tpu.memory_space<vmem>>, vector<4x128xf32>
    %cst_251 = arith.constant dense<0.000000e+00> : vector<4x128xf32>
    %794 = tpu.matmul %792, %502, %cst_251 {dimension_numbers = #tpu.dot_dimension_numbers<[1], [0], [0], [1], [0, 0, 1, 1], [], []>} : vector<4x32xf32>, vector<32x128xf32>, vector<4x128xf32> -> vector<4x128xf32>
    %795 = arith.addf %793, %794 : vector<4x128xf32>
    %cst_252 = arith.constant dense<0.000000e+00> : vector<4x128xf32>
    %796 = tpu.matmul %773, %503, %cst_252 {dimension_numbers = #tpu.dot_dimension_numbers<[1], [0], [0], [1], [0, 0, 1, 1], [], []>} : vector<4x32xf32>, vector<32x128xf32>, vector<4x128xf32> -> vector<4x128xf32>
    %797 = arith.addf %795, %796 : vector<4x128xf32>
    %798 = vector.extract_strided_slice %797 {offsets = [0, 0], sizes = [4, 96], strides = [1, 1]} : vector<4x128xf32> to vector<4x96xf32>
    %799 = arith.negf %798 : vector<4x96xf32>
    %800 = math.exp %799 : vector<4x96xf32>
    %cst_253 = arith.constant 1.000000e+00 : f32
    %801 = vector.broadcast %cst_253 : f32 to vector<4x96xf32>
    %802 = arith.addf %801, %800 : vector<4x96xf32>
    %803 = arith.divf %801, %802 : vector<4x96xf32>
    %804 = vector.extract_strided_slice %803 {offsets = [0, 0], sizes = [4, 32], strides = [1, 1]} : vector<4x96xf32> to vector<4x32xf32>
    %805 = vector.extract_strided_slice %803 {offsets = [0, 32], sizes = [4, 32], strides = [1, 1]} : vector<4x96xf32> to vector<4x32xf32>
    %806 = vector.extract_strided_slice %803 {offsets = [0, 64], sizes = [4, 32], strides = [1, 1]} : vector<4x96xf32> to vector<4x32xf32>
    %807 = vector.extract_strided_slice %797 {offsets = [0, 96], sizes = [4, 32], strides = [1, 1]} : vector<4x128xf32> to vector<4x32xf32>
    %808 = math.tanh %807 : vector<4x32xf32>
    %809 = arith.mulf %805, %771 : vector<4x32xf32>
    %810 = arith.mulf %804, %808 : vector<4x32xf32>
    %811 = arith.addf %809, %810 : vector<4x32xf32>
    %812 = math.tanh %811 : vector<4x32xf32>
    %813 = arith.mulf %806, %812 : vector<4x32xf32>
    %c0_254 = arith.constant 0 : index
    %c0_255 = arith.constant 0 : index
    %814 = vector.load %arg17[%c0_254, %c0_255] : memref<32x256xf32, #tpu.memory_space<vmem>>, vector<32x256xf32>
    %cst_256 = arith.constant dense<0.000000e+00> : vector<4x256xf32>
    %815 = tpu.matmul %813, %814, %cst_256 {dimension_numbers = #tpu.dot_dimension_numbers<[1], [0], [0], [1], [0, 0, 1, 1], [], []>} : vector<4x32xf32>, vector<32x256xf32>, vector<4x256xf32> -> vector<4x256xf32>
    %c0_257 = arith.constant 0 : index
    %c0_258 = arith.constant 0 : index
    %816 = vector.load %arg18[%c0_257, %c0_258] : memref<1x256xf32, #tpu.memory_space<vmem>>, vector<1x256xf32>
    %817 = vector.broadcast %816 : vector<1x256xf32> to vector<4x256xf32>
    %818 = arith.addf %815, %817 : vector<4x256xf32>
    %cst_259 = arith.constant 0.000000e+00 : f32
    %819 = vector.broadcast %cst_259 : f32 to vector<4x256xf32>
    %820 = arith.maximumf %818, %819 : vector<4x256xf32>
    %821 = arith.mulf %820, %820 : vector<4x256xf32>
    %cst_260 = arith.constant dense<0.000000e+00> : vector<4xf32>
    %822 = vector.multi_reduction <add>, %821, %cst_260 [1] : vector<4x256xf32> to vector<4xf32>
    %823 = vector.shape_cast %822 : vector<4xf32> to vector<4x1xf32>
    %824 = math.sqrt %823 : vector<4x1xf32>
    %825 = vector.broadcast %824 : vector<4x1xf32> to vector<4x256xf32>
    %826 = arith.divf %820, %825 : vector<4x256xf32>
    %c0_261 = arith.constant 0 : index
    %c0_262 = arith.constant 0 : index
    %827 = vector.load %arg19[%c0_261, %c0_262] : memref<4x256xf32, #tpu.memory_space<vmem>>, vector<4x256xf32>
    tpu.vector_store %arg19[%c0_261, %c0_262], %826 {strides = array<i32>} : memref<4x256xf32, #tpu.memory_space<vmem>>, vector<4x256xf32>,
    return
  }
}

</mosaic_0001>

<bundles_post_ra>
// kernel: lstm_speaker_encoder_forward.1
= control target key start
LH: loop header
LB: loop body
LE: loop exit
PB: predicated region body
PF: predicated region fallthrough
CT: control target
= control target key end

     0   :  { %s7818_s0 = inlined_call_operand.vmem [shape: f32[32,16], index: 0, kind: input, shape index: {}]   ;;  %s7819_s1 = inlined_call_operand.hbm [shape: f32[16,128], index: 1, kind: input, shape index: {}]   ;;  %s7820_s2 = inlined_call_operand.hbm [shape: f32[16,128], index: 2, kind: input, shape index: {}]   ;;  %s7821_s3 = inlined_call_operand.vmem [shape: f32[32,128], index: 3, kind: input, shape index: {}]   ;;  %s7822_s4 = inlined_call_operand.hbm [shape: f32[32,128], index: 4, kind: input, shape index: {}]   ;;  %s7823_s5 = inlined_call_operand.vmem [shape: f32[1,128], index: 5, kind: input, shape index: {}]   ;;  %s7824_s6 = inlined_call_operand.vmem [shape: f32[1,128], index: 6, kind: input, shape index: {}]   ;;  %s7825_s7 = inlined_call_operand.vmem [shape: f32[64,128], index: 7, kind: input, shape index: {}]   ;;  %s7826_s8 = inlined_call_operand.vmem [shape: f32[64,128], index: 8, kind: input, shape index: {}]   ;;  %s7827_s9 = inlined_call_operand.hbm [shape: f32[32,128], index: 9, kind: input, shape index: {}]   ;;  %s7828_s10 = inlined_call_operand.hbm [shape: f32[32,128], index: 10, kind: input, shape index: {}]   ;;  %s7829_s11 = inlined_call_operand.vmem [shape: f32[1,128], index: 11, kind: input, shape index: {}]   ;;  %s7830_s12 = inlined_call_operand.vmem [shape: f32[1,128], index: 12, kind: input, shape index: {}]   ;;  %s7831_s13 = inlined_call_operand.vmem [shape: f32[32,128], index: 13, kind: input, shape index: {}]   ;;  %s7832_s14 = inlined_call_operand.vmem [shape: f32[32,128], index: 14, kind: input, shape index: {}]   ;;  %s7833_s15 = inlined_call_operand.hbm [shape: f32[32,128], index: 15, kind: input, shape index: {}]   ;;  %s7834_s16 = inlined_call_operand.hbm [shape: f32[1,128], index: 16, kind: input, shape index: {}]   ;;  %s7835_s17 = inlined_call_operand.hbm [shape: f32[32,256], index: 17, kind: input, shape index: {}]   ;;  %s7836_s18 = inlined_call_operand.vmem [shape: f32[1,256], index: 18, kind: input, shape index: {}]   ;;  %s7837_s19 = inlined_call_operand.hbm [shape: f32[4,256], index: 19, kind: output, shape index: {}]  }
   0x1   :  { %7840 = sst [smem:[#allocation27_spill]] %s7818_s0 }
   0x2   :  { %7841 = sst [smem:[#allocation28_spill]] %s7819_s1 }
   0x3   :  { %7842 = sst [smem:[#allocation29_spill]] %s7820_s2 }
   0x4   :  { %7843 = sst [smem:[#allocation30_spill]] %s7821_s3 }
   0x5   :  { %24 = vsyncpa [#allocation7], 0 }
   0x6   :  { %25 = vsyncpa [#allocation10], 0 }
   0x7   :  { %26 = vsyncpa [#allocation13], 0 }
   0x8   :  { %27 = vsyncpa [#allocation16], 0 }
   0x9   :  { %28 = vsyncpa [#allocation19], 0 }
   0xa   :  { %29 = vsyncpa [#allocation8], 0  ;;  %s6646_s0 = smov [#allocation9]   ;;  %s6647_s20 = smov [#allocation12]  }
   0xb   :  { %s49_s30 = sshll.u32 %s6646_s0, 4  ;;  %s83_s21 = sshll.u32 %s6647_s20, 4  ;;  %s50_s30 = int_to_ptr.vmem [resolvable:$true] %s49_s30  ;;  %s84_s21 = int_to_ptr.vmem [resolvable:$true] %s83_s21 }
   0xc   :  { %s6462_s1 = scalar_lea.vmem %s50_s30, 256  ;;  %p6467_p1 = scmp.lt.s32.totalorder %s50_s30, %s50_s30 }
   0xd   :  { %p6463_p0 = scmp.ne.s32.totalorder %s50_s30, %s6462_s1  ;;  %p6468_p2 = scmp.lt.s32.totalorder %s6462_s1, %s6462_s1 }
   0xf   :  { %p6469_p3 = por %p6468_p2, %p6467_p1 }
  0x11   :  { %p6470_p4 = pnand %p6469_p3, %p6463_p0 }
  0x13   :  { %6473 = shalt.err (!%p6470_p4)
}
  0x14   :  { %s6648_s22 = smov 128   ;;  %s6649_s2 = smov 8  }
  0x15   :  { %s7844_s25 = sld [smem:[#allocation29_spill]]  ;;  %s6482_s3 = scalar_lea.vmem %s84_s21, 512 }
  0x16   :  { %p6483_p5 = scmp.ne.s32.totalorder %s84_s21, %s6482_s3  ;;  %p6487_p6 = scmp.lt.s32.totalorder %s84_s21, %s84_s21 }
  0x17   :  { %p6488_p7 = scmp.lt.s32.totalorder %s6482_s3, %s6482_s3 }
  0x19   :  { %p6489_p8 = por %p6488_p7, %p6487_p6 }
  0x1b   :  { %55 = dma.hbm_to_vmem [thread:$0]  %s7844_s25, 256, %s50_s30, [#allocation10], %s6648_s22, %s6648_s22, %s6649_s2  }
  0x1c   :  { %p6490_p9 = pnand %p6489_p8, %p6483_p5 }
  0x1e   :  { %6493 = shalt.err (!%p6490_p9)
}
  0x1f   :  { %89 = dma.hbm_to_vmem [thread:$0]  %s7827_s9, 512, %s84_s21, [#allocation13], %s6648_s22, %s6648_s22, %s6649_s2  }
  0x20   :  { %s6650_s28 = smov [#allocation15]   ;;  %s6651_s0 = smov [#allocation6]  }
  0x21   :  { %s115_s29 = sshll.u32 %s6650_s28, 4  ;;  %s37_s20 = sshll.u32 %s6651_s0, 4  ;;  %s116_s29 = int_to_ptr.vmem [resolvable:$true] %s115_s29  ;;  %s38_s20 = int_to_ptr.vmem [resolvable:$true] %s37_s20 }
  0x22   :  { %s6502_s30 = scalar_lea.vmem %s116_s29, 512  ;;  %p6507_p11 = scmp.lt.s32.totalorder %s116_s29, %s116_s29 }
  0x23   :  { %p6503_p10 = scmp.ne.s32.totalorder %s116_s29, %s6502_s30  ;;  %p6508_p12 = scmp.lt.s32.totalorder %s6502_s30, %s6502_s30 }
  0x25   :  { %p6509_p13 = por %p6508_p12, %p6507_p11 }
  0x27   :  { %p6510_p0 = pnand %p6509_p13, %p6503_p10 }
  0x29   :  { %6513 = shalt.err (!%p6510_p0)
}
  0x2a   :  { %121 = dma.hbm_to_vmem [thread:$0]  %s7833_s15, 512, %s116_s29, [#allocation16], %s6648_s22, %s6648_s22, %s6649_s2  }
  0x2b   :  { %s6522_s9 = scalar_lea.vmem %s38_s20, 256  ;;  %p6527_p2 = scmp.lt.s32.totalorder %s38_s20, %s38_s20 }
  0x2c   :  { %p6523_p1 = scmp.ne.s32.totalorder %s38_s20, %s6522_s9  ;;  %p6528_p3 = scmp.lt.s32.totalorder %s6522_s9, %s6522_s9 }
  0x2e   :  { %p6529_p4 = por %p6528_p3, %p6527_p2 }
  0x30   :  { %p6530_p5 = pnand %p6529_p4, %p6523_p1 }
  0x32   :  { %6533 = shalt.err (!%p6530_p5)
}
  0x33   :  { %s7845_s25 = sld [smem:[#allocation28_spill]]  ;;  %s6652_s3 = smov [#allocation11]  }
  0x34   :  { %s63_s26 = sshll.u32 %s6652_s3, 4  ;;  %s6653_s27 = smov [#allocation14]   ;;  %s64_s26 = int_to_ptr.vmem [resolvable:$true] %s63_s26 }
  0x35   :  { %s95_s28 = sshll.u32 %s6653_s27, 4  ;;  %s6542_s15 = scalar_lea.vmem %s64_s26, 512  ;;  %s96_s28 = int_to_ptr.vmem [resolvable:$true] %s95_s28 }
  0x36   :  { %p6543_p6 = scmp.ne.s32.totalorder %s64_s26, %s6542_s15  ;;  %p6547_p7 = scmp.lt.s32.totalorder %s64_s26, %s64_s26 }
  0x37   :  { %p6548_p8 = scmp.lt.s32.totalorder %s6542_s15, %s6542_s15 }
  0x39   :  { %43 = dma.hbm_to_vmem [thread:$0]  %s7845_s25, 256, %s38_s20, [#allocation7], %s6648_s22, %s6648_s22, %s6649_s2  }
  0x3a   :  { %p6549_p9 = por %p6548_p8, %p6547_p7 }
  0x3c   :  { %p6550_p10 = pnand %p6549_p9, %p6543_p6 }
  0x3e   :  { %6553 = shalt.err (!%p6550_p10)
}
  0x3f   :  { %69 = dma.hbm_to_vmem [thread:$0]  %s7822_s4, 512, %s64_s26, [#allocation10], %s6648_s22, %s6648_s22, %s6649_s2  }
  0x40   :  { %s6562_s20 = scalar_lea.vmem %s96_s28, 512  ;;  %p6567_p12 = scmp.lt.s32.totalorder %s96_s28, %s96_s28 }
  0x41   :  { %p6563_p11 = scmp.ne.s32.totalorder %s96_s28, %s6562_s20  ;;  %p6568_p13 = scmp.lt.s32.totalorder %s6562_s20, %s6562_s20 }
  0x43   :  { %p6569_p0 = por %p6568_p13, %p6567_p12 }
  0x45   :  { %p6570_p1 = pnand %p6569_p0, %p6563_p11 }
  0x47   :  { %6573 = shalt.err (!%p6570_p1)
}
  0x48   :  { %101 = dma.hbm_to_vmem [thread:$0]  %s7828_s10, 512, %s96_s28, [#allocation13], %s6648_s22, %s6648_s22, %s6649_s2  }
  0x49   :  { %s6654_s23 = smov [#allocation17]   ;;  %s6655_s21 = smov [#allocation18]  }
  0x4a   :  { %s128_s9 = sshll.u32 %s6654_s23, 4  ;;  %s137_s24 = sshll.u32 %s6655_s21, 4  ;;  %s129_s9 = int_to_ptr.vmem [resolvable:$true] %s128_s9  ;;  %s138_s24 = int_to_ptr.vmem [resolvable:$true] %s137_s24 }
  0x4b   :  { %s6582_s4 = scalar_lea.vmem %s129_s9, 16  ;;  %s6586_s25 = scalar_lea.vmem %s129_s9, 32 }
  0x4c   :  { %p6583_p2 = scmp.ne.s32.totalorder %s129_s9, %s6582_s4  ;;  %p6587_p3 = scmp.lt.s32.totalorder %s129_s9, %s129_s9 }
  0x4d   :  { %p6588_p4 = scmp.lt.s32.totalorder %s6586_s25, %s6582_s4 }
  0x4f   :  { %p6589_p5 = por %p6588_p4, %p6587_p3 }
  0x51   :  { %p6590_p6 = pnand %p6589_p5, %p6583_p2 }
  0x53   :  { %6593 = shalt.err (!%p6590_p6)
}
  0x54   :  { %131 = dma.hbm_to_vmem [thread:$0]  %s7834_s16, 16, %s129_s9, [#allocation16]  }
  0x55   :  { %s6602_s27 = scalar_lea.vmem %s138_s24, 1024  ;;  %p6607_p8 = scmp.lt.s32.totalorder %s138_s24, %s138_s24 }
  0x56   :  { %p6603_p7 = scmp.ne.s32.totalorder %s138_s24, %s6602_s27  ;;  %p6608_p9 = scmp.lt.s32.totalorder %s6602_s27, %s6602_s27 }
  0x58   :  { %p6609_p10 = por %p6608_p9, %p6607_p8 }
  0x5a   :  { %p6610_p11 = pnand %p6609_p10, %p6603_p7 }
  0x5c   :  { %6613 = shalt.err (!%p6610_p11)
}
  0x5d   :  { %s6656_s10 = smov 256   ;;  %s6657_s22 = smov 16  }
  0x5e   :  { %143 = dma.hbm_to_vmem [thread:$0]  %s7835_s17, 1024, %s138_s24, [#allocation19], %s6656_s10, %s6656_s10, %s6657_s22  }
  0x5f   :  { %6634 = dma.done.wait [#allocation7], 256  }
  0x60   :  { %6635 = vsyncadd [#allocation7], 4294967040 }
  0x61   :  { %6636 = dma.done.wait [#allocation10], 768  }
  0x62   :  { %6637 = vsyncadd [#allocation10], 4294966528 }
  0x63   :  { %6638 = dma.done.wait [#allocation13], 1024  }
  0x64   :  { %6639 = vsyncadd [#allocation13], 4294966272 }
  0x65   :  { %6640 = dma.done.wait [#allocation16], 528  }
  0x66   :  { %6641 = vsyncadd [#allocation16], 4294966768 }
  0x67   :  { %6642 = dma.done.wait [#allocation19], 1024  }
  0x68   :  { %6643 = vsyncadd [#allocation19], 4294966272  ;;  %vm183_vm0 = vcmask 130048   ;;  %v286_v0 = vld [vmem:[#allocation9 + $0x8] sm:$0xff]  ;;  %v285_v1 = vld [vmem:[#allocation9] sm:$0xff]  ;;  %s7846_s29 = sld [smem:[#allocation27_spill]] }
  0x69   :  { %5563 = vmatprep.subr.mxu1 %v286_v0  ;;  %v5190_v6 = vld [vmem:[%s7824_s6] ss:$0 sm:$0xff]  ;;  %s6658_s24 = smov 32   ;;  %v175_v17 = vld [vmem:[#allocation6 + $0x8] sm:$0xff]  ;;  %v6833_v25 = vld [vmem:[#allocation11 + $0x18] sm:$0xff]  ;;  %v6659_v26 = vmov 0.0  }
  0x6a   :  { %5564 = vmatpush3.msra.mxu1 %v286_v0  ;;  %v174_v18 = vld [vmem:[#allocation6] sm:$0xff]  ;;  %5553 = vmatprep.subr.mxu0 %v175_v17  ;;  %v6836_v27 = vld [vmem:[#allocation11 + $0x10] sm:$0xff]  ;;  %vm6660_vm1 = vmmov 0   ;;  %v6843_v28 = vld [vmem:[#allocation11 + $0x8] sm:$0xff]  ;;  %s6661_s6 = smov 64   ;;  %vm442_vm2 = vcmask 261120  }
  0x6b   :  { %5565 = vmatprep.subr.mxu1 %v285_v1  ;;  %5554 = vmatpush3.msra.mxu0 %v175_v17  ;;  %v6849_v29 = vld [vmem:[#allocation11] sm:$0xff]  ;;  %s7847_s26 = sld [smem:[#allocation30_spill]]  ;;  %vm433_vm3 = vcmask 257024   ;;  %s6662_s1 = smov 96   ;;  %vm439_vm4 = vcmask 519424   ;;  %vm1925_vm5 = vcmask 523264  }
  0x6c   :  { %5566 = vmatpush3.msra.mxu1 %v285_v1  ;;  %5555 = vmatprep.subr.mxu0 %v174_v18  ;;  %v6859_v32 = vld [vmem:[%s7823_s5] ss:$0 sm:$0xff]  ;;  %vm5145_vm6 = vcmask 1043456  }
  0x6d   :  { %5556 = vmatpush3.msra.mxu0 %v174_v18  ;;  %5584 = vmatprep.subr.mxu1 %v6659_v26 }
  0x6e   :  { %v170_v2 = vld [vmem:[%s7846_s29] sm:$0xff]  ;;  %v171_v3 = vld [vmem:[%s7846_s29 + $0x8] sm:$0xff]  ;;  %v172_v4 = vld [vmem:[%s7846_s29 + $0x10] sm:$0xff]  ;;  %5573 = vmatprep.subr.mxu0 %v6659_v26 }
  0x6f   :  { %5567 = vmatprep.mubr.msk.f32.mxu1 %vm183_vm0, %v170_v2  ;;  %5557 = vmatprep.mubr.msk.f32.mxu0 %vm183_vm0, %v170_v2  ;;  %v173_v5 = vld [vmem:[%s7846_s29 + $0x18] sm:$0xff] }
  0x70   :  { %5568 = vmatmul.mubr.msk.f32.vlgmr.msra.gmra.mxu1 %vm183_vm0, %v171_v3  ;;  %5558 = vmatmul.mubr.msk.f32.vlgmr.msra.gmra.mxu0 %vm183_vm0, %v171_v3 }
  0x71   :  { %5570 = vmatprep.mubr.msk.f32.mxu1 %vm183_vm0, %v172_v4  ;;  %5560 = vmatprep.mubr.msk.f32.mxu0 %vm183_vm0, %v172_v4  ;;  %v6889_v56 = vld [vmem:[%s7847_s26 + $0x18] sm:$0xff]  ;;  %v6896_v57 = vld [vmem:[%s7847_s26 + $0x10] sm:$0xff]  ;;  %v6901_v58 = vld [vmem:[%s7847_s26 + $0x8] sm:$0xff] }
  0x72   :  { %5585 = vmatpush3.msra.mxu1 %v6833_v25  ;;  %5574 = vmatpush3.msra.mxu0 %v6889_v56  ;;  %v6908_v59 = vld [vmem:[%s7847_s26] sm:$0xff] }
  0x73   :  { %5586 = vmatprep.subr.mxu1 %v6659_v26  ;;  %5575 = vmatprep.subr.mxu0 %v6659_v26 }
  0x74   :  { %5571 = vmatmul.mubr.msk.f32.gmra.mxu1 %vm183_vm0, %v173_v5  ;;  %5561 = vmatmul.mubr.msk.f32.gmra.mxu0 %vm183_vm0, %v173_v5 }
  0x75   :  { %5592 = vmatprep.mubr.msk.f32.mxu1 %vm6660_vm1, %v6659_v26  ;;  %5581 = vmatprep.mubr.msk.f32.mxu0 %vm6660_vm1, %v6659_v26 }
  0x76   :  { %5587 = vmatpush3.msra.mxu1 %v6836_v27  ;;  %5576 = vmatpush3.msra.mxu0 %v6896_v57 }
  0x77   :  { %5588 = vmatprep.subr.mxu1 %v6659_v26  ;;  %5577 = vmatprep.subr.mxu0 %v6659_v26 }
  0x78   :  { %5589 = vmatpush3.msra.mxu1 %v6843_v28  ;;  %5578 = vmatpush3.msra.mxu0 %v6901_v58 }
  0x79   :  { %5590 = vmatprep.subr.mxu1 %v6659_v26  ;;  %5579 = vmatprep.subr.mxu0 %v6659_v26 }
  0x7a   :  { %5591 = vmatpush3.msra.mxu1 %v6849_v29  ;;  %5580 = vmatpush3.msra.mxu0 %v6908_v59 }
  0x7b   :  { %5606 = vmatprep.subr.mxu1 %v6659_v26  ;;  %5595 = vmatprep.subr.mxu0 %v6659_v26 }
 0x130   :  { %v5569_v7 = vpop.f32.mrf.mxu1  ;;  %v5559_v31 = vpop.f32.mrf.mxu0 }
 0x131   :  { %v366_v8 = vadd.f32 %v5569_v7, %v5190_v6  ;;  %v268_v33 = vadd.f32 %v5559_v31, %v6859_v32 }
 0x132   :  { %v360_v9 = vpop.f32.mrf.mxu1  ;;  %v262_v34 = vpop.f32.mrf.mxu0 }
 0x133   :  { %380 = vst [vmem:[#allocation3 + $0x8] sm:$0xff] %v366_v8  ;;  %v361_v10 = vadd.f32 %v5190_v6, %v360_v9  ;;  %282 = vst [vmem:[#allocation2 + $0x8] sm:$0xff] %v268_v33  ;;  %v263_v35 = vadd.f32 %v6859_v32, %v262_v34 }
 0x134   :  { %v5572_v11 = vpop.f32.mrf.mxu1  ;;  %v5562_v5 = vpop.f32.mrf.mxu0 }
 0x135   :  { %379 = vst [vmem:[#allocation3] sm:$0xff] %v361_v10  ;;  %v376_v12 = vadd.f32 %v5572_v11, %v5190_v6  ;;  %281 = vst [vmem:[#allocation2] sm:$0xff] %v263_v35 }
 0x136   :  { %v370_v13 = vpop.f32.mrf.mxu1  ;;  %v272_v8 = vpop.f32.mrf.mxu0 }
 0x137   :  { %382 = vst [vmem:[#allocation3 + $0x18] sm:$0xff] %v376_v12  ;;  %v371_v14 = vadd.f32 %v5190_v6, %v370_v13  ;;  %v278_v6 = vadd.f32 %v5562_v5, %v6859_v32  ;;  %v273_v9 = vadd.f32 %v6859_v32, %v272_v8 }
 0x139   :  { %381 = vst [vmem:[#allocation3 + $0x10] sm:$0xff] %v371_v14  ;;  %284 = vst [vmem:[#allocation2 + $0x18] sm:$0xff] %v278_v6 }
 0x13a   :  { %283 = vst [vmem:[#allocation2 + $0x10] sm:$0xff] %v273_v9 }
 0x13c   :  { %v391_v38 = vld [vmem:[#allocation2] sm:$0xf]  ;;  %v441_v13 = vld [vmem:[#allocation2 + $0x4] sm:$0xf] }
 0x13d   :  { %v5195_v41 = vmul.f32 -1.442695, %v391_v38 }
 0x13e   :  { %v410_v15 = vld [vmem:[#allocation3 + $0x1c] sm:$0xf]  ;;  %v544_v44 = vld [vmem:[#allocation3 + $0x18] sm:$0xf] }
 0x13f   :  { %6122 = vtanh.f32 %v410_v15  ;;  %v5196_v19 = vmul.f32 -1.442695, %v410_v15 }
 0x141   :  { %6124 = vpow2.f32 %v5196_v19 }
 0x14c   :  { %v6123_v16 = vpop.eup %6122 }
 0x14d   :  { %419 = vrot.lane.b32.xlu0 %v6123_v16, %s6658_s24 }
 0x14e   :  { %v6125_v20 = vpop.eup %6124 }
 0x14f   :  { %v414_v21 = vadd.f32 1.0, %v6125_v20 }
 0x151   :  { %6126 = vrcp.f32 %v414_v21  ;;  %v756_v21 = vld [vmem:[#allocation3 + $0x14] sm:$0xf] }
 0x15e   :  { %v6127_v22 = vpop.eup %6126 }
 0x1bf   :  { %v420_v23 = vpop.permute.xlu0 %419 }
 0x1c0   :  { %v6830_v24 = vmul.f32 %v6127_v22, %v420_v23 }
 0x1c2   :  { %6128 = vtanh.f32 %v6830_v24 }
 0x1c3   :  { %6130 = vtanh.f32 %v391_v38 }
 0x1c4   :  { %6132 = vpow2.f32 %v5195_v41 }
 0x1cf   :  { %v6129_v30 = vpop.eup %6128 }
 0x1d0   :  { %425 = vrot.lane.b32.xlu0 %v6129_v30, %s6661_s6  ;;  %v6131_v39 = vpop.eup %6130 }
 0x1d1   :  { %v6133_v42 = vpop.eup %6132 }
 0x1d2   :  { %v395_v43 = vadd.f32 1.0, %v6133_v42 }
 0x1d4   :  { %400 = vrot.lane.b32.xlu0 %v6131_v39, %s6658_s24  ;;  %6134 = vrcp.f32 %v395_v43 }
 0x1e1   :  { %v6135_v47 = vpop.eup %6134 }
 0x242   :  { %v426_v36 = vpop.permute.xlu0 %425 }
 0x243   :  { %v6863_v37 = vmul.f32 %v6127_v22, %v426_v36 }
 0x245   :  { %545 = vrot.lane.b32.xlu1 %v6863_v37, %s6661_s6 }
 0x246   :  { %v401_v49 = vpop.permute.xlu0 %400 }
 0x247   :  { %v6879_v50 = vmul.f32 %v6135_v47, %v401_v49 }
 0x2b7   :  { %v546_v40 = vpop.permute.xlu1 %545 }
 0x2b8   :  { %5593 = vmatmul.mubr.msk.f32.vlgmr.msra.gmra.mxu1 %vm442_vm2, %v546_v40 }
 0x2b9   :  { %5607 = vmatpush3.msra.mxu1 %v6833_v25  ;;  %5614 = vmatprep.mubr.msk.f32.mxu1 %vm6660_vm1, %v6659_v26 }
 0x2ba   :  { %5608 = vmatprep.subr.mxu1 %v6659_v26 }
 0x2bb   :  { %5609 = vmatpush3.msra.mxu1 %v6836_v27 }
 0x2bc   :  { %5610 = vmatprep.subr.mxu1 %v6659_v26 }
 0x2bd   :  { %5611 = vmatpush3.msra.mxu1 %v6843_v28 }
 0x2be   :  { %5612 = vmatprep.subr.mxu1 %v6659_v26 }
 0x2bf   :  { %5613 = vmatpush3.msra.mxu1 %v6849_v29 }
 0x2c0   :  { %5628 = vmatprep.subr.mxu1 %v6659_v26 }
 0x378   :  { %v615_v45 = vpop.f32.mrf.mxu1 }
 0x379   :  { %v619_v46 = vadd.f32 %v615_v45, %v544_v44 }
 0x37a   :  { %v5594_v48 = vpop.f32.mrf.mxu1 }
 0x37b   :  { %6136 = vtanh.f32 %v619_v46  ;;  %v5200_v53 = vmul.f32 -1.442695, %v619_v46 }
 0x37c   :  { %6138 = vtanh.f32 %v6879_v50 }
 0x37d   :  { %6140 = vpow2.f32 %v5200_v53 }
 0x388   :  { %v6137_v51 = vpop.eup %6136 }
 0x389   :  { %633 = vrot.lane.b32.xlu1 %v6137_v51, %s6658_s24  ;;  %v6139_v52 = vpop.eup %6138 }
 0x38a   :  { %v6141_v54 = vpop.eup %6140 }
 0x38b   :  { %v623_v55 = vadd.f32 1.0, %v6141_v54 }
 0x38d   :  { %628 = vrot.lane.b32.xlu1 %v6830_v24, %s6658_s24  ;;  %6142 = vrcp.f32 %v623_v55 }
 0x391   :  { %406 = vrot.lane.b32.xlu1 %v6139_v52, %s6661_s6 }
 0x39a   :  { %v6143_v60 = vpop.eup %6142 }
 0x3fb   :  { %v634_v61 = vpop.permute.xlu1 %633 }
 0x3fc   :  { %v636_v62 = vmul.f32 %v6143_v60, %v634_v61  ;;  %v658_v61 = vld [vmem:[#allocation2 + $0x8] sm:$0xf] }
 0x3fe   :  { %638 = vrot.lane.b32.xlu0 %v636_v62, %s6658_s24 }
 0x3ff   :  { %v629_v63 = vpop.permute.xlu1 %628 }
 0x400   :  { %v631_v2 = vmul.f32 %v6143_v60, %v629_v63 }
 0x403   :  { %v407_v0 = vpop.permute.xlu1 %406 }
 0x404   :  { %v409_v1 = vmul.f32 %v6135_v47, %v407_v0 }
 0x406   :  { %430 = vrot.lane.b32.xlu1 %v409_v1, %s6661_s6 }
 0x470   :  { %v639_v3 = vpop.permute.xlu0 %638 }
 0x471   :  { %v6916_v4 = vadd.f32 %v639_v3, %v631_v2 }
 0x473   :  { %6144 = vtanh.f32 %v6916_v4 }
 0x478   :  { %v431_v7 = vpop.permute.xlu1 %430 }
 0x479   :  { %434 = vst.msk [vmem:[#allocation4] sm:$0xf] %vm433_vm3, %v431_v7  ;;  %5582 = vmatmul.mubr.msk.f32.vlgmr.msra.gmra.mxu0 %vm442_vm2, %v431_v7 }
 0x47a   :  { %5596 = vmatpush3.msra.mxu0 %v6889_v56  ;;  %5603 = vmatprep.mubr.msk.f32.mxu0 %vm6660_vm1, %v6659_v26 }
 0x47b   :  { %5597 = vmatprep.subr.mxu0 %v6659_v26 }
 0x47c   :  { %5598 = vmatpush3.msra.mxu0 %v6896_v57 }
 0x47d   :  { %5599 = vmatprep.subr.mxu0 %v6659_v26 }
 0x47e   :  { %5600 = vmatpush3.msra.mxu0 %v6901_v58 }
 0x47f   :  { %5601 = vmatprep.subr.mxu0 %v6659_v26 }
 0x480   :  { %v6145_v10 = vpop.eup %6144  ;;  %5602 = vmatpush3.msra.mxu0 %v6908_v59 }
 0x481   :  { %644 = vrot.lane.b32.xlu0 %v6145_v10, %s6658_s24  ;;  %5617 = vmatprep.subr.mxu0 %v6659_v26 }
 0x4f3   :  { %v645_v11 = vpop.permute.xlu0 %644 }
 0x4f4   :  { %v6934_v12 = vmul.f32 %v6143_v60, %v645_v11 }
 0x4f6   :  { %757 = vrot.lane.b32.xlu0 %v6934_v12, %s6661_s6 }
 0x539   :  { %v511_v14 = vpop.f32.mrf.mxu0 }
 0x53a   :  { %v515_v15 = vadd.f32 %v511_v14, %v441_v13 }
 0x53b   :  { %v5583_v16 = vpop.f32.mrf.mxu0 }
 0x53c   :  { %6146 = vtanh.f32 %v515_v15  ;;  %v5198_v19 = vmul.f32 -1.442695, %v515_v15 }
 0x53e   :  { %6148 = vpow2.f32 %v5198_v19 }
 0x549   :  { %v6147_v17 = vpop.eup %6146 }
 0x54a   :  { %529 = vrot.lane.b32.xlu1 %v6147_v17, %s6658_s24 }
 0x54b   :  { %v6149_v20 = vpop.eup %6148 }
 0x54c   :  { %v519_v23 = vadd.f32 1.0, %v6149_v20 }
 0x54e   :  { %524 = vrot.lane.b32.xlu1 %v6879_v50, %s6658_s24 }
 0x568   :  { %v758_v18 = vpop.permute.xlu0 %757 }
 0x569   :  { %5615 = vmatmul.mubr.msk.f32.vlgmr.msra.gmra.mxu1 %vm442_vm2, %v758_v18 }
 0x56a   :  { %5629 = vmatpush3.msra.mxu1 %v6833_v25  ;;  %5636 = vmatprep.mubr.msk.f32.mxu1 %vm6660_vm1, %v6659_v26 }
 0x56b   :  { %5630 = vmatprep.subr.mxu1 %v6659_v26 }
 0x56c   :  { %5631 = vmatpush3.msra.mxu1 %v6836_v27 }
 0x56d   :  { %5632 = vmatprep.subr.mxu1 %v6659_v26 }
 0x56e   :  { %5633 = vmatpush3.msra.mxu1 %v6843_v28 }
 0x56f   :  { %5634 = vmatprep.subr.mxu1 %v6659_v26 }
 0x570   :  { %5635 = vmatpush3.msra.mxu1 %v6849_v29 }
 0x571   :  { %5650 = vmatprep.subr.mxu1 %v6659_v26 }
 0x5bc   :  { %v530_v32 = vpop.permute.xlu1 %529 }
 0x5c0   :  { %v525_v40 = vpop.permute.xlu1 %524 }
 0x629   :  { %v827_v22 = vpop.f32.mrf.mxu1 }
 0x62a   :  { %v831_v24 = vadd.f32 %v827_v22, %v756_v21 }
 0x62b   :  { %v5616_v30 = vpop.f32.mrf.mxu1 }
 0x62c   :  { %6150 = vtanh.f32 %v831_v24  ;;  %v5204_v35 = vmul.f32 -1.442695, %v831_v24 }
 0x62d   :  { %6152 = vrcp.f32 %v519_v23 }
 0x62e   :  { %6154 = vpow2.f32 %v5204_v35 }
 0x639   :  { %v6151_v31 = vpop.eup %6150 }
 0x63a   :  { %841 = vrot.lane.b32.xlu0 %v6151_v31, %s6658_s24  ;;  %v6153_v33 = vpop.eup %6152 }
 0x63b   :  { %v532_v34 = vmul.f32 %v6153_v33, %v530_v32  ;;  %v6155_v36 = vpop.eup %6154  ;;  %v527_v43 = vmul.f32 %v6153_v33, %v525_v40  ;;  %v866_v40 = vld [vmem:[#allocation2 + $0xc] sm:$0xf] }
 0x63c   :  { %v835_v38 = vadd.f32 1.0, %v6155_v36 }
 0x63e   :  { %534 = vrot.lane.b32.xlu0 %v532_v34, %s6658_s24  ;;  %6156 = vrcp.f32 %v835_v38 }
 0x64b   :  { %v6157_v39 = vpop.eup %6156 }
 0x64c   :  { %v839_v47 = vmul.f32 %v6157_v39, %v6916_v4  ;;  %v964_v4 = vld [vmem:[#allocation3 + $0x10] sm:$0xf] }
 0x6ac   :  { %v842_v41 = vpop.permute.xlu0 %841 }
 0x6ad   :  { %v844_v42 = vmul.f32 %v6157_v39, %v842_v41 }
 0x6af   :  { %846 = vrot.lane.b32.xlu1 %v844_v42, %s6658_s24 }
 0x6b0   :  { %v535_v44 = vpop.permute.xlu0 %534 }
 0x6b1   :  { %v6955_v45 = vadd.f32 %v535_v44, %v527_v43 }
 0x6b3   :  { %6158 = vtanh.f32 %v6955_v45 }
 0x6c0   :  { %v6159_v46 = vpop.eup %6158 }
 0x6c1   :  { %540 = vrot.lane.b32.xlu0 %v6159_v46, %s6658_s24 }
 0x721   :  { %v847_v48 = vpop.permute.xlu1 %846 }
 0x722   :  { %v6960_v49 = vadd.f32 %v847_v48, %v839_v47  ;;  %v1172_v47 = vld [vmem:[#allocation3 + $0xc] sm:$0xf] }
 0x724   :  { %6160 = vtanh.f32 %v6960_v49 }
 0x731   :  { %v6161_v50 = vpop.eup %6160 }
 0x732   :  { %852 = vrot.lane.b32.xlu1 %v6161_v50, %s6658_s24 }
 0x733   :  { %v541_v51 = vpop.permute.xlu0 %540 }
 0x734   :  { %v543_v52 = vmul.f32 %v6153_v33, %v541_v51 }
 0x736   :  { %649 = vrot.lane.b32.xlu0 %v543_v52, %s6661_s6 }
 0x7a4   :  { %v853_v53 = vpop.permute.xlu1 %852 }
 0x7a5   :  { %v6965_v54 = vmul.f32 %v6157_v39, %v853_v53 }
 0x7a7   :  { %965 = vrot.lane.b32.xlu1 %v6965_v54, %s6661_s6 }
 0x7a8   :  { %v650_v55 = vpop.permute.xlu0 %649 }
 0x7a9   :  { %652 = vst.msk [vmem:[#allocation4 + $0x4] sm:$0xf] %vm433_vm3, %v650_v55  ;;  %5604 = vmatmul.mubr.msk.f32.vlgmr.msra.gmra.mxu0 %vm442_vm2, %v650_v55 }
 0x7aa   :  { %5618 = vmatpush3.msra.mxu0 %v6889_v56  ;;  %5625 = vmatprep.mubr.msk.f32.mxu0 %vm6660_vm1, %v6659_v26 }
 0x7ab   :  { %5619 = vmatprep.subr.mxu0 %v6659_v26 }
 0x7ac   :  { %5620 = vmatpush3.msra.mxu0 %v6896_v57 }
 0x7ad   :  { %5621 = vmatprep.subr.mxu0 %v6659_v26 }
 0x7ae   :  { %5622 = vmatpush3.msra.mxu0 %v6901_v58 }
 0x7af   :  { %5623 = vmatprep.subr.mxu0 %v6659_v26 }
 0x7b0   :  { %5624 = vmatpush3.msra.mxu0 %v6908_v59 }
 0x7b1   :  { %5639 = vmatprep.subr.mxu0 %v6659_v26 }
 0x819   :  { %v966_v60 = vpop.permute.xlu1 %965 }
 0x81a   :  { %5637 = vmatmul.mubr.msk.f32.vlgmr.msra.gmra.mxu1 %vm442_vm2, %v966_v60 }
 0x81b   :  { %5651 = vmatpush3.msra.mxu1 %v6833_v25  ;;  %5658 = vmatprep.mubr.msk.f32.mxu1 %vm6660_vm1, %v6659_v26 }
 0x81c   :  { %5652 = vmatprep.subr.mxu1 %v6659_v26 }
 0x81d   :  { %5653 = vmatpush3.msra.mxu1 %v6836_v27 }
 0x81e   :  { %5654 = vmatprep.subr.mxu1 %v6659_v26 }
 0x81f   :  { %5655 = vmatpush3.msra.mxu1 %v6843_v28 }
 0x820   :  { %5656 = vmatprep.subr.mxu1 %v6659_v26 }
 0x821   :  { %5657 = vmatpush3.msra.mxu1 %v6849_v29 }
 0x822   :  { %5672 = vmatprep.subr.mxu1 %v6659_v26 }
 0x869   :  { %v727_v62 = vpop.f32.mrf.mxu0 }
 0x86a   :  { %v731_v63 = vadd.f32 %v727_v62, %v658_v61 }
 0x86b   :  { %v5605_v0 = vpop.f32.mrf.mxu0 }
 0x86c   :  { %6162 = vtanh.f32 %v731_v63  ;;  %v5202_v2 = vmul.f32 -1.442695, %v731_v63 }
 0x86e   :  { %6164 = vpow2.f32 %v5202_v2 }
 0x879   :  { %v6163_v1 = vpop.eup %6162 }
 0x87a   :  { %741 = vrot.lane.b32.xlu0 %v6163_v1, %s6658_s24 }
 0x87b   :  { %v6165_v3 = vpop.eup %6164 }
 0x87c   :  { %v735_v6 = vadd.f32 1.0, %v6165_v3 }
 0x8da   :  { %v1035_v5 = vpop.f32.mrf.mxu1 }
 0x8db   :  { %v1039_v7 = vadd.f32 %v1035_v5, %v964_v4 }
 0x8dc   :  { %v5638_v8 = vpop.f32.mrf.mxu1 }
 0x8dd   :  { %6166 = vtanh.f32 %v1039_v7  ;;  %v5208_v14 = vmul.f32 -1.442695, %v1039_v7 }
 0x8de   :  { %6168 = vrcp.f32 %v735_v6 }
 0x8df   :  { %6170 = vpow2.f32 %v5208_v14 }
 0x8ea   :  { %v6167_v9 = vpop.eup %6166 }
 0x8eb   :  { %1049 = vrot.lane.b32.xlu1 %v6167_v9, %s6658_s24  ;;  %v6169_v10 = vpop.eup %6168 }
 0x8ec   :  { %v742_v11 = vpop.permute.xlu0 %741  ;;  %v6171_v15 = vpop.eup %6170  ;;  %v739_v20 = vmul.f32 %v6169_v10, %v6955_v45 }
 0x8ed   :  { %v744_v13 = vmul.f32 %v6169_v10, %v742_v11  ;;  %v1043_v16 = vadd.f32 1.0, %v6171_v15 }
 0x8ef   :  { %746 = vrot.lane.b32.xlu0 %v744_v13, %s6658_s24  ;;  %6172 = vrcp.f32 %v1043_v16 }
 0x8fc   :  { %v6173_v17 = vpop.eup %6172 }
 0x8fd   :  { %v1047_v24 = vmul.f32 %v6173_v17, %v6960_v49 }
 0x95d   :  { %v1050_v18 = vpop.permute.xlu1 %1049 }
 0x95e   :  { %v1052_v19 = vmul.f32 %v6173_v17, %v1050_v18  ;;  %v1074_v18 = vld [vmem:[#allocation2 + $0x10] sm:$0xf] }
 0x960   :  { %1054 = vrot.lane.b32.xlu1 %v1052_v19, %s6658_s24 }
 0x961   :  { %v747_v21 = vpop.permute.xlu0 %746 }
 0x962   :  { %v6997_v22 = vadd.f32 %v747_v21, %v739_v20 }
 0x964   :  { %6174 = vtanh.f32 %v6997_v22 }
 0x971   :  { %v6175_v23 = vpop.eup %6174 }
 0x972   :  { %752 = vrot.lane.b32.xlu0 %v6175_v23, %s6658_s24 }
 0x9d2   :  { %v1055_v30 = vpop.permute.xlu1 %1054 }
 0x9d3   :  { %v7002_v31 = vadd.f32 %v1055_v30, %v1047_v24  ;;  %v1380_v30 = vld [vmem:[#allocation3 + $0x8] sm:$0xf] }
 0x9d5   :  { %6176 = vtanh.f32 %v7002_v31 }
 0x9e2   :  { %v6177_v32 = vpop.eup %6176 }
 0x9e3   :  { %1060 = vrot.lane.b32.xlu1 %v6177_v32, %s6658_s24 }
 0x9e4   :  { %v753_v33 = vpop.permute.xlu0 %752 }
 0x9e5   :  { %v755_v34 = vmul.f32 %v6169_v10, %v753_v33 }
 0x9e7   :  { %857 = vrot.lane.b32.xlu0 %v755_v34, %s6661_s6 }
 0xa55   :  { %v1061_v35 = vpop.permute.xlu1 %1060 }
 0xa56   :  { %v7007_v36 = vmul.f32 %v6173_v17, %v1061_v35 }
 0xa58   :  { %1173 = vrot.lane.b32.xlu1 %v7007_v36, %s6661_s6 }
 0xa59   :  { %v858_v38 = vpop.permute.xlu0 %857 }
 0xa5a   :  { %860 = vst.msk [vmem:[#allocation4 + $0x8] sm:$0xf] %vm433_vm3, %v858_v38  ;;  %5626 = vmatmul.mubr.msk.f32.vlgmr.msra.gmra.mxu0 %vm442_vm2, %v858_v38 }
 0xa5b   :  { %5640 = vmatpush3.msra.mxu0 %v6889_v56  ;;  %5647 = vmatprep.mubr.msk.f32.mxu0 %vm6660_vm1, %v6659_v26 }
 0xa5c   :  { %5641 = vmatprep.subr.mxu0 %v6659_v26 }
 0xa5d   :  { %5642 = vmatpush3.msra.mxu0 %v6896_v57 }
 0xa5e   :  { %5643 = vmatprep.subr.mxu0 %v6659_v26 }
 0xa5f   :  { %5644 = vmatpush3.msra.mxu0 %v6901_v58 }
 0xa60   :  { %5645 = vmatprep.subr.mxu0 %v6659_v26 }
 0xa61   :  { %5646 = vmatpush3.msra.mxu0 %v6908_v59 }
 0xa62   :  { %5661 = vmatprep.subr.mxu0 %v6659_v26 }
 0xaca   :  { %v1174_v39 = vpop.permute.xlu1 %1173 }
 0xacb   :  { %5659 = vmatmul.mubr.msk.f32.vlgmr.msra.gmra.mxu1 %vm442_vm2, %v1174_v39 }
 0xacc   :  { %5673 = vmatpush3.msra.mxu1 %v6833_v25  ;;  %5680 = vmatprep.mubr.msk.f32.mxu1 %vm6660_vm1, %v6659_v26 }
 0xacd   :  { %5674 = vmatprep.subr.mxu1 %v6659_v26 }
 0xace   :  { %5675 = vmatpush3.msra.mxu1 %v6836_v27 }
 0xacf   :  { %5676 = vmatprep.subr.mxu1 %v6659_v26 }
 0xad0   :  { %5677 = vmatpush3.msra.mxu1 %v6843_v28 }
 0xad1   :  { %5678 = vmatprep.subr.mxu1 %v6659_v26 }
 0xad2   :  { %5679 = vmatpush3.msra.mxu1 %v6849_v29 }
 0xad3   :  { %5694 = vmatprep.subr.mxu1 %v6659_v26 }
 0xb1a   :  { %v935_v41 = vpop.f32.mrf.mxu0 }
 0xb1b   :  { %v939_v42 = vadd.f32 %v935_v41, %v866_v40 }
 0xb1c   :  { %v5627_v43 = vpop.f32.mrf.mxu0 }
 0xb1d   :  { %6178 = vtanh.f32 %v939_v42  ;;  %v5206_v45 = vmul.f32 -1.442695, %v939_v42 }
 0xb1f   :  { %6180 = vpow2.f32 %v5206_v45 }
 0xb2a   :  { %v6179_v44 = vpop.eup %6178 }
 0xb2b   :  { %949 = vrot.lane.b32.xlu0 %v6179_v44, %s6658_s24 }
 0xb2c   :  { %v6181_v46 = vpop.eup %6180 }
 0xb2d   :  { %v943_v49 = vadd.f32 1.0, %v6181_v46 }
 0xb8b   :  { %v1243_v48 = vpop.f32.mrf.mxu1 }
 0xb8c   :  { %v1247_v50 = vadd.f32 %v1243_v48, %v1172_v47 }
 0xb8d   :  { %v5660_v51 = vpop.f32.mrf.mxu1 }
 0xb8e   :  { %6182 = vtanh.f32 %v1247_v50  ;;  %v5212_v61 = vmul.f32 -1.442695, %v1247_v50 }
 0xb8f   :  { %6184 = vrcp.f32 %v943_v49 }
 0xb90   :  { %6186 = vpow2.f32 %v5212_v61 }
 0xb9b   :  { %v6183_v52 = vpop.eup %6182 }
 0xb9c   :  { %1257 = vrot.lane.b32.xlu1 %v6183_v52, %s6658_s24  ;;  %v6185_v53 = vpop.eup %6184 }
 0xb9d   :  { %v950_v55 = vpop.permute.xlu0 %949  ;;  %v6187_v62 = vpop.eup %6186  ;;  %v947_v3 = vmul.f32 %v6185_v53, %v6997_v22 }
 0xb9e   :  { %v952_v60 = vmul.f32 %v6185_v53, %v950_v55  ;;  %v1251_v63 = vadd.f32 1.0, %v6187_v62 }
 0xba0   :  { %954 = vrot.lane.b32.xlu0 %v952_v60, %s6658_s24  ;;  %6188 = vrcp.f32 %v1251_v63 }
 0xbad   :  { %v6189_v0 = vpop.eup %6188 }
 0xbae   :  { %v1255_v7 = vmul.f32 %v6189_v0, %v7002_v31 }
 0xc0e   :  { %v1258_v1 = vpop.permute.xlu1 %1257 }
 0xc0f   :  { %v1260_v2 = vmul.f32 %v6189_v0, %v1258_v1 }
 0xc11   :  { %1262 = vrot.lane.b32.xlu1 %v1260_v2, %s6658_s24  ;;  %v1282_v2 = vld [vmem:[#allocation2 + $0x14] sm:$0xf] }
 0xc12   :  { %v955_v4 = vpop.permute.xlu0 %954 }
 0xc13   :  { %v7039_v5 = vadd.f32 %v955_v4, %v947_v3 }
 0xc15   :  { %6190 = vtanh.f32 %v7039_v5 }
 0xc22   :  { %v6191_v6 = vpop.eup %6190 }
 0xc23   :  { %960 = vrot.lane.b32.xlu0 %v6191_v6, %s6658_s24 }
 0xc83   :  { %v1263_v8 = vpop.permute.xlu1 %1262 }
 0xc84   :  { %v7044_v9 = vadd.f32 %v1263_v8, %v1255_v7 }
 0xc86   :  { %6192 = vtanh.f32 %v7044_v9 }
 0xc93   :  { %v6193_v10 = vpop.eup %6192 }
 0xc94   :  { %1268 = vrot.lane.b32.xlu1 %v6193_v10, %s6658_s24 }
 0xc95   :  { %v961_v11 = vpop.permute.xlu0 %960 }
 0xc96   :  { %v963_v13 = vmul.f32 %v6185_v53, %v961_v11 }
 0xc98   :  { %1065 = vrot.lane.b32.xlu0 %v963_v13, %s6661_s6 }
 0xd06   :  { %v1269_v14 = vpop.permute.xlu1 %1268 }
 0xd07   :  { %v7049_v15 = vmul.f32 %v6189_v0, %v1269_v14 }
 0xd09   :  { %1381 = vrot.lane.b32.xlu1 %v7049_v15, %s6661_s6 }
 0xd0a   :  { %v1066_v16 = vpop.permute.xlu0 %1065 }
 0xd0b   :  { %1068 = vst.msk [vmem:[#allocation4 + $0xc] sm:$0xf] %vm433_vm3, %v1066_v16  ;;  %5648 = vmatmul.mubr.msk.f32.vlgmr.msra.gmra.mxu0 %vm442_vm2, %v1066_v16 }
 0xd0c   :  { %5662 = vmatpush3.msra.mxu0 %v6889_v56  ;;  %5669 = vmatprep.mubr.msk.f32.mxu0 %vm6660_vm1, %v6659_v26 }
 0xd0d   :  { %5663 = vmatprep.subr.mxu0 %v6659_v26 }
 0xd0e   :  { %5664 = vmatpush3.msra.mxu0 %v6896_v57 }
 0xd0f   :  { %5665 = vmatprep.subr.mxu0 %v6659_v26 }
 0xd10   :  { %5666 = vmatpush3.msra.mxu0 %v6901_v58 }
 0xd11   :  { %5667 = vmatprep.subr.mxu0 %v6659_v26 }
 0xd12   :  { %5668 = vmatpush3.msra.mxu0 %v6908_v59 }
 0xd13   :  { %5683 = vmatprep.subr.mxu0 %v6659_v26 }
 0xd7b   :  { %v1382_v17 = vpop.permute.xlu1 %1381 }
 0xd7c   :  { %5681 = vmatmul.mubr.msk.f32.vlgmr.msra.gmra.mxu1 %vm442_vm2, %v1382_v17 }
 0xd7d   :  { %5695 = vmatpush3.msra.mxu1 %v6833_v25  ;;  %5702 = vmatprep.mubr.msk.f32.mxu1 %vm6660_vm1, %v6659_v26 }
 0xd7e   :  { %5696 = vmatprep.subr.mxu1 %v6659_v26 }
 0xd7f   :  { %5697 = vmatpush3.msra.mxu1 %v6836_v27 }
 0xd80   :  { %5698 = vmatprep.subr.mxu1 %v6659_v26 }
 0xd81   :  { %5699 = vmatpush3.msra.mxu1 %v6843_v28 }
 0xd82   :  { %5700 = vmatprep.subr.mxu1 %v6659_v26 }
 0xd83   :  { %5701 = vmatpush3.msra.mxu1 %v6849_v29 }
 0xd84   :  { %5716 = vmatprep.subr.mxu1 %v6659_v26 }
 0xdcb   :  { %v1143_v19 = vpop.f32.mrf.mxu0 }
 0xdcc   :  { %v1147_v20 = vadd.f32 %v1143_v19, %v1074_v18 }
 0xdcd   :  { %v5649_v21 = vpop.f32.mrf.mxu0 }
 0xdce   :  { %6194 = vtanh.f32 %v1147_v20  ;;  %v5210_v23 = vmul.f32 -1.442695, %v1147_v20 }
 0xdd0   :  { %6196 = vpow2.f32 %v5210_v23 }
 0xddb   :  { %v6195_v22 = vpop.eup %6194 }
 0xddc   :  { %1157 = vrot.lane.b32.xlu0 %v6195_v22, %s6658_s24 }
 0xddd   :  { %v6197_v24 = vpop.eup %6196 }
 0xdde   :  { %v1151_v32 = vadd.f32 1.0, %v6197_v24 }
 0xe3c   :  { %v1451_v31 = vpop.f32.mrf.mxu1 }
 0xe3d   :  { %v1455_v33 = vadd.f32 %v1451_v31, %v1380_v30 }
 0xe3e   :  { %v5682_v34 = vpop.f32.mrf.mxu1 }
 0xe3f   :  { %6198 = vtanh.f32 %v1455_v33  ;;  %v5216_v41 = vmul.f32 -1.442695, %v1455_v33 }
 0xe40   :  { %6200 = vrcp.f32 %v1151_v32 }
 0xe41   :  { %6202 = vpow2.f32 %v5216_v41 }
 0xe4c   :  { %v6199_v35 = vpop.eup %6198 }
 0xe4d   :  { %1465 = vrot.lane.b32.xlu1 %v6199_v35, %s6658_s24  ;;  %v6201_v38 = vpop.eup %6200 }
 0xe4e   :  { %v1158_v39 = vpop.permute.xlu0 %1157  ;;  %v6203_v42 = vpop.eup %6202  ;;  %v1155_v47 = vmul.f32 %v6201_v38, %v7039_v5 }
 0xe4f   :  { %v1160_v40 = vmul.f32 %v6201_v38, %v1158_v39  ;;  %v1459_v43 = vadd.f32 1.0, %v6203_v42 }
 0xe51   :  { %1162 = vrot.lane.b32.xlu0 %v1160_v40, %s6658_s24  ;;  %6204 = vrcp.f32 %v1459_v43  ;;  %v1490_v43 = vld [vmem:[#allocation2 + $0x18] sm:$0xf] }
 0xe5e   :  { %v6205_v44 = vpop.eup %6204 }
 0xe5f   :  { %v1463_v51 = vmul.f32 %v6205_v44, %v7044_v9 }
 0xebf   :  { %v1466_v45 = vpop.permute.xlu1 %1465 }
 0xec0   :  { %v1468_v46 = vmul.f32 %v6205_v44, %v1466_v45 }
 0xec2   :  { %1470 = vrot.lane.b32.xlu1 %v1468_v46, %s6658_s24 }
 0xec3   :  { %v1163_v48 = vpop.permute.xlu0 %1162 }
 0xec4   :  { %v7081_v49 = vadd.f32 %v1163_v48, %v1155_v47  ;;  %v1796_v48 = vld [vmem:[#allocation3] sm:$0xf] }
 0xec6   :  { %6206 = vtanh.f32 %v7081_v49 }
 0xed3   :  { %v6207_v50 = vpop.eup %6206 }
 0xed4   :  { %1168 = vrot.lane.b32.xlu0 %v6207_v50, %s6658_s24 }
 0xf34   :  { %v1471_v52 = vpop.permute.xlu1 %1470 }
 0xf35   :  { %v7086_v53 = vadd.f32 %v1471_v52, %v1463_v51 }
 0xf37   :  { %6208 = vtanh.f32 %v7086_v53 }
 0xf44   :  { %v6209_v55 = vpop.eup %6208 }
 0xf45   :  { %1476 = vrot.lane.b32.xlu1 %v6209_v55, %s6658_s24 }
 0xf46   :  { %v1169_v60 = vpop.permute.xlu0 %1168 }
 0xf47   :  { %v1171_v61 = vmul.f32 %v6201_v38, %v1169_v60 }
 0xf49   :  { %1273 = vrot.lane.b32.xlu0 %v1171_v61, %s6661_s6 }
 0xfb7   :  { %v1477_v62 = vpop.permute.xlu1 %1476 }
 0xfb8   :  { %v7091_v63 = vmul.f32 %v6205_v44, %v1477_v62 }
 0xfba   :  { %1589 = vrot.lane.b32.xlu1 %v7091_v63, %s6661_s6 }
 0xfbb   :  { %v7095_v0 = vpop.permute.xlu0 %1273 }
 0xfbc   :  { %5670 = vmatmul.mubr.msk.f32.vlgmr.msra.gmra.mxu0 %vm442_vm2, %v7095_v0 }
 0xfbd   :  { %5684 = vmatpush3.msra.mxu0 %v6889_v56  ;;  %5691 = vmatprep.mubr.msk.f32.mxu0 %vm6660_vm1, %v6659_v26 }
 0xfbe   :  { %5685 = vmatprep.subr.mxu0 %v6659_v26 }
 0xfbf   :  { %5686 = vmatpush3.msra.mxu0 %v6896_v57 }
 0xfc0   :  { %5687 = vmatprep.subr.mxu0 %v6659_v26 }
 0xfc1   :  { %5688 = vmatpush3.msra.mxu0 %v6901_v58 }
 0xfc2   :  { %5689 = vmatprep.subr.mxu0 %v6659_v26 }
 0xfc3   :  { %5690 = vmatpush3.msra.mxu0 %v6908_v59 }
 0xfc4   :  { %5705 = vmatprep.subr.mxu0 %v6659_v26 }
0x102c   :  { %v1590_v1 = vpop.permute.xlu1 %1589 }
0x102d   :  { %5703 = vmatmul.mubr.msk.f32.vlgmr.msra.gmra.mxu1 %vm442_vm2, %v1590_v1 }
0x102e   :  { %5717 = vmatpush3.msra.mxu1 %v6833_v25  ;;  %5724 = vmatprep.mubr.msk.f32.mxu1 %vm6660_vm1, %v6659_v26 }
0x102f   :  { %5718 = vmatprep.subr.mxu1 %v6659_v26 }
0x1030   :  { %5719 = vmatpush3.msra.mxu1 %v6836_v27  ;;  %v1588_v27 = vld [vmem:[#allocation3 + $0x4] sm:$0xf] }
0x1031   :  { %5720 = vmatprep.subr.mxu1 %v6659_v26 }
0x1032   :  { %5721 = vmatpush3.msra.mxu1 %v6843_v28 }
0x1033   :  { %5722 = vmatprep.subr.mxu1 %v6659_v26 }
0x1034   :  { %5723 = vmatpush3.msra.mxu1 %v6849_v29 }
0x107c   :  { %v1351_v3 = vpop.f32.mrf.mxu0 }
0x107d   :  { %v1355_v4 = vadd.f32 %v1351_v3, %v1282_v2 }
0x107e   :  { %v5671_v5 = vpop.f32.mrf.mxu0 }
0x107f   :  { %6210 = vtanh.f32 %v1355_v4  ;;  %v5214_v6 = vmul.f32 -1.442695, %v1355_v4 }
0x1081   :  { %6212 = vpow2.f32 %v5214_v6 }
0x108c   :  { %v6211_v25 = vpop.eup %6210 }
0x108d   :  { %1365 = vrot.lane.b32.xlu0 %v6211_v25, %s6658_s24 }
0x108e   :  { %v6213_v7 = vpop.eup %6212 }
0x108f   :  { %v1359_v9 = vadd.f32 1.0, %v6213_v7 }
0x10ed   :  { %v1659_v8 = vpop.f32.mrf.mxu1 }
0x10ee   :  { %v1663_v10 = vadd.f32 %v1659_v8, %v1588_v27 }
0x10ef   :  { %v5704_v28 = vpop.f32.mrf.mxu1 }
0x10f0   :  { %6214 = vtanh.f32 %v1663_v10  ;;  %v5220_v16 = vmul.f32 -1.442695, %v1663_v10  ;;  %v2034_v10 = vld [vmem:[%s7826_s8 + $0x38] sm:$0xff]  ;;  %v2033_v28 = vld [vmem:[%s7826_s8 + $0x30] sm:$0xff] }
0x10f1   :  { %6216 = vrcp.f32 %v1359_v9  ;;  %v1917_v9 = vld [vmem:[%s7825_s7 + $0x38] sm:$0xff]  ;;  %5749 = vmatprep.subr.mxu1 %v2034_v10 }
0x10f2   :  { %6218 = vpow2.f32 %v5220_v16  ;;  %v2031_v16 = vld [vmem:[%s7826_s8 + $0x20] sm:$0xff] }
0x10fd   :  { %v6215_v11 = vpop.eup %6214 }
0x10fe   :  { %1673 = vrot.lane.b32.xlu1 %v6215_v11, %s6658_s24  ;;  %v6217_v29 = vpop.eup %6216 }
0x10ff   :  { %v1366_v13 = vpop.permute.xlu0 %1365  ;;  %v6219_v17 = vpop.eup %6218  ;;  %v1363_v22 = vmul.f32 %v6217_v29, %v7081_v49 }
0x1100   :  { %v1368_v14 = vmul.f32 %v6217_v29, %v1366_v13  ;;  %v1667_v18 = vadd.f32 1.0, %v6219_v17  ;;  %v2030_v17 = vld [vmem:[%s7826_s8 + $0x18] sm:$0xff] }
0x1102   :  { %1370 = vrot.lane.b32.xlu0 %v1368_v14, %s6658_s24  ;;  %6220 = vrcp.f32 %v1667_v18  ;;  %v2032_v14 = vld [vmem:[%s7826_s8 + $0x28] sm:$0xff] }
0x1103   :  { %v2028_v18 = vld [vmem:[%s7826_s8 + $0x8] sm:$0xff] }
0x110f   :  { %v6221_v19 = vpop.eup %6220 }
0x1110   :  { %v1671_v31 = vmul.f32 %v6221_v19, %v7086_v53 }
0x1170   :  { %v1674_v20 = vpop.permute.xlu1 %1673 }
0x1171   :  { %v1676_v21 = vmul.f32 %v6221_v19, %v1674_v20 }
0x1173   :  { %1678 = vrot.lane.b32.xlu1 %v1676_v21, %s6658_s24 }
0x1174   :  { %v1371_v23 = vpop.permute.xlu0 %1370 }
0x1175   :  { %v1373_v24 = vadd.f32 %v1371_v23, %v1363_v22 }
0x1177   :  { %6222 = vtanh.f32 %v1373_v24 }
0x1184   :  { %v6223_v30 = vpop.eup %6222 }
0x1185   :  { %1376 = vrot.lane.b32.xlu0 %v6223_v30, %s6658_s24  ;;  %v1915_v30 = vld [vmem:[%s7825_s7 + $0x28] sm:$0xff] }
0x11e5   :  { %v1679_v32 = vpop.permute.xlu1 %1678 }
0x11e6   :  { %v1681_v33 = vadd.f32 %v1679_v32, %v1671_v31  ;;  %v1914_v32 = vld [vmem:[%s7825_s7 + $0x20] sm:$0xff] }
0x11e8   :  { %6224 = vtanh.f32 %v1681_v33 }
0x11f5   :  { %v6225_v34 = vpop.eup %6224 }
0x11f6   :  { %1684 = vrot.lane.b32.xlu1 %v6225_v34, %s6658_s24  ;;  %v1911_v34 = vld [vmem:[%s7825_s7 + $0x8] sm:$0xff] }
0x11f7   :  { %v1377_v35 = vpop.permute.xlu0 %1376 }
0x11f8   :  { %v1379_v38 = vmul.f32 %v6217_v29, %v1377_v35  ;;  %v1910_v35 = vld [vmem:[%s7825_s7] sm:$0xff] }
0x11fa   :  { %1481 = vrot.lane.b32.xlu0 %v1379_v38, %s6661_s6 }
0x1268   :  { %v1685_v39 = vpop.permute.xlu1 %1684 }
0x1269   :  { %v7128_v40 = vmul.f32 %v6221_v19, %v1685_v39  ;;  %v2027_v19 = vld [vmem:[%s7826_s8] sm:$0xff] }
0x126b   :  { %1797 = vrot.lane.b32.xlu1 %v7128_v40, %s6661_s6 }
0x126c   :  { %v7132_v41 = vpop.permute.xlu0 %1481 }
0x126d   :  { %5692 = vmatmul.mubr.msk.f32.vlgmr.msra.gmra.mxu0 %vm442_vm2, %v7132_v41 }
0x126e   :  { %5706 = vmatpush3.msra.mxu0 %v6889_v56  ;;  %5713 = vmatprep.mubr.msk.f32.mxu0 %vm6660_vm1, %v6659_v26 }
0x126f   :  { %5707 = vmatprep.subr.mxu0 %v6659_v26 }
0x1270   :  { %5708 = vmatpush3.msra.mxu0 %v6896_v57 }
0x1271   :  { %5709 = vmatprep.subr.mxu0 %v6659_v26 }
0x1272   :  { %5710 = vmatpush3.msra.mxu0 %v6901_v58 }
0x1273   :  { %5711 = vmatprep.subr.mxu0 %v6659_v26 }
0x1274   :  { %5712 = vmatpush3.msra.mxu0 %v6908_v59 }
0x1275   :  { %5727 = vmatprep.subr.mxu0 %v1917_v9 }
0x12dd   :  { %v1798_v42 = vpop.permute.xlu1 %1797 }
0x12de   :  { %5725 = vmatmul.mubr.msk.f32.vlgmr.msra.gmra.mxu1 %vm442_vm2, %v1798_v42 }
0x12df   :  { %5750 = vmatpush3.msra.mxu1 %v2034_v10 }
0x12e0   :  { %5751 = vmatprep.subr.mxu1 %v2033_v28 }
0x12e1   :  { %5752 = vmatpush3.msra.mxu1 %v2033_v28 }
0x12e2   :  { %5753 = vmatprep.subr.mxu1 %v2032_v14 }
0x12e3   :  { %5754 = vmatpush3.msra.mxu1 %v2032_v14  ;;  %v7255_v14 = vld [vmem:[#allocation12 + $0x10] sm:$0xff] }
0x12e4   :  { %5755 = vmatprep.subr.mxu1 %v2031_v16 }
0x12e5   :  { %5756 = vmatpush3.msra.mxu1 %v2031_v16 }
0x12e6   :  { %5757 = vmatprep.subr.mxu1 %v2030_v17 }
0x12e7   :  { %5758 = vmatpush3.msra.mxu1 %v2030_v17 }
0x132d   :  { %v1559_v56 = vpop.f32.mrf.mxu0 }
0x132e   :  { %v1563_v44 = vadd.f32 %v1559_v56, %v1490_v43  ;;  %v1698_v43 = vld [vmem:[#allocation2 + $0x1c] sm:$0xf] }
0x132f   :  { %v5693_v45 = vpop.f32.mrf.mxu0 }
0x1330   :  { %6226 = vtanh.f32 %v1563_v44  ;;  %v5218_v57 = vmul.f32 -1.442695, %v1563_v44 }
0x1332   :  { %6228 = vpow2.f32 %v5218_v57 }
0x133d   :  { %v6227_v46 = vpop.eup %6226 }
0x133e   :  { %1573 = vrot.lane.b32.xlu0 %v6227_v46, %s6658_s24 }
0x133f   :  { %v6229_v47 = vpop.eup %6228 }
0x1340   :  { %v1567_v49 = vadd.f32 1.0, %v6229_v47 }
0x139e   :  { %v1867_v58 = vpop.f32.mrf.mxu1 }
0x139f   :  { %v1871_v50 = vadd.f32 %v1867_v58, %v1796_v48  ;;  %v7229_v58 = vld [vmem:[%s7829_s11] ss:$0 sm:$0xff] }
0x13a0   :  { %v5726_v51 = vpop.f32.mrf.mxu1 }
0x13a1   :  { %6230 = vtanh.f32 %v1871_v50  ;;  %v5224_v60 = vmul.f32 -1.442695, %v1871_v50 }
0x13a2   :  { %6232 = vrcp.f32 %v1567_v49  ;;  %v7234_v49 = vld [vmem:[%s7830_s12] ss:$0 sm:$0xff] }
0x13a3   :  { %6234 = vpow2.f32 %v5224_v60 }
0x13ae   :  { %v6231_v59 = vpop.eup %6230 }
0x13af   :  { %1881 = vrot.lane.b32.xlu1 %v6231_v59, %s6658_s24  ;;  %v6233_v52 = vpop.eup %6232 }
0x13b0   :  { %v1574_v53 = vpop.permute.xlu0 %1573  ;;  %v6235_v61 = vpop.eup %6234  ;;  %v1571_v4 = vmul.f32 %v6233_v52, %v1373_v24  ;;  %v1916_v24 = vld [vmem:[%s7825_s7 + $0x30] sm:$0xff] }
0x13b1   :  { %v1576_v55 = vmul.f32 %v6233_v52, %v1574_v53  ;;  %v1875_v62 = vadd.f32 1.0, %v6235_v61 }
0x13b3   :  { %1578 = vrot.lane.b32.xlu0 %v1576_v55, %s6658_s24  ;;  %6236 = vrcp.f32 %v1875_v62 }
0x13c0   :  { %v6237_v1 = vpop.eup %6236 }
0x13c1   :  { %v1879_v7 = vmul.f32 %v6237_v1, %v1681_v33  ;;  %v1913_v33 = vld [vmem:[%s7825_s7 + $0x18] sm:$0xff] }
0x1421   :  { %v1882_v2 = vpop.permute.xlu1 %1881 }
0x1422   :  { %v1884_v3 = vmul.f32 %v6237_v1, %v1882_v2 }
0x1424   :  { %1886 = vrot.lane.b32.xlu1 %v1884_v3, %s6658_s24 }
0x1425   :  { %v1579_v5 = vpop.permute.xlu0 %1578 }
0x1426   :  { %v7150_v25 = vadd.f32 %v1579_v5, %v1571_v4 }
0x1428   :  { %6238 = vtanh.f32 %v7150_v25 }
0x1435   :  { %v6239_v6 = vpop.eup %6238 }
0x1436   :  { %1584 = vrot.lane.b32.xlu0 %v6239_v6, %s6658_s24 }
0x1496   :  { %v1887_v27 = vpop.permute.xlu1 %1886 }
0x1497   :  { %v1889_v8 = vadd.f32 %v1887_v27, %v1879_v7 }
0x1499   :  { %6240 = vtanh.f32 %v1889_v8 }
0x14a6   :  { %v6241_v11 = vpop.eup %6240 }
0x14a7   :  { %1892 = vrot.lane.b32.xlu1 %v6241_v11, %s6658_s24 }
0x14a8   :  { %v1585_v29 = vpop.permute.xlu0 %1584 }
0x14a9   :  { %v1587_v13 = vmul.f32 %v6233_v52, %v1585_v29 }
0x14ab   :  { %1694 = vrot.lane.b32.xlu1 %v7128_v40, %s6662_s1  ;;  %1689 = vrot.lane.b32.xlu0 %v1587_v13, %s6661_s6 }
0x14af   :  { %1278 = vrot.lane.b32.xlu1 %v7049_v15, %s6662_s1  ;;  %v2029_v15 = vld [vmem:[%s7826_s8 + $0x10] sm:$0xff] }
0x14b0   :  { %5759 = vmatprep.subr.mxu1 %v2029_v15 }
0x14b1   :  { %5760 = vmatpush3.msra.mxu1 %v2029_v15 }
0x14b2   :  { %5761 = vmatprep.subr.mxu1 %v2028_v18 }
0x14b3   :  { %5762 = vmatpush3.msra.mxu1 %v2028_v18 }
0x14b4   :  { %5763 = vmatprep.subr.mxu1 %v2027_v19 }
0x14b5   :  { %5764 = vmatpush3.msra.mxu1 %v2027_v19 }
0x14b6   :  { %5782 = vmatprep.subr.mxu1 %v6659_v26 }
0x1519   :  { %v1893_v20 = vpop.permute.xlu1 %1892 }
0x151a   :  { %v1895_v21 = vmul.f32 %v6237_v1, %v1893_v20 }
0x151c   :  { %1902 = vrot.lane.b32.xlu0 %v1895_v21, %s6662_s1 }
0x151d   :  { %v1695_v22 = vpop.permute.xlu1 %1694  ;;  %v7189_v23 = vpop.permute.xlu0 %1689 }
0x151e   :  { %1697 = vst.msk [vmem:[#allocation4 + $0x4] sm:$0xf] %vm439_vm4, %v1695_v22  ;;  %5714 = vmatmul.mubr.msk.f32.vlgmr.msra.gmra.mxu0 %vm442_vm2, %v7189_v23 }
0x151f   :  { %5728 = vmatpush3.msra.mxu0 %v1917_v9 }
0x1520   :  { %1486 = vrot.lane.b32.xlu0 %v7091_v63, %s6662_s1  ;;  %5729 = vmatprep.subr.mxu0 %v1916_v24  ;;  %v1912_v63 = vld [vmem:[%s7825_s7 + $0x10] sm:$0xff] }
0x1521   :  { %v1279_v31 = vpop.permute.xlu1 %1278  ;;  %5730 = vmatpush3.msra.mxu0 %v1916_v24 }
0x1522   :  { %1281 = vst.msk [vmem:[#allocation4 + $0xc] sm:$0xf] %vm439_vm4, %v1279_v31  ;;  %5731 = vmatprep.subr.mxu0 %v1915_v30 }
0x1523   :  { %5732 = vmatpush3.msra.mxu0 %v1915_v30 }
0x1524   :  { %5733 = vmatprep.subr.mxu0 %v1914_v32 }
0x1525   :  { %5734 = vmatpush3.msra.mxu0 %v1914_v32 }
0x1526   :  { %5735 = vmatprep.subr.mxu0 %v1913_v33 }
0x1527   :  { %5736 = vmatpush3.msra.mxu0 %v1913_v33 }
0x1528   :  { %5737 = vmatprep.subr.mxu0 %v1912_v63 }
0x1529   :  { %5738 = vmatpush3.msra.mxu0 %v1912_v63 }
0x152a   :  { %5739 = vmatprep.subr.mxu0 %v1911_v34 }
0x152b   :  { %5740 = vmatpush3.msra.mxu0 %v1911_v34 }
0x152c   :  { %5741 = vmatprep.subr.mxu0 %v1910_v35 }
0x152d   :  { %5742 = vmatpush3.msra.mxu0 %v1910_v35 }
0x152e   :  { %5771 = vmatprep.subr.mxu0 %v6659_v26 }
0x158e   :  { %v1903_v38 = vpop.permute.xlu0 %1902 }
0x158f   :  { %1905 = vst.msk [vmem:[#allocation4] sm:$0xf] %vm439_vm4, %v1903_v38 }
0x1592   :  { %v1487_v39 = vpop.permute.xlu0 %1486 }
0x1593   :  { %1489 = vst.msk [vmem:[#allocation4 + $0x8] sm:$0xf] %vm439_vm4, %v1487_v39 }
0x1596   :  { %v1906_v40 = vld [vmem:[#allocation4] sm:$0xff] }
0x1597   :  { %5743 = vmatprep.mubr.msk.f32.mxu0 %vm1925_vm5, %v1906_v40  ;;  %5765 = vmatprep.mubr.msk.f32.mxu1 %vm1925_vm5, %v1906_v40 }
0x159a   :  { %v1907_v42 = vld [vmem:[#allocation4 + $0x8] sm:$0xff] }
0x159b   :  { %5744 = vmatmul.mubr.msk.f32.vlgmr.msra.gmra.mxu0 %vm1925_vm5, %v1907_v42  ;;  %5766 = vmatmul.mubr.msk.f32.vlgmr.msra.gmra.mxu1 %vm1925_vm5, %v1907_v42 }
0x15de   :  { %v1767_v56 = vpop.f32.mrf.mxu0 }
0x15df   :  { %v1771_v44 = vadd.f32 %v1767_v56, %v1698_v43 }
0x15e0   :  { %v5715_v45 = vpop.f32.mrf.mxu0 }
0x15e1   :  { %6242 = vtanh.f32 %v1771_v44  ;;  %v5222_v57 = vmul.f32 -1.442695, %v1771_v44 }
0x15e3   :  { %6244 = vpow2.f32 %v5222_v57 }
0x15ee   :  { %v6243_v46 = vpop.eup %6242 }
0x15ef   :  { %1781 = vrot.lane.b32.xlu1 %v6243_v46, %s6658_s24 }
0x15f0   :  { %v6245_v47 = vpop.eup %6244 }
0x15f1   :  { %v1775_v48 = vadd.f32 1.0, %v6245_v47 }
0x15f3   :  { %6246 = vrcp.f32 %v1775_v48 }
0x1600   :  { %v6247_v62 = vpop.eup %6246 }
0x1601   :  { %v1779_v7 = vmul.f32 %v6247_v62, %v7150_v25  ;;  %v7253_v25 = vld [vmem:[#allocation12 + $0x18] sm:$0xff] }
0x1602   :  { %5772 = vmatpush3.msra.mxu0 %v7253_v25  ;;  %5783 = vmatpush3.msra.mxu1 %v7253_v25 }
0x1603   :  { %5773 = vmatprep.subr.mxu0 %v6659_v26  ;;  %5784 = vmatprep.subr.mxu1 %v6659_v26 }
0x1604   :  { %5774 = vmatpush3.msra.mxu0 %v7255_v14  ;;  %5785 = vmatpush3.msra.mxu1 %v7255_v14 }
0x1605   :  { %5775 = vmatprep.subr.mxu0 %v6659_v26  ;;  %5786 = vmatprep.subr.mxu1 %v6659_v26 }
0x165b   :  { %v5745_v50 = vpop.f32.mrf.mxu0  ;;  %v5767_v51 = vpop.f32.mrf.mxu1 }
0x165c   :  { %v2010_v59 = vadd.f32 %v5745_v50, %v7229_v58  ;;  %v2114_v52 = vadd.f32 %v5767_v51, %v7234_v49 }
0x165d   :  { %v2004_v53 = vpop.f32.mrf.mxu0  ;;  %v2108_v55 = vpop.f32.mrf.mxu1 }
0x165e   :  { %2024 = vst [vmem:[#allocation2 + $0x8] sm:$0xff] %v2010_v59  ;;  %2128 = vst [vmem:[#allocation3 + $0x8] sm:$0xff] %v2114_v52  ;;  %v2005_v60 = vadd.f32 %v7229_v58, %v2004_v53  ;;  %v2109_v61 = vadd.f32 %v7234_v49, %v2108_v55 }
0x1660   :  { %2023 = vst [vmem:[#allocation2] sm:$0xff] %v2005_v60  ;;  %2127 = vst [vmem:[#allocation3] sm:$0xff] %v2109_v61 }
0x1661   :  { %v1782_v1 = vpop.permute.xlu1 %1781 }
0x1662   :  { %v1784_v2 = vmul.f32 %v6247_v62, %v1782_v1 }
0x1664   :  { %1786 = vrot.lane.b32.xlu0 %v1784_v2, %s6658_s24 }
0x1665   :  { %v2266_v53 = vld [vmem:[#allocation2 + $0x8] sm:$0xf] }
0x1667   :  { %v2135_v3 = vld [vmem:[#allocation2] sm:$0xf]  ;;  %v2159_v35 = vld [vmem:[#allocation2 + $0x4] sm:$0xf] }
0x1668   :  { %6248 = vtanh.f32 %v2135_v3  ;;  %v5235_v5 = vmul.f32 -1.442695, %v2135_v3 }
0x166a   :  { %6250 = vpow2.f32 %v5235_v5 }
0x1675   :  { %v6249_v4 = vpop.eup %6248 }
0x1676   :  { %2144 = vrot.lane.b32.xlu1 %v6249_v4, %s6658_s24 }
0x1677   :  { %v6251_v6 = vpop.eup %6250 }
0x1678   :  { %v2139_v9 = vadd.f32 1.0, %v6251_v6 }
0x16d6   :  { %v1787_v27 = vpop.permute.xlu0 %1786 }
0x16d7   :  { %v1789_v8 = vadd.f32 %v1787_v27, %v1779_v7 }
0x16d9   :  { %6252 = vtanh.f32 %v1789_v8 }
0x16da   :  { %6254 = vrcp.f32 %v2139_v9 }
0x16e6   :  { %v6253_v10 = vpop.eup %6252 }
0x16e7   :  { %1792 = vrot.lane.b32.xlu0 %v6253_v10, %s6658_s24  ;;  %v6255_v28 = vpop.eup %6254 }
0x16e8   :  { %v2145_v11 = vpop.permute.xlu1 %2144 }
0x16e9   :  { %v2147_v29 = vmul.f32 %v6255_v28, %v2145_v11 }
0x16eb   :  { %6256 = vtanh.f32 %v2147_v29  ;;  %862 = vrot.lane.b32.xlu0 %v6965_v54, %s6662_s1 }
0x16ef   :  { %436 = vrot.lane.b32.xlu0 %v6863_v37, %s6662_s1  ;;  %v7260_v37 = vld [vmem:[#allocation12 + $0x8] sm:$0xff] }
0x16f0   :  { %5776 = vmatpush3.msra.mxu0 %v7260_v37  ;;  %5787 = vmatpush3.msra.mxu1 %v7260_v37 }
0x16f1   :  { %5777 = vmatprep.subr.mxu0 %v6659_v26  ;;  %5788 = vmatprep.subr.mxu1 %v6659_v26 }
0x16f8   :  { %v6257_v13 = vpop.eup %6256 }
0x16f9   :  { %2150 = vrot.lane.b32.xlu1 %v6257_v13, %s6661_s6 }
0x16fd   :  { %1070 = vrot.lane.b32.xlu1 %v7007_v36, %s6662_s1 }
0x1701   :  { %654 = vrot.lane.b32.xlu1 %v6934_v12, %s6662_s1  ;;  %v7266_v12 = vld [vmem:[#allocation12] sm:$0xff] }
0x1702   :  { %5778 = vmatpush3.msra.mxu0 %v7266_v12  ;;  %5789 = vmatpush3.msra.mxu1 %v7266_v12 }
0x1703   :  { %5793 = vmatprep.subr.mxu0 %v6659_v26  ;;  %5804 = vmatprep.subr.mxu1 %v6659_v26 }
0x1759   :  { %v1793_v54 = vpop.permute.xlu0 %1792 }
0x175a   :  { %v1795_v16 = vmul.f32 %v6247_v62, %v1793_v54 }
0x175c   :  { %1897 = vrot.lane.b32.xlu0 %v1795_v16, %s6661_s6 }
0x175d   :  { %v863_v36 = vpop.permute.xlu0 %862 }
0x175e   :  { %865 = vst.msk [vmem:[#allocation4 + $0x14] sm:$0xf] %vm439_vm4, %v863_v36 }
0x175f   :  { %1484 = vst.msk [vmem:[#allocation4 + $0x14] sm:$0xf] %vm433_vm3, %v7132_v41 }
0x1761   :  { %v437_v17 = vpop.permute.xlu0 %436 }
0x1762   :  { %440 = vst.msk [vmem:[#allocation4 + $0x1c] sm:$0xf] %vm439_vm4, %v437_v17 }
0x176b   :  { %v2151_v15 = vpop.permute.xlu1 %2150 }
0x176c   :  { %v2153_v18 = vmul.f32 %v6255_v28, %v2151_v15 }
0x176e   :  { %2155 = vrot.lane.b32.xlu1 %v2153_v18, %s6661_s6 }
0x176f   :  { %v1071_v19 = vpop.permute.xlu1 %1070 }
0x1770   :  { %1073 = vst.msk [vmem:[#allocation4 + $0x10] sm:$0xf] %vm439_vm4, %v1071_v19 }
0x1771   :  { %1276 = vst.msk [vmem:[#allocation4 + $0x10] sm:$0xf] %vm433_vm3, %v7095_v0 }
0x1772   :  { %2241 = vrot.lane.b32.xlu1 %v2147_v29, %s6658_s24  ;;  %v2369_v29 = vld [vmem:[#allocation2 + $0xc] sm:$0xf] }
0x1773   :  { %v655_v41 = vpop.permute.xlu1 %654 }
0x1774   :  { %657 = vst.msk [vmem:[#allocation4 + $0x18] sm:$0xf] %vm439_vm4, %v655_v41 }
0x1775   :  { %1692 = vst.msk [vmem:[#allocation4 + $0x18] sm:$0xf] %vm433_vm3, %v7189_v23 }
0x1778   :  { %v1908_v20 = vld [vmem:[#allocation4 + $0x10] sm:$0xff] }
0x1779   :  { %5746 = vmatprep.mubr.msk.f32.mxu0 %vm1925_vm5, %v1908_v20  ;;  %5768 = vmatprep.mubr.msk.f32.mxu1 %vm1925_vm5, %v1908_v20 }
0x17ce   :  { %v1898_v21 = vpop.permute.xlu0 %1897 }
0x17cf   :  { %1900 = vst.msk [vmem:[#allocation4 + $0x1c] sm:$0xf] %vm433_vm3, %v1898_v21 }
0x17d6   :  { %v1909_v22 = vld [vmem:[#allocation4 + $0x18] sm:$0xff] }
0x17d7   :  { %5747 = vmatmul.mubr.msk.f32.gmra.mxu0 %vm1925_vm5, %v1909_v22  ;;  %5769 = vmatmul.mubr.msk.f32.gmra.mxu1 %vm1925_vm5, %v1909_v22 }
0x17d8   :  { %5779 = vmatprep.mubr.msk.f32.mxu0 %vm6660_vm1, %v6659_v26  ;;  %5790 = vmatprep.mubr.msk.f32.mxu1 %vm6660_vm1, %v6659_v26 }
0x17e0   :  { %v2156_v0 = vpop.permute.xlu1 %2155 }
0x17e1   :  { %2158 = vst.msk [vmem:[#allocation5] sm:$0xf] %vm433_vm3, %v2156_v0  ;;  %5780 = vmatmul.mubr.msk.f32.vlgmr.msra.gmra.mxu0 %vm442_vm2, %v2156_v0 }
0x17e2   :  { %5794 = vmatpush3.msra.mxu0 %v7253_v25  ;;  %5801 = vmatprep.mubr.msk.f32.mxu0 %vm6660_vm1, %v6659_v26 }
0x17e3   :  { %5795 = vmatprep.subr.mxu0 %v6659_v26 }
0x17e4   :  { %5796 = vmatpush3.msra.mxu0 %v7255_v14  ;;  %v2242_v47 = vpop.permute.xlu1 %2241 }
0x17e5   :  { %5797 = vmatprep.subr.mxu0 %v6659_v26 }
0x17e6   :  { %5798 = vmatpush3.msra.mxu0 %v7260_v37 }
0x17e7   :  { %5799 = vmatprep.subr.mxu0 %v6659_v26 }
0x17e8   :  { %5800 = vmatpush3.msra.mxu0 %v7266_v12 }
0x17e9   :  { %5815 = vmatprep.subr.mxu0 %v6659_v26 }
0x1897   :  { %v5748_v23 = vpop.f32.mrf.mxu0  ;;  %v5770_v24 = vpop.f32.mrf.mxu1 }
0x1898   :  { %v2020_v30 = vadd.f32 %v5748_v23, %v7229_v58  ;;  %v2124_v31 = vadd.f32 %v5770_v24, %v7234_v49 }
0x1899   :  { %v2014_v32 = vpop.f32.mrf.mxu0  ;;  %v2118_v33 = vpop.f32.mrf.mxu1 }
0x189a   :  { %2026 = vst [vmem:[#allocation2 + $0x18] sm:$0xff] %v2020_v30  ;;  %2130 = vst [vmem:[#allocation3 + $0x18] sm:$0xff] %v2124_v31  ;;  %v2015_v63 = vadd.f32 %v7229_v58, %v2014_v32  ;;  %v2119_v34 = vadd.f32 %v7234_v49, %v2118_v33 }
0x189c   :  { %2025 = vst [vmem:[#allocation2 + $0x10] sm:$0xff] %v2015_v63  ;;  %2129 = vst [vmem:[#allocation3 + $0x10] sm:$0xff] %v2119_v34 }
0x18a1   :  { %v2228_v38 = vpop.f32.mrf.mxu0 }
0x18a2   :  { %v2232_v39 = vadd.f32 %v2228_v38, %v2159_v35 }
0x18a3   :  { %v5781_v40 = vpop.f32.mrf.mxu0  ;;  %v2472_v32 = vld [vmem:[#allocation2 + $0x10] sm:$0xf] }
0x18a4   :  { %6258 = vtanh.f32 %v2232_v39  ;;  %v5237_v43 = vmul.f32 -1.442695, %v2232_v39 }
0x18a6   :  { %6260 = vpow2.f32 %v5237_v43 }
0x18b1   :  { %v6259_v42 = vpop.eup %6258 }
0x18b2   :  { %2246 = vrot.lane.b32.xlu0 %v6259_v42, %s6658_s24 }
0x18b3   :  { %v6261_v56 = vpop.eup %6260 }
0x18b4   :  { %v2236_v44 = vadd.f32 1.0, %v6261_v56 }
0x18b6   :  { %6262 = vrcp.f32 %v2236_v44 }
0x18c3   :  { %v6263_v45 = vpop.eup %6262 }
0x18c4   :  { %v2244_v48 = vmul.f32 %v6263_v45, %v2242_v47 }
0x1924   :  { %v2247_v46 = vpop.permute.xlu0 %2246 }
0x1925   :  { %v2249_v57 = vmul.f32 %v6263_v45, %v2247_v46 }
0x1927   :  { %2251 = vrot.lane.b32.xlu0 %v2249_v57, %s6658_s24 }
0x1999   :  { %v2252_v58 = vpop.permute.xlu0 %2251 }
0x199a   :  { %v2254_v49 = vadd.f32 %v2252_v58, %v2244_v48 }
0x199c   :  { %6264 = vtanh.f32 %v2254_v49 }
0x19a9   :  { %v6265_v50 = vpop.eup %6264 }
0x19aa   :  { %2257 = vrot.lane.b32.xlu1 %v6265_v50, %s6658_s24 }
0x1a1c   :  { %v2258_v51 = vpop.permute.xlu1 %2257 }
0x1a1d   :  { %v2260_v59 = vmul.f32 %v6263_v45, %v2258_v51 }
0x1a1f   :  { %2262 = vrot.lane.b32.xlu0 %v2260_v59, %s6661_s6 }
0x1a91   :  { %v2263_v52 = vpop.permute.xlu0 %2262 }
0x1a92   :  { %2265 = vst.msk [vmem:[#allocation5 + $0x4] sm:$0xf] %vm433_vm3, %v2263_v52  ;;  %5791 = vmatmul.mubr.msk.f32.vlgmr.msra.gmra.mxu1 %vm442_vm2, %v2263_v52 }
0x1a93   :  { %5805 = vmatpush3.msra.mxu1 %v7253_v25  ;;  %5812 = vmatprep.mubr.msk.f32.mxu1 %vm6660_vm1, %v6659_v26 }
0x1a94   :  { %5806 = vmatprep.subr.mxu1 %v6659_v26 }
0x1a95   :  { %5807 = vmatpush3.msra.mxu1 %v7255_v14 }
0x1a96   :  { %5808 = vmatprep.subr.mxu1 %v6659_v26 }
0x1a97   :  { %5809 = vmatpush3.msra.mxu1 %v7260_v37 }
0x1a98   :  { %5810 = vmatprep.subr.mxu1 %v6659_v26 }
0x1a99   :  { %5811 = vmatpush3.msra.mxu1 %v7266_v12 }
0x1a9a   :  { %5826 = vmatprep.subr.mxu1 %v6659_v26 }
0x1b52   :  { %v2335_v55 = vpop.f32.mrf.mxu1 }
0x1b53   :  { %v2339_v60 = vadd.f32 %v2335_v55, %v2266_v53 }
0x1b54   :  { %v5792_v61 = vpop.f32.mrf.mxu1 }
0x1b55   :  { %6266 = vtanh.f32 %v2339_v60  ;;  %v5239_v1 = vmul.f32 -1.442695, %v2339_v60 }
0x1b57   :  { %6268 = vpow2.f32 %v5239_v1  ;;  %v2891_v1 = vld [vmem:[%s7831_s13 + $0x18] sm:$0xff] }
0x1b62   :  { %v6267_v62 = vpop.eup %6266 }
0x1b63   :  { %2349 = vrot.lane.b32.xlu1 %v6267_v62, %s6658_s24 }
0x1b64   :  { %v6269_v2 = vpop.eup %6268 }
0x1b65   :  { %v2343_v3 = vadd.f32 1.0, %v6269_v2 }
0x1b67   :  { %6270 = vrcp.f32 %v2343_v3 }
0x1b74   :  { %v6271_v4 = vpop.eup %6270 }
0x1b75   :  { %v2347_v7 = vmul.f32 %v6271_v4, %v2254_v49  ;;  %v2575_v49 = vld [vmem:[#allocation2 + $0x14] sm:$0xf] }
0x1bd5   :  { %v2350_v5 = vpop.permute.xlu1 %2349 }
0x1bd6   :  { %v2352_v6 = vmul.f32 %v6271_v4, %v2350_v5 }
0x1bd8   :  { %2354 = vrot.lane.b32.xlu0 %v2352_v6, %s6658_s24  ;;  %v2890_v6 = vld [vmem:[%s7831_s13 + $0x10] sm:$0xff] }
0x1c4a   :  { %v2355_v27 = vpop.permute.xlu0 %2354 }
0x1c4b   :  { %v2357_v8 = vadd.f32 %v2355_v27, %v2347_v7  ;;  %v2884_v7 = vld [vmem:[#allocation5] sm:$0xff]  ;;  %v2889_v27 = vld [vmem:[%s7831_s13 + $0x8] sm:$0xff] }
0x1c4d   :  { %6272 = vtanh.f32 %v2357_v8 }
0x1c5a   :  { %v6273_v9 = vpop.eup %6272 }
0x1c5b   :  { %2360 = vrot.lane.b32.xlu1 %v6273_v9, %s6658_s24 }
0x1ccd   :  { %v2361_v10 = vpop.permute.xlu1 %2360 }
0x1cce   :  { %v2363_v28 = vmul.f32 %v6271_v4, %v2361_v10 }
0x1cd0   :  { %2365 = vrot.lane.b32.xlu0 %v2363_v28, %s6661_s6  ;;  %v2678_v28 = vld [vmem:[#allocation2 + $0x18] sm:$0xf] }
0x1d42   :  { %v2366_v11 = vpop.permute.xlu0 %2365 }
0x1d43   :  { %2368 = vst.msk [vmem:[#allocation5 + $0x8] sm:$0xf] %vm433_vm3, %v2366_v11  ;;  %5802 = vmatmul.mubr.msk.f32.vlgmr.msra.gmra.mxu0 %vm442_vm2, %v2366_v11 }
0x1d44   :  { %5816 = vmatpush3.msra.mxu0 %v7253_v25  ;;  %5823 = vmatprep.mubr.msk.f32.mxu0 %vm6660_vm1, %v6659_v26 }
0x1d45   :  { %5817 = vmatprep.subr.mxu0 %v6659_v26 }
0x1d46   :  { %5818 = vmatpush3.msra.mxu0 %v7255_v14 }
0x1d47   :  { %5819 = vmatprep.subr.mxu0 %v6659_v26 }
0x1d48   :  { %5820 = vmatpush3.msra.mxu0 %v7260_v37 }
0x1d49   :  { %5821 = vmatprep.subr.mxu0 %v6659_v26 }
0x1d4a   :  { %5822 = vmatpush3.msra.mxu0 %v7266_v12 }
0x1d4b   :  { %5837 = vmatprep.subr.mxu0 %v6659_v26 }
0x1e03   :  { %v2438_v13 = vpop.f32.mrf.mxu0 }
0x1e04   :  { %v2442_v54 = vadd.f32 %v2438_v13, %v2369_v29 }
0x1e05   :  { %v5803_v16 = vpop.f32.mrf.mxu0 }
0x1e06   :  { %6274 = vtanh.f32 %v2442_v54  ;;  %v5241_v17 = vmul.f32 -1.442695, %v2442_v54  ;;  %v7400_v54 = vld [vmem:[#allocation17] ss:$0 sm:$0xff] }
0x1e08   :  { %6276 = vpow2.f32 %v5241_v17 }
0x1e13   :  { %v6275_v36 = vpop.eup %6274 }
0x1e14   :  { %2452 = vrot.lane.b32.xlu1 %v6275_v36, %s6658_s24 }
0x1e15   :  { %v6277_v15 = vpop.eup %6276 }
0x1e16   :  { %v2446_v18 = vadd.f32 1.0, %v6277_v15 }
0x1e18   :  { %6278 = vrcp.f32 %v2446_v18 }
0x1e25   :  { %v6279_v19 = vpop.eup %6278 }
0x1e26   :  { %v2450_v21 = vmul.f32 %v6279_v19, %v2357_v8  ;;  %v2888_v8 = vld [vmem:[%s7831_s13] sm:$0xff] }
0x1e86   :  { %v2453_v41 = vpop.permute.xlu1 %2452 }
0x1e87   :  { %v2455_v20 = vmul.f32 %v6279_v19, %v2453_v41 }
0x1e89   :  { %2457 = vrot.lane.b32.xlu0 %v2455_v20, %s6658_s24 }
0x1efb   :  { %v2458_v22 = vpop.permute.xlu0 %2457 }
0x1efc   :  { %v2460_v0 = vadd.f32 %v2458_v22, %v2450_v21 }
0x1efe   :  { %6280 = vtanh.f32 %v2460_v0 }
0x1f0b   :  { %v6281_v23 = vpop.eup %6280 }
0x1f0c   :  { %2463 = vrot.lane.b32.xlu1 %v6281_v23, %s6658_s24 }
0x1f7e   :  { %v2464_v24 = vpop.permute.xlu1 %2463 }
0x1f7f   :  { %v2466_v30 = vmul.f32 %v6279_v19, %v2464_v24 }
0x1f81   :  { %2468 = vrot.lane.b32.xlu0 %v2466_v30, %s6661_s6 }
0x1ff3   :  { %v2469_v31 = vpop.permute.xlu0 %2468 }
0x1ff4   :  { %2471 = vst.msk [vmem:[#allocation5 + $0xc] sm:$0xf] %vm433_vm3, %v2469_v31  ;;  %5813 = vmatmul.mubr.msk.f32.vlgmr.msra.gmra.mxu1 %vm442_vm2, %v2469_v31 }
0x1ff5   :  { %5827 = vmatpush3.msra.mxu1 %v7253_v25  ;;  %5834 = vmatprep.mubr.msk.f32.mxu1 %vm6660_vm1, %v6659_v26 }
0x1ff6   :  { %5828 = vmatprep.subr.mxu1 %v6659_v26 }
0x1ff7   :  { %5829 = vmatpush3.msra.mxu1 %v7255_v14 }
0x1ff8   :  { %5830 = vmatprep.subr.mxu1 %v6659_v26 }
0x1ff9   :  { %5831 = vmatpush3.msra.mxu1 %v7260_v37 }
0x1ffa   :  { %5832 = vmatprep.subr.mxu1 %v6659_v26 }
0x1ffb   :  { %5833 = vmatpush3.msra.mxu1 %v7266_v12  ;;  %v2885_v9 = vld [vmem:[#allocation5 + $0x8] sm:$0xff] }
0x1ffc   :  { %5848 = vmatprep.subr.mxu1 %v2891_v1 }
0x20b4   :  { %v2541_v33 = vpop.f32.mrf.mxu1 }
0x20b5   :  { %v2545_v63 = vadd.f32 %v2541_v33, %v2472_v32 }
0x20b6   :  { %v5814_v34 = vpop.f32.mrf.mxu1 }
0x20b7   :  { %6282 = vtanh.f32 %v2545_v63  ;;  %v5243_v38 = vmul.f32 -1.442695, %v2545_v63  ;;  %v2781_v34 = vld [vmem:[#allocation2 + $0x1c] sm:$0xf] }
0x20b9   :  { %6284 = vpow2.f32 %v5243_v38 }
0x20c4   :  { %v6283_v35 = vpop.eup %6282 }
0x20c5   :  { %2555 = vrot.lane.b32.xlu1 %v6283_v35, %s6658_s24 }
0x20c6   :  { %v6285_v39 = vpop.eup %6284 }
0x20c7   :  { %v2549_v40 = vadd.f32 1.0, %v6285_v39 }
0x20c9   :  { %6286 = vrcp.f32 %v2549_v40  ;;  %v3012_v40 = vld [vmem:[#allocation3 + $0x1c] sm:$0xf] }
0x20d6   :  { %v6287_v42 = vpop.eup %6286 }
0x20d7   :  { %v2553_v44 = vmul.f32 %v6287_v42, %v2460_v0 }
0x2137   :  { %v2556_v43 = vpop.permute.xlu1 %2555 }
0x2138   :  { %v2558_v56 = vmul.f32 %v6287_v42, %v2556_v43 }
0x213a   :  { %2560 = vrot.lane.b32.xlu0 %v2558_v56, %s6658_s24 }
0x21ac   :  { %v2561_v45 = vpop.permute.xlu0 %2560 }
0x21ad   :  { %v2563_v46 = vadd.f32 %v2561_v45, %v2553_v44  ;;  %v5255_v44 = vmul.f32 -1.442695, %v3012_v40 }
0x21af   :  { %6288 = vtanh.f32 %v2563_v46 }
0x21bc   :  { %v6289_v57 = vpop.eup %6288 }
0x21bd   :  { %2566 = vrot.lane.b32.xlu1 %v6289_v57, %s6658_s24 }
0x222f   :  { %v2567_v47 = vpop.permute.xlu1 %2566 }
0x2230   :  { %v2569_v48 = vmul.f32 %v6287_v42, %v2567_v47 }
0x2232   :  { %2571 = vrot.lane.b32.xlu0 %v2569_v48, %s6661_s6 }
0x22a4   :  { %v2572_v58 = vpop.permute.xlu0 %2571 }
0x22a5   :  { %2574 = vst.msk [vmem:[#allocation5 + $0x10] sm:$0xf] %vm433_vm3, %v2572_v58  ;;  %5824 = vmatmul.mubr.msk.f32.vlgmr.msra.gmra.mxu0 %vm442_vm2, %v2572_v58 }
0x22a6   :  { %5838 = vmatpush3.msra.mxu0 %v7253_v25  ;;  %5845 = vmatprep.mubr.msk.f32.mxu0 %vm6660_vm1, %v6659_v26 }
0x22a7   :  { %5839 = vmatprep.subr.mxu0 %v6659_v26 }
0x22a8   :  { %5840 = vmatpush3.msra.mxu0 %v7255_v14 }
0x22a9   :  { %5841 = vmatprep.subr.mxu0 %v6659_v26 }
0x22aa   :  { %5842 = vmatpush3.msra.mxu0 %v7260_v37 }
0x22ab   :  { %5843 = vmatprep.subr.mxu0 %v6659_v26 }
0x22ac   :  { %5844 = vmatpush3.msra.mxu0 %v7266_v12 }
0x22ad   :  { %5862 = vmatprep.subr.mxu0 %v6659_v26 }
0x2365   :  { %v2644_v50 = vpop.f32.mrf.mxu0 }
0x2366   :  { %v2648_v25 = vadd.f32 %v2644_v50, %v2575_v49 }
0x2367   :  { %v5825_v51 = vpop.f32.mrf.mxu0 }
0x2368   :  { %6290 = vtanh.f32 %v2648_v25  ;;  %v5245_v52 = vmul.f32 -1.442695, %v2648_v25 }
0x236a   :  { %6292 = vpow2.f32 %v5245_v52  ;;  %v7423_v52 = vld [vmem:[%s7832_s14 + $0x10] sm:$0xff] }
0x2375   :  { %v6291_v59 = vpop.eup %6290 }
0x2376   :  { %2658 = vrot.lane.b32.xlu1 %v6291_v59, %s6658_s24  ;;  %v7418_v59 = vld [vmem:[%s7832_s14 + $0x18] sm:$0xff] }
0x2377   :  { %v6293_v14 = vpop.eup %6292 }
0x2378   :  { %v2652_v53 = vadd.f32 1.0, %v6293_v14 }
0x237a   :  { %6294 = vrcp.f32 %v2652_v53 }
0x2387   :  { %v6295_v37 = vpop.eup %6294 }
0x2388   :  { %v2656_v12 = vmul.f32 %v6295_v37, %v2563_v46 }
0x23e8   :  { %v2659_v55 = vpop.permute.xlu1 %2658 }
0x23e9   :  { %v2661_v60 = vmul.f32 %v6295_v37, %v2659_v55 }
0x23eb   :  { %2663 = vrot.lane.b32.xlu0 %v2661_v60, %s6658_s24  ;;  %v7433_v60 = vld [vmem:[%s7832_s14 + $0x8] sm:$0xff] }
0x245d   :  { %v2664_v61 = vpop.permute.xlu0 %2663 }
0x245e   :  { %v2666_v62 = vadd.f32 %v2664_v61, %v2656_v12  ;;  %v7440_v12 = vld [vmem:[%s7832_s14] sm:$0xff] }
0x2460   :  { %6296 = vtanh.f32 %v2666_v62 }
0x246d   :  { %v6297_v2 = vpop.eup %6296 }
0x246e   :  { %2669 = vrot.lane.b32.xlu1 %v6297_v2, %s6658_s24  ;;  %v7447_v2 = vld [vmem:[#allocation14 + $0x18] sm:$0xff] }
0x24e0   :  { %v2670_v3 = vpop.permute.xlu1 %2669 }
0x24e1   :  { %v2672_v4 = vmul.f32 %v6295_v37, %v2670_v3  ;;  %v7449_v3 = vld [vmem:[#allocation14 + $0x10] sm:$0xff] }
0x24e3   :  { %2674 = vrot.lane.b32.xlu0 %v2672_v4, %s6661_s6  ;;  %v7455_v4 = vld [vmem:[#allocation14 + $0x8] sm:$0xff] }
0x2555   :  { %v2675_v5 = vpop.permute.xlu0 %2674 }
0x2556   :  { %2677 = vst.msk [vmem:[#allocation5 + $0x14] sm:$0xf] %vm433_vm3, %v2675_v5  ;;  %5835 = vmatmul.mubr.msk.f32.vlgmr.msra.gmra.mxu1 %vm442_vm2, %v2675_v5  ;;  %v7457_v5 = vld [vmem:[#allocation14] sm:$0xff] }
0x2557   :  { %5849 = vmatpush3.msra.mxu1 %v2891_v1  ;;  %5856 = vmatprep.mubr.msk.f32.mxu1 %vm442_vm2, %v2884_v7 }
0x2558   :  { %5850 = vmatprep.subr.mxu1 %v2890_v6 }
0x2559   :  { %5851 = vmatpush3.msra.mxu1 %v2890_v6 }
0x255a   :  { %5852 = vmatprep.subr.mxu1 %v2889_v27 }
0x255b   :  { %5853 = vmatpush3.msra.mxu1 %v2889_v27 }
0x255c   :  { %5854 = vmatprep.subr.mxu1 %v2888_v8 }
0x255d   :  { %5855 = vmatpush3.msra.mxu1 %v2888_v8  ;;  %v2886_v10 = vld [vmem:[#allocation5 + $0x10] sm:$0xff] }
0x255e   :  { %5857 = vmatmul.mubr.msk.f32.vlgmr.msra.gmra.mxu1 %vm442_vm2, %v2885_v9  ;;  %5873 = vmatprep.subr.mxu1 %v6659_v26 }
0x255f   :  { %5859 = vmatprep.mubr.msk.f32.mxu1 %vm442_vm2, %v2886_v10  ;;  %5874 = vmatpush3.msra.mxu1 %v7447_v2 }
0x2560   :  { %5875 = vmatprep.subr.mxu1 %v6659_v26 }
0x2561   :  { %5876 = vmatpush3.msra.mxu1 %v7449_v3 }
0x2562   :  { %5877 = vmatprep.subr.mxu1 %v6659_v26 }
0x2563   :  { %5878 = vmatpush3.msra.mxu1 %v7455_v4 }
0x2564   :  { %5879 = vmatprep.subr.mxu1 %v6659_v26 }
0x2565   :  { %5880 = vmatpush3.msra.mxu1 %v7457_v5 }
0x2566   :  { %5895 = vmatprep.subr.mxu1 %v6659_v26 }
0x2616   :  { %v2747_v11 = vpop.f32.mrf.mxu1 }
0x2617   :  { %v2751_v29 = vadd.f32 %v2747_v11, %v2678_v28 }
0x2618   :  { %v5836_v13 = vpop.f32.mrf.mxu1 }
0x2619   :  { %6298 = vtanh.f32 %v2751_v29  ;;  %v5247_v19 = vmul.f32 -1.442695, %v2751_v29 }
0x261b   :  { %6300 = vpow2.f32 %v5247_v19 }
0x261e   :  { %v5858_v16 = vpop.f32.mrf.mxu1 }
0x261f   :  { %v2983_v36 = vadd.f32 %v5858_v16, %v7400_v54 }
0x2620   :  { %v2977_v17 = vpop.f32.mrf.mxu1 }
0x2621   :  { %2997 = vst [vmem:[#allocation2 + $0x8] sm:$0xff] %v2983_v36  ;;  %v2978_v15 = vadd.f32 %v7400_v54, %v2977_v17  ;;  %v3126_v36 = vld [vmem:[#allocation3 + $0x18] sm:$0xf] }
0x2623   :  { %2996 = vst [vmem:[#allocation2] sm:$0xff] %v2978_v15 }
0x2626   :  { %v6299_v18 = vpop.eup %6298 }
0x2627   :  { %2761 = vrot.lane.b32.xlu1 %v6299_v18, %s6658_s24 }
0x2628   :  { %v6301_v41 = vpop.eup %6300 }
0x2629   :  { %v2755_v20 = vadd.f32 1.0, %v6301_v41 }
0x262b   :  { %6302 = vrcp.f32 %v2755_v20 }
0x2638   :  { %v6303_v21 = vpop.eup %6302 }
0x2639   :  { %v2759_v23 = vmul.f32 %v6303_v21, %v2666_v62 }
0x2699   :  { %v2762_v22 = vpop.permute.xlu1 %2761 }
0x269a   :  { %v2764_v0 = vmul.f32 %v6303_v21, %v2762_v22 }
0x269c   :  { %2766 = vrot.lane.b32.xlu0 %v2764_v0, %s6658_s24 }
0x270e   :  { %v2767_v24 = vpop.permute.xlu0 %2766 }
0x270f   :  { %v2769_v30 = vadd.f32 %v2767_v24, %v2759_v23 }
0x2711   :  { %6304 = vtanh.f32 %v2769_v30 }
0x271e   :  { %v6305_v31 = vpop.eup %6304 }
0x271f   :  { %2772 = vrot.lane.b32.xlu1 %v6305_v31, %s6658_s24 }
0x2791   :  { %v2773_v32 = vpop.permute.xlu1 %2772 }
0x2792   :  { %v2775_v33 = vmul.f32 %v6303_v21, %v2773_v32 }
0x2794   :  { %2777 = vrot.lane.b32.xlu0 %v2775_v33, %s6661_s6 }
0x2806   :  { %v2778_v63 = vpop.permute.xlu0 %2777 }
0x2807   :  { %2780 = vst.msk [vmem:[#allocation5 + $0x18] sm:$0xf] %vm433_vm3, %v2778_v63  ;;  %5846 = vmatmul.mubr.msk.f32.vlgmr.msra.gmra.mxu0 %vm442_vm2, %v2778_v63 }
0x2808   :  { %5870 = vmatprep.mubr.msk.f32.mxu0 %vm6660_vm1, %v6659_v26  ;;  %5863 = vmatpush3.msra.mxu0 %v7418_v59 }
0x2809   :  { %5864 = vmatprep.subr.mxu0 %v6659_v26 }
0x280a   :  { %5865 = vmatpush3.msra.mxu0 %v7423_v52 }
0x280b   :  { %5866 = vmatprep.subr.mxu0 %v6659_v26 }
0x280c   :  { %5867 = vmatpush3.msra.mxu0 %v7433_v60 }
0x280d   :  { %5868 = vmatprep.subr.mxu0 %v6659_v26 }
0x280e   :  { %5869 = vmatpush3.msra.mxu0 %v7440_v12 }
0x280f   :  { %5884 = vmatprep.subr.mxu0 %v6659_v26 }
0x28c7   :  { %v2850_v35 = vpop.f32.mrf.mxu0 }
0x28c8   :  { %v2854_v38 = vadd.f32 %v2850_v35, %v2781_v34 }
0x28c9   :  { %v5847_v39 = vpop.f32.mrf.mxu0 }
0x28ca   :  { %6306 = vtanh.f32 %v2854_v38  ;;  %v5249_v56 = vmul.f32 -1.442695, %v2854_v38  ;;  %v7490_v39 = vld [vmem:[#allocation15 + $0x18] sm:$0xff] }
0x28cb   :  { %6308 = vtanh.f32 %v3012_v40 }
0x28cc   :  { %6310 = vpow2.f32 %v5249_v56 }
0x28cd   :  { %6312 = vpow2.f32 %v5255_v44  ;;  %v7498_v44 = vld [vmem:[#allocation15 + $0x10] sm:$0xff] }
0x28d7   :  { %v6307_v42 = vpop.eup %6306 }
0x28d8   :  { %2864 = vrot.lane.b32.xlu1 %v6307_v42, %s6658_s24  ;;  %v6309_v43 = vpop.eup %6308 }
0x28d9   :  { %v6311_v45 = vpop.eup %6310 }
0x28da   :  { %v2858_v46 = vadd.f32 1.0, %v6311_v45  ;;  %v6313_v57 = vpop.eup %6312  ;;  %v7502_v45 = vld [vmem:[#allocation15 + $0x8] sm:$0xff] }
0x28db   :  { %v3016_v47 = vadd.f32 1.0, %v6313_v57 }
0x28dc   :  { %3021 = vrot.lane.b32.xlu1 %v6309_v43, %s6658_s24  ;;  %6314 = vrcp.f32 %v2858_v46  ;;  %v7504_v46 = vld [vmem:[#allocation15] sm:$0xff] }
0x28dd   :  { %6316 = vrcp.f32 %v3016_v47 }
0x28e9   :  { %v6315_v48 = vpop.eup %6314 }
0x28ea   :  { %v6317_v50 = vpop.eup %6316  ;;  %v2862_v53 = vmul.f32 %v6315_v48, %v2769_v30 }
0x294a   :  { %v2865_v58 = vpop.permute.xlu1 %2864 }
0x294b   :  { %v2867_v49 = vmul.f32 %v6315_v48, %v2865_v58 }
0x294d   :  { %2869 = vrot.lane.b32.xlu0 %v2867_v49, %s6658_s24 }
0x294e   :  { %v3022_v25 = vpop.permute.xlu1 %3021 }
0x294f   :  { %v3024_v51 = vmul.f32 %v6317_v50, %v3022_v25 }
0x2951   :  { %6318 = vtanh.f32 %v3024_v51 }
0x295e   :  { %v6319_v14 = vpop.eup %6318 }
0x295f   :  { %3027 = vrot.lane.b32.xlu1 %v6319_v14, %s6661_s6 }
0x29bf   :  { %v2870_v37 = vpop.permute.xlu0 %2869 }
0x29c0   :  { %v2872_v55 = vadd.f32 %v2870_v37, %v2862_v53 }
0x29c2   :  { %6320 = vtanh.f32 %v2872_v55 }
0x29cf   :  { %v6321_v61 = vpop.eup %6320 }
0x29d0   :  { %2875 = vrot.lane.b32.xlu0 %v6321_v61, %s6658_s24 }
0x29d1   :  { %v3028_v62 = vpop.permute.xlu1 %3027 }
0x29d2   :  { %v3030_v1 = vmul.f32 %v6317_v50, %v3028_v62 }
0x29d4   :  { %3033 = vrot.lane.b32.xlu1 %v3030_v1, %s6661_s6  ;;  %v3407_v1 = vld [vmem:[#allocation3 + $0x14] sm:$0xf] }
0x29d8   :  { %3206 = vrot.lane.b32.xlu1 %v3024_v51, %s6658_s24 }
0x2a42   :  { %v2876_v6 = vpop.permute.xlu0 %2875 }
0x2a43   :  { %v2878_v7 = vmul.f32 %v6315_v48, %v2876_v6 }
0x2a45   :  { %2880 = vrot.lane.b32.xlu0 %v2878_v7, %s6661_s6 }
0x2a46   :  { %v3034_v27 = vpop.permute.xlu1 %3033 }
0x2a47   :  { %5871 = vmatmul.mubr.msk.f32.vlgmr.msra.gmra.mxu0 %vm442_vm2, %v3034_v27 }
0x2a48   :  { %5885 = vmatpush3.msra.mxu0 %v7418_v59  ;;  %5892 = vmatprep.mubr.msk.f32.mxu0 %vm6660_vm1, %v6659_v26 }
0x2a49   :  { %5886 = vmatprep.subr.mxu0 %v6659_v26 }
0x2a4a   :  { %5887 = vmatpush3.msra.mxu0 %v7423_v52  ;;  %v3207_v63 = vpop.permute.xlu1 %3206 }
0x2a4b   :  { %5888 = vmatprep.subr.mxu0 %v6659_v26 }
0x2a4c   :  { %5889 = vmatpush3.msra.mxu0 %v7433_v60 }
0x2a4d   :  { %5890 = vmatprep.subr.mxu0 %v6659_v26 }
0x2a4e   :  { %5891 = vmatpush3.msra.mxu0 %v7440_v12 }
0x2a4f   :  { %5906 = vmatprep.subr.mxu0 %v6659_v26 }
0x2ab7   :  { %v2881_v8 = vpop.permute.xlu0 %2880 }
0x2ab8   :  { %2883 = vst.msk [vmem:[#allocation5 + $0x1c] sm:$0xf] %vm433_vm3, %v2881_v8 }
0x2abf   :  { %v2887_v9 = vld [vmem:[#allocation5 + $0x18] sm:$0xff] }
0x2ac0   :  { %5860 = vmatmul.mubr.msk.f32.gmra.mxu1 %vm442_vm2, %v2887_v9 }
0x2ac1   :  { %5881 = vmatprep.mubr.msk.f32.mxu1 %vm6660_vm1, %v6659_v26 }
0x2ac4   :  { %5882 = vmatmul.mubr.msk.f32.vlgmr.msra.gmra.mxu1 %vm442_vm2, %v3034_v27 }
0x2ac5   :  { %5903 = vmatprep.mubr.msk.f32.mxu1 %vm6660_vm1, %v6659_v26  ;;  %5896 = vmatpush3.msra.mxu1 %v7490_v39 }
0x2ac6   :  { %5897 = vmatprep.subr.mxu1 %v6659_v26 }
0x2ac7   :  { %5898 = vmatpush3.msra.mxu1 %v7498_v44 }
0x2ac8   :  { %5899 = vmatprep.subr.mxu1 %v6659_v26 }
0x2ac9   :  { %5900 = vmatpush3.msra.mxu1 %v7502_v45 }
0x2aca   :  { %5901 = vmatprep.subr.mxu1 %v6659_v26 }
0x2acb   :  { %5902 = vmatpush3.msra.mxu1 %v7504_v46 }
0x2acc   :  { %5917 = vmatprep.subr.mxu1 %v6659_v26 }
0x2b07   :  { %v3103_v10 = vpop.f32.mrf.mxu0 }
0x2b09   :  { %v5872_v28 = vpop.f32.mrf.mxu0 }
0x2b80   :  { %v5861_v11 = vpop.f32.mrf.mxu1 }
0x2b81   :  { %v2993_v29 = vadd.f32 %v5861_v11, %v7400_v54 }
0x2b82   :  { %v2987_v13 = vpop.f32.mrf.mxu1 }
0x2b83   :  { %2999 = vst [vmem:[#allocation2 + $0x18] sm:$0xff] %v2993_v29  ;;  %v2988_v16 = vadd.f32 %v7400_v54, %v2987_v13 }
0x2b84   :  { %v3193_v17 = vpop.f32.mrf.mxu1 }
0x2b85   :  { %2998 = vst [vmem:[#allocation2 + $0x10] sm:$0xff] %v2988_v16  ;;  %v3197_v15 = vadd.f32 %v3193_v17, %v3126_v36 }
0x2b86   :  { %v5883_v18 = vpop.f32.mrf.mxu1 }
0x2b87   :  { %6322 = vtanh.f32 %v3197_v15  ;;  %v5259_v22 = vmul.f32 -1.442695, %v3197_v15 }
0x2b8a   :  { %v3031_v19 = vld [vmem:[#allocation2 + $0x1c] sm:$0xf]  ;;  %v3226_v53 = vld [vmem:[#allocation2 + $0x18] sm:$0xf] }
0x2b8b   :  { %v3107_v41 = vadd.f32 %v3103_v10, %v3031_v19 }
0x2b8d   :  { %6324 = vtanh.f32 %v3107_v41  ;;  %v5257_v0 = vmul.f32 -1.442695, %v3107_v41 }
0x2b8e   :  { %6326 = vpow2.f32 %v5259_v22 }
0x2b8f   :  { %6328 = vpow2.f32 %v5257_v0 }
0x2b94   :  { %v6323_v20 = vpop.eup %6322 }
0x2b95   :  { %3211 = vrot.lane.b32.xlu0 %v6323_v20, %s6658_s24 }
0x2b9a   :  { %v6325_v21 = vpop.eup %6324 }
0x2b9b   :  { %3116 = vrot.lane.b32.xlu1 %v6325_v21, %s6658_s24  ;;  %v6327_v54 = vpop.eup %6326 }
0x2b9c   :  { %v3201_v23 = vadd.f32 1.0, %v6327_v54  ;;  %v6329_v24 = vpop.eup %6328 }
0x2b9d   :  { %v3111_v30 = vadd.f32 1.0, %v6329_v24 }
0x2b9e   :  { %6330 = vrcp.f32 %v3201_v23 }
0x2b9f   :  { %6332 = vrcp.f32 %v3111_v30 }
0x2bab   :  { %v6331_v31 = vpop.eup %6330 }
0x2bac   :  { %v6333_v34 = vpop.eup %6332  ;;  %v3209_v42 = vmul.f32 %v6331_v31, %v3207_v63 }
0x2c07   :  { %v3212_v32 = vpop.permute.xlu0 %3211 }
0x2c08   :  { %v3214_v33 = vmul.f32 %v6331_v31, %v3212_v32 }
0x2c0a   :  { %3216 = vrot.lane.b32.xlu0 %v3214_v33, %s6658_s24 }
0x2c0d   :  { %v3117_v35 = vpop.permute.xlu1 %3116 }
0x2c0e   :  { %v7487_v38 = vmul.f32 %v6333_v34, %v3117_v35 }
0x2c10   :  { %6334 = vtanh.f32 %v7487_v38 }
0x2c1d   :  { %v6335_v40 = vpop.eup %6334 }
0x2c1e   :  { %3122 = vrot.lane.b32.xlu1 %v6335_v40, %s6661_s6 }
0x2c7c   :  { %v3217_v43 = vpop.permute.xlu0 %3216 }
0x2c7d   :  { %v7495_v56 = vadd.f32 %v3217_v43, %v3209_v42  ;;  %v3503_v42 = vld [vmem:[#allocation2 + $0x14] sm:$0xf] }
0x2c7f   :  { %6336 = vtanh.f32 %v7495_v56 }
0x2c8c   :  { %v6337_v57 = vpop.eup %6336 }
0x2c8d   :  { %3222 = vrot.lane.b32.xlu0 %v6337_v57, %s6658_s24 }
0x2c90   :  { %v3123_v47 = vpop.permute.xlu1 %3122 }
0x2c91   :  { %v3125_v48 = vmul.f32 %v6333_v34, %v3123_v47 }
0x2c93   :  { %3304 = vrot.lane.b32.xlu1 %v3125_v48, %s6661_s6 }
0x2cff   :  { %v3223_v58 = vpop.permute.xlu0 %3222 }
0x2d00   :  { %v3225_v49 = vmul.f32 %v6331_v31, %v3223_v58  ;;  %v3680_v58 = vld [vmem:[#allocation3 + $0x10] sm:$0xf] }
0x2d02   :  { %3228 = vrot.lane.b32.xlu0 %v3225_v49, %s6661_s6 }
0x2d05   :  { %v3305_v50 = vpop.permute.xlu1 %3304 }
0x2d06   :  { %5904 = vmatmul.mubr.msk.f32.vlgmr.msra.gmra.mxu1 %vm442_vm2, %v3305_v50 }
0x2d07   :  { %5918 = vmatpush3.msra.mxu1 %v7418_v59  ;;  %5925 = vmatprep.mubr.msk.f32.mxu1 %vm6660_vm1, %v6659_v26 }
0x2d08   :  { %5919 = vmatprep.subr.mxu1 %v6659_v26 }
0x2d09   :  { %5920 = vmatpush3.msra.mxu1 %v7423_v52 }
0x2d0a   :  { %5921 = vmatprep.subr.mxu1 %v6659_v26 }
0x2d0b   :  { %5922 = vmatpush3.msra.mxu1 %v7433_v60 }
0x2d0c   :  { %5923 = vmatprep.subr.mxu1 %v6659_v26 }
0x2d0d   :  { %5924 = vmatpush3.msra.mxu1 %v7440_v12 }
0x2d0e   :  { %5939 = vmatprep.subr.mxu1 %v6659_v26 }
0x2d74   :  { %v3229_v25 = vpop.permute.xlu0 %3228 }
0x2d75   :  { %5893 = vmatmul.mubr.msk.f32.vlgmr.msra.gmra.mxu0 %vm442_vm2, %v3229_v25 }
0x2d76   :  { %5907 = vmatpush3.msra.mxu0 %v7447_v2  ;;  %5914 = vmatprep.mubr.msk.f32.mxu0 %vm6660_vm1, %v6659_v26 }
0x2d77   :  { %5908 = vmatprep.subr.mxu0 %v6659_v26 }
0x2d78   :  { %5909 = vmatpush3.msra.mxu0 %v7449_v3 }
0x2d79   :  { %5910 = vmatprep.subr.mxu0 %v6659_v26 }
0x2d7a   :  { %5911 = vmatpush3.msra.mxu0 %v7455_v4 }
0x2d7b   :  { %5912 = vmatprep.subr.mxu0 %v6659_v26 }
0x2d7c   :  { %5913 = vmatpush3.msra.mxu0 %v7457_v5 }
0x2d7d   :  { %5915 = vmatmul.mubr.msk.f32.vlgmr.msra.gmra.mxu0 %vm442_vm2, %v3229_v25  ;;  %5928 = vmatprep.subr.mxu0 %v6659_v26 }
0x2d7e   :  { %5929 = vmatpush3.msra.mxu0 %v7490_v39  ;;  %5936 = vmatprep.mubr.msk.f32.mxu0 %vm6660_vm1, %v6659_v26 }
0x2d7f   :  { %5930 = vmatprep.subr.mxu0 %v6659_v26 }
0x2d80   :  { %5931 = vmatpush3.msra.mxu0 %v7498_v44 }
0x2d81   :  { %5932 = vmatprep.subr.mxu0 %v6659_v26 }
0x2d82   :  { %5933 = vmatpush3.msra.mxu0 %v7502_v45 }
0x2d83   :  { %5934 = vmatprep.subr.mxu0 %v6659_v26 }
0x2d84   :  { %5935 = vmatpush3.msra.mxu0 %v7504_v46 }
0x2d85   :  { %5950 = vmatprep.subr.mxu0 %v6659_v26 }
0x2dc6   :  { %v3374_v51 = vpop.f32.mrf.mxu1 }
0x2dc8   :  { %v5905_v14 = vpop.f32.mrf.mxu1 }
0x2e35   :  { %v3298_v37 = vpop.f32.mrf.mxu0 }
0x2e36   :  { %v3302_v55 = vadd.f32 %v3298_v37, %v3226_v53 }
0x2e37   :  { %v5894_v61 = vpop.f32.mrf.mxu0 }
0x2e38   :  { %v3378_v62 = vadd.f32 %v3374_v51, %v3302_v55 }
0x2e3a   :  { %6338 = vtanh.f32 %v3378_v62  ;;  %v5262_v28 = vmul.f32 -1.442695, %v3378_v62 }
0x2e3d   :  { %v3474_v6 = vpop.f32.mrf.mxu0 }
0x2e3e   :  { %v3478_v7 = vadd.f32 %v3474_v6, %v3407_v1 }
0x2e3f   :  { %v5916_v27 = vpop.f32.mrf.mxu0 }
0x2e40   :  { %6340 = vtanh.f32 %v3478_v7  ;;  %v5264_v10 = vmul.f32 -1.442695, %v3478_v7 }
0x2e42   :  { %6342 = vpow2.f32 %v5264_v10 }
0x2e43   :  { %6344 = vpow2.f32 %v5262_v28 }
0x2e47   :  { %v6339_v8 = vpop.eup %6338 }
0x2e48   :  { %3392 = vrot.lane.b32.xlu1 %v6339_v8, %s6658_s24 }
0x2e4c   :  { %3387 = vrot.lane.b32.xlu1 %v7487_v38, %s6658_s24 }
0x2e4d   :  { %v6341_v9 = vpop.eup %6340 }
0x2e4e   :  { %3488 = vrot.lane.b32.xlu0 %v6341_v9, %s6658_s24 }
0x2e4f   :  { %v6343_v11 = vpop.eup %6342 }
0x2e50   :  { %v3482_v29 = vadd.f32 1.0, %v6343_v11  ;;  %v6345_v13 = vpop.eup %6344 }
0x2e51   :  { %v3382_v16 = vadd.f32 1.0, %v6345_v13 }
0x2e52   :  { %6346 = vrcp.f32 %v3482_v29 }
0x2e53   :  { %6348 = vrcp.f32 %v3382_v16 }
0x2e5f   :  { %v6347_v36 = vpop.eup %6346 }
0x2e60   :  { %v6349_v19 = vpop.eup %6348  ;;  %v3486_v20 = vmul.f32 %v6347_v36, %v7495_v56 }
0x2eba   :  { %v3393_v18 = vpop.permute.xlu1 %3392 }
0x2ebb   :  { %v3395_v41 = vmul.f32 %v6349_v19, %v3393_v18 }
0x2ebe   :  { %v3388_v21 = vpop.permute.xlu1 %3387 }
0x2ebf   :  { %v3390_v54 = vmul.f32 %v6349_v19, %v3388_v21 }
0x2ec0   :  { %v3489_v17 = vpop.permute.xlu0 %3488 }
0x2ec1   :  { %v3491_v15 = vmul.f32 %v6347_v36, %v3489_v17 }
0x2ec3   :  { %3493 = vrot.lane.b32.xlu0 %v3491_v15, %s6658_s24 }
0x2ec7   :  { %3397 = vrot.lane.b32.xlu0 %v3395_v41, %s6658_s24 }
0x2f35   :  { %v3494_v22 = vpop.permute.xlu0 %3493 }
0x2f36   :  { %v7553_v0 = vadd.f32 %v3494_v22, %v3486_v20 }
0x2f38   :  { %6350 = vtanh.f32 %v7553_v0 }
0x2f39   :  { %v3398_v23 = vpop.permute.xlu0 %3397 }
0x2f3a   :  { %v7556_v24 = vadd.f32 %v3398_v23, %v3390_v54  ;;  %v3776_v23 = vld [vmem:[#allocation2 + $0x10] sm:$0xf] }
0x2f3c   :  { %6352 = vtanh.f32 %v7556_v24 }
0x2f45   :  { %v6351_v30 = vpop.eup %6350 }
0x2f46   :  { %3499 = vrot.lane.b32.xlu1 %v6351_v30, %s6658_s24 }
0x2f49   :  { %v6353_v31 = vpop.eup %6352 }
0x2f4a   :  { %3403 = vrot.lane.b32.xlu0 %v6353_v31, %s6658_s24 }
0x2fb8   :  { %v3500_v32 = vpop.permute.xlu1 %3499 }
0x2fb9   :  { %v3502_v33 = vmul.f32 %v6347_v36, %v3500_v32 }
0x2fbb   :  { %3505 = vrot.lane.b32.xlu1 %v3502_v33, %s6661_s6  ;;  %v3953_v33 = vld [vmem:[#allocation3 + $0xc] sm:$0xf] }
0x2fbc   :  { %v3404_v63 = vpop.permute.xlu0 %3403 }
0x2fbd   :  { %v3406_v34 = vmul.f32 %v6349_v19, %v3404_v63 }
0x2fbf   :  { %3581 = vrot.lane.b32.xlu0 %v3406_v34, %s6661_s6 }
0x302d   :  { %v3506_v35 = vpop.permute.xlu1 %3505 }
0x302e   :  { %5926 = vmatmul.mubr.msk.f32.vlgmr.msra.gmra.mxu1 %vm442_vm2, %v3506_v35 }
0x302f   :  { %5940 = vmatpush3.msra.mxu1 %v7447_v2  ;;  %5947 = vmatprep.mubr.msk.f32.mxu1 %vm6660_vm1, %v6659_v26 }
0x3030   :  { %5941 = vmatprep.subr.mxu1 %v6659_v26 }
0x3031   :  { %5942 = vmatpush3.msra.mxu1 %v7449_v3  ;;  %v3582_v38 = vpop.permute.xlu0 %3581 }
0x3032   :  { %5943 = vmatprep.subr.mxu1 %v6659_v26  ;;  %5937 = vmatmul.mubr.msk.f32.vlgmr.msra.gmra.mxu0 %vm442_vm2, %v3582_v38 }
0x3033   :  { %5944 = vmatpush3.msra.mxu1 %v7455_v4  ;;  %5951 = vmatpush3.msra.mxu0 %v7418_v59 }
0x3034   :  { %5945 = vmatprep.subr.mxu1 %v6659_v26  ;;  %5952 = vmatprep.subr.mxu0 %v6659_v26 }
0x3035   :  { %5946 = vmatpush3.msra.mxu1 %v7457_v5  ;;  %5953 = vmatpush3.msra.mxu0 %v7423_v52 }
0x3036   :  { %5948 = vmatmul.mubr.msk.f32.vlgmr.msra.gmra.mxu1 %vm442_vm2, %v3506_v35  ;;  %5961 = vmatprep.subr.mxu1 %v6659_v26 }
0x3037   :  { %5962 = vmatpush3.msra.mxu1 %v7490_v39  ;;  %5954 = vmatprep.subr.mxu0 %v6659_v26 }
0x3038   :  { %5963 = vmatprep.subr.mxu1 %v6659_v26  ;;  %5955 = vmatpush3.msra.mxu0 %v7433_v60 }
0x3039   :  { %5964 = vmatpush3.msra.mxu1 %v7498_v44  ;;  %5969 = vmatprep.mubr.msk.f32.mxu1 %vm6660_vm1, %v6659_v26 }
0x303a   :  { %5965 = vmatprep.subr.mxu1 %v6659_v26  ;;  %5956 = vmatprep.subr.mxu0 %v6659_v26 }
0x303b   :  { %5966 = vmatpush3.msra.mxu1 %v7502_v45  ;;  %5957 = vmatpush3.msra.mxu0 %v7440_v12 }
0x303c   :  { %5967 = vmatprep.subr.mxu1 %v6659_v26  ;;  %5958 = vmatprep.mubr.msk.f32.mxu0 %vm6660_vm1, %v6659_v26 }
0x303d   :  { %5968 = vmatpush3.msra.mxu1 %v7504_v46  ;;  %5972 = vmatprep.subr.mxu0 %v6659_v26 }
0x303e   :  { %5983 = vmatprep.subr.mxu1 %v6659_v26 }
0x30ee   :  { %v3575_v40 = vpop.f32.mrf.mxu1 }
0x30ef   :  { %v3579_v56 = vadd.f32 %v3575_v40, %v3503_v42 }
0x30f0   :  { %v5927_v43 = vpop.f32.mrf.mxu1 }
0x30f2   :  { %v3651_v57 = vpop.f32.mrf.mxu0 }
0x30f3   :  { %v3655_v47 = vadd.f32 %v3651_v57, %v3579_v56 }
0x30f4   :  { %v5938_v48 = vpop.f32.mrf.mxu0 }
0x30f5   :  { %6354 = vtanh.f32 %v3655_v47  ;;  %v5267_v53 = vmul.f32 -1.442695, %v3655_v47 }
0x30f6   :  { %v3747_v49 = vpop.f32.mrf.mxu1 }
0x30f7   :  { %v3751_v50 = vadd.f32 %v3747_v49, %v3680_v58 }
0x30f8   :  { %v5949_v25 = vpop.f32.mrf.mxu1 }
0x30f9   :  { %6356 = vtanh.f32 %v3751_v50  ;;  %v5269_v37 = vmul.f32 -1.442695, %v3751_v50 }
0x30fa   :  { %6358 = vpow2.f32 %v5267_v53 }
0x30fb   :  { %6360 = vpow2.f32 %v5269_v37 }
0x3102   :  { %v6355_v51 = vpop.eup %6354 }
0x3103   :  { %3665 = vrot.lane.b32.xlu0 %v6355_v51, %s6658_s24 }
0x3106   :  { %v6357_v14 = vpop.eup %6356 }
0x3107   :  { %3761 = vrot.lane.b32.xlu1 %v6357_v14, %s6658_s24  ;;  %v6359_v55 = vpop.eup %6358 }
0x3108   :  { %v3659_v61 = vadd.f32 1.0, %v6359_v55  ;;  %v6361_v62 = vpop.eup %6360 }
0x3109   :  { %v3755_v1 = vadd.f32 1.0, %v6361_v62 }
0x310a   :  { %6362 = vrcp.f32 %v3659_v61 }
0x310b   :  { %6364 = vrcp.f32 %v3755_v1 }
0x3117   :  { %v6363_v6 = vpop.eup %6362 }
0x3118   :  { %v6365_v8 = vpop.eup %6364  ;;  %v3663_v28 = vmul.f32 %v6363_v6, %v7556_v24 }
0x3119   :  { %v3759_v13 = vmul.f32 %v6365_v8, %v7553_v0 }
0x3175   :  { %v3666_v7 = vpop.permute.xlu0 %3665 }
0x3176   :  { %v3668_v27 = vmul.f32 %v6363_v6, %v3666_v7 }
0x3178   :  { %3670 = vrot.lane.b32.xlu0 %v3668_v27, %s6658_s24 }
0x3179   :  { %v3762_v9 = vpop.permute.xlu1 %3761 }
0x317a   :  { %v3764_v10 = vmul.f32 %v6365_v8, %v3762_v9 }
0x317c   :  { %3766 = vrot.lane.b32.xlu1 %v3764_v10, %s6658_s24 }
0x31ea   :  { %v3671_v11 = vpop.permute.xlu0 %3670 }
0x31eb   :  { %v7601_v29 = vadd.f32 %v3671_v11, %v3663_v28 }
0x31ed   :  { %6366 = vtanh.f32 %v7601_v29 }
0x31ee   :  { %v3767_v16 = vpop.permute.xlu1 %3766 }
0x31ef   :  { %v7605_v36 = vadd.f32 %v3767_v16, %v3759_v13  ;;  %v4049_v16 = vld [vmem:[#allocation2 + $0xc] sm:$0xf] }
0x31f1   :  { %6368 = vtanh.f32 %v7605_v36 }
0x31fa   :  { %v6367_v17 = vpop.eup %6366 }
0x31fb   :  { %3676 = vrot.lane.b32.xlu0 %v6367_v17, %s6658_s24 }
0x31fe   :  { %v6369_v15 = vpop.eup %6368 }
0x31ff   :  { %3772 = vrot.lane.b32.xlu1 %v6369_v15, %s6658_s24 }
0x326d   :  { %v3677_v18 = vpop.permute.xlu0 %3676 }
0x326e   :  { %v3679_v19 = vmul.f32 %v6363_v6, %v3677_v18 }
0x3270   :  { %3854 = vrot.lane.b32.xlu0 %v3679_v19, %s6661_s6  ;;  %v4226_v19 = vld [vmem:[#allocation3 + $0x8] sm:$0xf] }
0x3271   :  { %v3773_v41 = vpop.permute.xlu1 %3772 }
0x3272   :  { %v3775_v20 = vmul.f32 %v6365_v8, %v3773_v41 }
0x3274   :  { %3778 = vrot.lane.b32.xlu1 %v3775_v20, %s6661_s6 }
0x32e2   :  { %v3855_v21 = vpop.permute.xlu0 %3854 }
0x32e3   :  { %5970 = vmatmul.mubr.msk.f32.vlgmr.msra.gmra.mxu1 %vm442_vm2, %v3855_v21 }
0x32e4   :  { %5984 = vmatpush3.msra.mxu1 %v7418_v59  ;;  %5991 = vmatprep.mubr.msk.f32.mxu1 %vm6660_vm1, %v6659_v26 }
0x32e5   :  { %5985 = vmatprep.subr.mxu1 %v6659_v26 }
0x32e6   :  { %v3779_v22 = vpop.permute.xlu1 %3778  ;;  %5986 = vmatpush3.msra.mxu1 %v7423_v52 }
0x32e7   :  { %5959 = vmatmul.mubr.msk.f32.vlgmr.msra.gmra.mxu0 %vm442_vm2, %v3779_v22  ;;  %5987 = vmatprep.subr.mxu1 %v6659_v26 }
0x32e8   :  { %5973 = vmatpush3.msra.mxu0 %v7447_v2  ;;  %5980 = vmatprep.mubr.msk.f32.mxu0 %vm6660_vm1, %v6659_v26 }
0x32e9   :  { %5974 = vmatprep.subr.mxu0 %v6659_v26  ;;  %5988 = vmatpush3.msra.mxu1 %v7433_v60 }
0x32ea   :  { %5975 = vmatpush3.msra.mxu0 %v7449_v3  ;;  %5989 = vmatprep.subr.mxu1 %v6659_v26 }
0x32eb   :  { %5976 = vmatprep.subr.mxu0 %v6659_v26  ;;  %5990 = vmatpush3.msra.mxu1 %v7440_v12 }
0x32ec   :  { %5977 = vmatpush3.msra.mxu0 %v7455_v4  ;;  %6005 = vmatprep.subr.mxu1 %v6659_v26 }
0x32ed   :  { %5978 = vmatprep.subr.mxu0 %v6659_v26 }
0x32ee   :  { %5979 = vmatpush3.msra.mxu0 %v7457_v5 }
0x32ef   :  { %5981 = vmatmul.mubr.msk.f32.vlgmr.msra.gmra.mxu0 %vm442_vm2, %v3779_v22  ;;  %5994 = vmatprep.subr.mxu0 %v6659_v26 }
0x32f0   :  { %5995 = vmatpush3.msra.mxu0 %v7490_v39  ;;  %6002 = vmatprep.mubr.msk.f32.mxu0 %vm6660_vm1, %v6659_v26 }
0x32f1   :  { %5996 = vmatprep.subr.mxu0 %v6659_v26 }
0x32f2   :  { %5997 = vmatpush3.msra.mxu0 %v7498_v44 }
0x32f3   :  { %5998 = vmatprep.subr.mxu0 %v6659_v26 }
0x32f4   :  { %5999 = vmatpush3.msra.mxu0 %v7502_v45 }
0x32f5   :  { %6000 = vmatprep.subr.mxu0 %v6659_v26 }
0x32f6   :  { %6001 = vmatpush3.msra.mxu0 %v7504_v46 }
0x32f7   :  { %6016 = vmatprep.subr.mxu0 %v6659_v26 }
0x33a3   :  { %v3924_v0 = vpop.f32.mrf.mxu1 }
0x33a5   :  { %v5971_v54 = vpop.f32.mrf.mxu1 }
0x33a7   :  { %v3848_v24 = vpop.f32.mrf.mxu0 }
0x33a8   :  { %v3852_v30 = vadd.f32 %v3848_v24, %v3776_v23 }
0x33a9   :  { %v5960_v31 = vpop.f32.mrf.mxu0 }
0x33aa   :  { %v3928_v32 = vadd.f32 %v3924_v0, %v3852_v30 }
0x33ac   :  { %6370 = vtanh.f32 %v3928_v32  ;;  %v5272_v42 = vmul.f32 -1.442695, %v3928_v32 }
0x33af   :  { %v4020_v63 = vpop.f32.mrf.mxu0 }
0x33b0   :  { %v4024_v34 = vadd.f32 %v4020_v63, %v3953_v33 }
0x33b1   :  { %v5982_v35 = vpop.f32.mrf.mxu0 }
0x33b2   :  { %6372 = vtanh.f32 %v4024_v34  ;;  %v5274_v43 = vmul.f32 -1.442695, %v4024_v34 }
0x33b3   :  { %6374 = vpow2.f32 %v5272_v42 }
0x33b4   :  { %6376 = vpow2.f32 %v5274_v43 }
0x33b9   :  { %v6371_v38 = vpop.eup %6370 }
0x33ba   :  { %3938 = vrot.lane.b32.xlu0 %v6371_v38, %s6658_s24 }
0x33bf   :  { %v6373_v40 = vpop.eup %6372 }
0x33c0   :  { %4034 = vrot.lane.b32.xlu1 %v6373_v40, %s6658_s24  ;;  %v6375_v56 = vpop.eup %6374 }
0x33c1   :  { %v3932_v57 = vadd.f32 1.0, %v6375_v56  ;;  %v6377_v47 = vpop.eup %6376 }
0x33c2   :  { %v4028_v48 = vadd.f32 1.0, %v6377_v47 }
0x33c3   :  { %6378 = vrcp.f32 %v3932_v57 }
0x33c4   :  { %6380 = vrcp.f32 %v4028_v48 }
0x33d0   :  { %v6379_v58 = vpop.eup %6378 }
0x33d1   :  { %v6381_v25 = vpop.eup %6380  ;;  %v3936_v53 = vmul.f32 %v6379_v58, %v7601_v29 }
0x33d2   :  { %v4032_v61 = vmul.f32 %v6381_v25, %v7605_v36 }
0x342c   :  { %v3939_v49 = vpop.permute.xlu0 %3938 }
0x342d   :  { %v3941_v50 = vmul.f32 %v6379_v58, %v3939_v49 }
0x342f   :  { %3943 = vrot.lane.b32.xlu0 %v3941_v50, %s6658_s24 }
0x3432   :  { %v4035_v51 = vpop.permute.xlu1 %4034 }
0x3433   :  { %v4037_v14 = vmul.f32 %v6381_v25, %v4035_v51 }
0x3435   :  { %4039 = vrot.lane.b32.xlu1 %v4037_v14, %s6658_s24 }
0x34a1   :  { %v3944_v37 = vpop.permute.xlu0 %3943 }
0x34a2   :  { %v7650_v55 = vadd.f32 %v3944_v37, %v3936_v53 }
0x34a4   :  { %6382 = vtanh.f32 %v7650_v55 }
0x34a7   :  { %v4040_v62 = vpop.permute.xlu1 %4039 }
0x34a8   :  { %v7654_v1 = vadd.f32 %v4040_v62, %v4032_v61 }
0x34aa   :  { %6384 = vtanh.f32 %v7654_v1 }
0x34b1   :  { %v6383_v6 = vpop.eup %6382 }
0x34b2   :  { %3949 = vrot.lane.b32.xlu0 %v6383_v6, %s6658_s24 }
0x34b7   :  { %v6385_v7 = vpop.eup %6384 }
0x34b8   :  { %4045 = vrot.lane.b32.xlu1 %v6385_v7, %s6658_s24 }
0x3524   :  { %v3950_v27 = vpop.permute.xlu0 %3949 }
0x3525   :  { %v3952_v8 = vmul.f32 %v6379_v58, %v3950_v27 }
0x3527   :  { %4127 = vrot.lane.b32.xlu0 %v3952_v8, %s6661_s6 }
0x352a   :  { %v4046_v9 = vpop.permute.xlu1 %4045 }
0x352b   :  { %v4048_v10 = vmul.f32 %v6381_v25, %v4046_v9 }
0x352d   :  { %4051 = vrot.lane.b32.xlu1 %v4048_v10, %s6661_s6 }
0x3599   :  { %v4128_v28 = vpop.permute.xlu0 %4127 }
0x359a   :  { %6003 = vmatmul.mubr.msk.f32.vlgmr.msra.gmra.mxu0 %vm442_vm2, %v4128_v28 }
0x359b   :  { %6017 = vmatpush3.msra.mxu0 %v7418_v59  ;;  %6024 = vmatprep.mubr.msk.f32.mxu0 %vm6660_vm1, %v6659_v26 }
0x359c   :  { %6018 = vmatprep.subr.mxu0 %v6659_v26 }
0x359d   :  { %6019 = vmatpush3.msra.mxu0 %v7423_v52 }
0x359e   :  { %6020 = vmatprep.subr.mxu0 %v6659_v26 }
0x359f   :  { %v4052_v11 = vpop.permute.xlu1 %4051  ;;  %6021 = vmatpush3.msra.mxu0 %v7433_v60 }
0x35a0   :  { %5992 = vmatmul.mubr.msk.f32.vlgmr.msra.gmra.mxu1 %vm442_vm2, %v4052_v11  ;;  %6022 = vmatprep.subr.mxu0 %v6659_v26 }
0x35a1   :  { %6006 = vmatpush3.msra.mxu1 %v7447_v2  ;;  %6013 = vmatprep.mubr.msk.f32.mxu1 %vm6660_vm1, %v6659_v26 }
0x35a2   :  { %6007 = vmatprep.subr.mxu1 %v6659_v26  ;;  %6023 = vmatpush3.msra.mxu0 %v7440_v12 }
0x35a3   :  { %6008 = vmatpush3.msra.mxu1 %v7449_v3  ;;  %6038 = vmatprep.subr.mxu0 %v6659_v26 }
0x35a4   :  { %6009 = vmatprep.subr.mxu1 %v6659_v26 }
0x35a5   :  { %6010 = vmatpush3.msra.mxu1 %v7455_v4 }
0x35a6   :  { %6011 = vmatprep.subr.mxu1 %v6659_v26 }
0x35a7   :  { %6012 = vmatpush3.msra.mxu1 %v7457_v5 }
0x35a8   :  { %6014 = vmatmul.mubr.msk.f32.vlgmr.msra.gmra.mxu1 %vm442_vm2, %v4052_v11  ;;  %6027 = vmatprep.subr.mxu1 %v6659_v26 }
0x35a9   :  { %6028 = vmatpush3.msra.mxu1 %v7490_v39  ;;  %6035 = vmatprep.mubr.msk.f32.mxu1 %vm6660_vm1, %v6659_v26 }
0x35aa   :  { %6029 = vmatprep.subr.mxu1 %v6659_v26 }
0x35ab   :  { %6030 = vmatpush3.msra.mxu1 %v7498_v44 }
0x35ac   :  { %6031 = vmatprep.subr.mxu1 %v6659_v26 }
0x35ad   :  { %6032 = vmatpush3.msra.mxu1 %v7502_v45 }
0x35ae   :  { %6033 = vmatprep.subr.mxu1 %v6659_v26 }
0x35af   :  { %6034 = vmatpush3.msra.mxu1 %v7504_v46 }
0x35b0   :  { %6049 = vmatprep.subr.mxu1 %v6659_v26 }
0x365a   :  { %v4197_v29 = vpop.f32.mrf.mxu0 }
0x365c   :  { %v6004_v13 = vpop.f32.mrf.mxu0 }
0x3660   :  { %v4121_v36 = vpop.f32.mrf.mxu1 }
0x3661   :  { %v4125_v17 = vadd.f32 %v4121_v36, %v4049_v16 }
0x3662   :  { %v5993_v15 = vpop.f32.mrf.mxu1 }
0x3663   :  { %v4201_v18 = vadd.f32 %v4197_v29, %v4125_v17 }
0x3665   :  { %6386 = vtanh.f32 %v4201_v18  ;;  %v5277_v54 = vmul.f32 -1.442695, %v4201_v18 }
0x3668   :  { %v4293_v41 = vpop.f32.mrf.mxu1 }
0x3669   :  { %v4297_v20 = vadd.f32 %v4293_v41, %v4226_v19 }
0x366a   :  { %v6015_v21 = vpop.f32.mrf.mxu1 }
0x366b   :  { %6388 = vtanh.f32 %v4297_v20  ;;  %v5279_v23 = vmul.f32 -1.442695, %v4297_v20 }
0x366c   :  { %6390 = vpow2.f32 %v5277_v54 }
0x366d   :  { %6392 = vpow2.f32 %v5279_v23 }
0x3672   :  { %v6387_v22 = vpop.eup %6386 }
0x3673   :  { %4211 = vrot.lane.b32.xlu0 %v6387_v22, %s6658_s24 }
0x3678   :  { %v6389_v0 = vpop.eup %6388 }
0x3679   :  { %4307 = vrot.lane.b32.xlu1 %v6389_v0, %s6658_s24  ;;  %v6391_v24 = vpop.eup %6390 }
0x367a   :  { %v4205_v30 = vadd.f32 1.0, %v6391_v24  ;;  %v6393_v31 = vpop.eup %6392 }
0x367b   :  { %v4301_v32 = vadd.f32 1.0, %v6393_v31 }
0x367c   :  { %6394 = vrcp.f32 %v4205_v30 }
0x367d   :  { %6396 = vrcp.f32 %v4301_v32  ;;  %v6446_v32 = vld [vmem:[%s7832_s14 + $0x18] sm:$0xff] }
0x3689   :  { %v6395_v33 = vpop.eup %6394 }
0x368a   :  { %v6397_v35 = vpop.eup %6396  ;;  %v4209_v42 = vmul.f32 %v6395_v33, %v7650_v55 }
0x368b   :  { %v4305_v57 = vmul.f32 %v6397_v35, %v7654_v1 }
0x36e5   :  { %v4212_v63 = vpop.permute.xlu0 %4211 }
0x36e6   :  { %v4214_v34 = vmul.f32 %v6395_v33, %v4212_v63 }
0x36e8   :  { %4216 = vrot.lane.b32.xlu0 %v4214_v34, %s6658_s24  ;;  %v6448_v34 = vld [vmem:[%s7832_s14 + $0x8] sm:$0xff] }
0x36eb   :  { %v4308_v38 = vpop.permute.xlu1 %4307 }
0x36ec   :  { %v4310_v40 = vmul.f32 %v6397_v35, %v4308_v38  ;;  %v6450_v38 = vld [vmem:[%s7832_s14] sm:$0xff] }
0x36ee   :  { %4312 = vrot.lane.b32.xlu1 %v4310_v40, %s6658_s24  ;;  %v6451_v40 = vld [vmem:[#allocation14 + $0x10] sm:$0xff] }
0x375a   :  { %v4217_v43 = vpop.permute.xlu0 %4216 }
0x375b   :  { %v7699_v56 = vadd.f32 %v4217_v43, %v4209_v42  ;;  %v6452_v42 = vld [vmem:[#allocation14 + $0x8] sm:$0xff]  ;;  %v6453_v43 = vld [vmem:[#allocation14] sm:$0xff] }
0x375d   :  { %6398 = vtanh.f32 %v7699_v56 }
0x3760   :  { %v4313_v47 = vpop.permute.xlu1 %4312 }
0x3761   :  { %v7703_v48 = vadd.f32 %v4313_v47, %v4305_v57  ;;  %v4595_v47 = vld [vmem:[#allocation2 + $0x4] sm:$0xf] }
0x3763   :  { %6400 = vtanh.f32 %v7703_v48 }
0x376a   :  { %v6399_v58 = vpop.eup %6398 }
0x376b   :  { %4222 = vrot.lane.b32.xlu0 %v6399_v58, %s6658_s24 }
0x3770   :  { %v6401_v49 = vpop.eup %6400 }
0x3771   :  { %4318 = vrot.lane.b32.xlu1 %v6401_v49, %s6658_s24 }
0x37dd   :  { %v4223_v50 = vpop.permute.xlu0 %4222 }
0x37de   :  { %v4225_v25 = vmul.f32 %v6395_v33, %v4223_v50  ;;  %v6447_v33 = vld [vmem:[%s7832_s14 + $0x10] sm:$0xff]  ;;  %v4772_v50 = vld [vmem:[#allocation3] sm:$0xf] }
0x37e0   :  { %4400 = vrot.lane.b32.xlu0 %v4225_v25, %s6661_s6 }
0x37e3   :  { %v4319_v51 = vpop.permute.xlu1 %4318 }
0x37e4   :  { %v4321_v14 = vmul.f32 %v6397_v35, %v4319_v51  ;;  %v6449_v35 = vld [vmem:[#allocation14 + $0x18] sm:$0xff] }
0x37e6   :  { %4324 = vrot.lane.b32.xlu1 %v4321_v14, %s6661_s6 }
0x3852   :  { %v4401_v53 = vpop.permute.xlu0 %4400 }
0x3853   :  { %6036 = vmatmul.mubr.msk.f32.vlgmr.msra.gmra.mxu1 %vm442_vm2, %v4401_v53 }
0x3854   :  { %6050 = vmatpush3.msra.mxu1 %v7418_v59  ;;  %6057 = vmatprep.mubr.msk.f32.mxu1 %vm6660_vm1, %v6659_v26 }
0x3855   :  { %6051 = vmatprep.subr.mxu1 %v6659_v26 }
0x3856   :  { %6052 = vmatpush3.msra.mxu1 %v7423_v52 }
0x3857   :  { %6053 = vmatprep.subr.mxu1 %v6659_v26 }
0x3858   :  { %v4325_v37 = vpop.permute.xlu1 %4324  ;;  %6054 = vmatpush3.msra.mxu1 %v7433_v60  ;;  %v4322_v60 = vld [vmem:[#allocation2 + $0x8] sm:$0xf] }
0x3859   :  { %6025 = vmatmul.mubr.msk.f32.vlgmr.msra.gmra.mxu0 %vm442_vm2, %v4325_v37  ;;  %6055 = vmatprep.subr.mxu1 %v6659_v26 }
0x385a   :  { %6039 = vmatpush3.msra.mxu0 %v7447_v2  ;;  %6046 = vmatprep.mubr.msk.f32.mxu0 %vm6660_vm1, %v6659_v26 }
0x385b   :  { %6040 = vmatprep.subr.mxu0 %v6659_v26  ;;  %6056 = vmatpush3.msra.mxu1 %v7440_v12 }
0x385c   :  { %6041 = vmatpush3.msra.mxu0 %v7449_v3  ;;  %6071 = vmatprep.subr.mxu1 %v6659_v26 }
0x385d   :  { %6042 = vmatprep.subr.mxu0 %v6659_v26 }
0x385e   :  { %6043 = vmatpush3.msra.mxu0 %v7455_v4 }
0x385f   :  { %6044 = vmatprep.subr.mxu0 %v6659_v26 }
0x3860   :  { %6045 = vmatpush3.msra.mxu0 %v7457_v5  ;;  %v4499_v5 = vld [vmem:[#allocation3 + $0x4] sm:$0xf] }
0x3861   :  { %6047 = vmatmul.mubr.msk.f32.vlgmr.msra.gmra.mxu0 %vm442_vm2, %v4325_v37  ;;  %6060 = vmatprep.subr.mxu0 %v6659_v26 }
0x3862   :  { %6061 = vmatpush3.msra.mxu0 %v7490_v39  ;;  %6068 = vmatprep.mubr.msk.f32.mxu0 %vm6660_vm1, %v6659_v26 }
0x3863   :  { %6062 = vmatprep.subr.mxu0 %v6659_v26 }
0x3864   :  { %6063 = vmatpush3.msra.mxu0 %v7498_v44 }
0x3865   :  { %6064 = vmatprep.subr.mxu0 %v6659_v26 }
0x3866   :  { %6065 = vmatpush3.msra.mxu0 %v7502_v45 }
0x3867   :  { %6066 = vmatprep.subr.mxu0 %v6659_v26 }
0x3868   :  { %6067 = vmatpush3.msra.mxu0 %v7504_v46 }
0x3869   :  { %6082 = vmatprep.subr.mxu0 %v6659_v26 }
0x3913   :  { %v4470_v59 = vpop.f32.mrf.mxu1 }
0x3915   :  { %v6037_v52 = vpop.f32.mrf.mxu1 }
0x3919   :  { %v4394_v12 = vpop.f32.mrf.mxu0 }
0x391a   :  { %v4398_v2 = vadd.f32 %v4394_v12, %v4322_v60 }
0x391b   :  { %v6026_v3 = vpop.f32.mrf.mxu0 }
0x391c   :  { %v4474_v4 = vadd.f32 %v4470_v59, %v4398_v2 }
0x391e   :  { %6402 = vtanh.f32 %v4474_v4  ;;  %v5282_v7 = vmul.f32 -1.442695, %v4474_v4 }
0x3921   :  { %v4566_v55 = vpop.f32.mrf.mxu0 }
0x3922   :  { %v4570_v61 = vadd.f32 %v4566_v55, %v4499_v5 }
0x3923   :  { %v6048_v62 = vpop.f32.mrf.mxu0 }
0x3924   :  { %6404 = vtanh.f32 %v4570_v61  ;;  %v5284_v27 = vmul.f32 -1.442695, %v4570_v61 }
0x3925   :  { %6406 = vpow2.f32 %v5282_v7 }
0x3926   :  { %6408 = vpow2.f32 %v5284_v27 }
0x392b   :  { %v6403_v1 = vpop.eup %6402 }
0x392c   :  { %4484 = vrot.lane.b32.xlu0 %v6403_v1, %s6658_s24 }
0x3931   :  { %v6405_v6 = vpop.eup %6404 }
0x3932   :  { %4580 = vrot.lane.b32.xlu1 %v6405_v6, %s6658_s24  ;;  %v6407_v8 = vpop.eup %6406 }
0x3933   :  { %v4478_v9 = vadd.f32 1.0, %v6407_v8  ;;  %v6409_v10 = vpop.eup %6408 }
0x3934   :  { %v4574_v28 = vadd.f32 1.0, %v6409_v10 }
0x3935   :  { %6410 = vrcp.f32 %v4478_v9 }
0x3936   :  { %6412 = vrcp.f32 %v4574_v28 }
0x3942   :  { %v6411_v11 = vpop.eup %6410 }
0x3943   :  { %v6413_v16 = vpop.eup %6412  ;;  %v4482_v15 = vmul.f32 %v6411_v11, %v7699_v56 }
0x3944   :  { %v4578_v41 = vmul.f32 %v6413_v16, %v7703_v48 }
0x399e   :  { %v4485_v29 = vpop.permute.xlu0 %4484 }
0x399f   :  { %v4487_v13 = vmul.f32 %v6411_v11, %v4485_v29 }
0x39a1   :  { %4489 = vrot.lane.b32.xlu0 %v4487_v13, %s6658_s24 }
0x39a4   :  { %v4581_v36 = vpop.permute.xlu1 %4580 }
0x39a5   :  { %v4583_v17 = vmul.f32 %v6413_v16, %v4581_v36 }
0x39a7   :  { %4585 = vrot.lane.b32.xlu1 %v4583_v17, %s6658_s24 }
0x3a13   :  { %v4490_v18 = vpop.permute.xlu0 %4489 }
0x3a14   :  { %v7748_v19 = vadd.f32 %v4490_v18, %v4482_v15  ;;  %v4868_v15 = vld [vmem:[#allocation2] sm:$0xf] }
0x3a16   :  { %6414 = vtanh.f32 %v7748_v19 }
0x3a19   :  { %v4586_v20 = vpop.permute.xlu1 %4585 }
0x3a1a   :  { %v7752_v21 = vadd.f32 %v4586_v20, %v4578_v41 }
0x3a1c   :  { %6416 = vtanh.f32 %v7752_v21 }
0x3a23   :  { %v6415_v22 = vpop.eup %6414 }
0x3a24   :  { %4495 = vrot.lane.b32.xlu0 %v6415_v22, %s6658_s24 }
0x3a29   :  { %v6417_v0 = vpop.eup %6416 }
0x3a2a   :  { %4591 = vrot.lane.b32.xlu1 %v6417_v0, %s6658_s24 }
0x3a96   :  { %v4496_v54 = vpop.permute.xlu0 %4495 }
0x3a97   :  { %v4498_v23 = vmul.f32 %v6411_v11, %v4496_v54 }
0x3a99   :  { %4673 = vrot.lane.b32.xlu0 %v4498_v23, %s6661_s6 }
0x3a9c   :  { %v4592_v24 = vpop.permute.xlu1 %4591 }
0x3a9d   :  { %v4594_v30 = vmul.f32 %v6413_v16, %v4592_v24 }
0x3a9f   :  { %4597 = vrot.lane.b32.xlu1 %v4594_v30, %s6661_s6 }
0x3b0b   :  { %v4674_v31 = vpop.permute.xlu0 %4673 }
0x3b0c   :  { %6069 = vmatmul.mubr.msk.f32.vlgmr.msra.gmra.mxu0 %vm442_vm2, %v4674_v31 }
0x3b0d   :  { %6083 = vmatpush3.msra.mxu0 %v6446_v32  ;;  %6090 = vmatprep.mubr.msk.f32.mxu0 %vm6660_vm1, %v6659_v26 }
0x3b0e   :  { %6084 = vmatprep.subr.mxu0 %v6659_v26 }
0x3b0f   :  { %6085 = vmatpush3.msra.mxu0 %v6447_v33  ;;  %v5052_v33 = vld [vmem:[#allocation18 + $0x38] sm:$0xff] }
0x3b10   :  { %6086 = vmatprep.subr.mxu0 %v6659_v26 }
0x3b11   :  { %v4598_v63 = vpop.permute.xlu1 %4597  ;;  %6087 = vmatpush3.msra.mxu0 %v6448_v34  ;;  %v5050_v34 = vld [vmem:[#allocation18 + $0x28] sm:$0xff] }
0x3b12   :  { %6058 = vmatmul.mubr.msk.f32.vlgmr.msra.gmra.mxu1 %vm442_vm2, %v4598_v63  ;;  %6088 = vmatprep.subr.mxu0 %v6659_v26 }
0x3b13   :  { %6072 = vmatpush3.msra.mxu1 %v6449_v35  ;;  %6079 = vmatprep.mubr.msk.f32.mxu1 %vm6660_vm1, %v6659_v26  ;;  %v5049_v35 = vld [vmem:[#allocation18 + $0x20] sm:$0xff] }
0x3b14   :  { %6073 = vmatprep.subr.mxu1 %v6659_v26  ;;  %6089 = vmatpush3.msra.mxu0 %v6450_v38  ;;  %v5048_v38 = vld [vmem:[#allocation18 + $0x18] sm:$0xff] }
0x3b15   :  { %6074 = vmatpush3.msra.mxu1 %v6451_v40  ;;  %5094 = vmatprep.subr.mxu0 %v5052_v33  ;;  %v5047_v40 = vld [vmem:[#allocation18 + $0x10] sm:$0xff] }
0x3b16   :  { %6075 = vmatprep.subr.mxu1 %v6659_v26 }
0x3b17   :  { %6076 = vmatpush3.msra.mxu1 %v6452_v42  ;;  %v5046_v42 = vld [vmem:[#allocation18 + $0x8] sm:$0xff] }
0x3b18   :  { %6077 = vmatprep.subr.mxu1 %v6659_v26 }
0x3b19   :  { %6078 = vmatpush3.msra.mxu1 %v6453_v43  ;;  %v5045_v43 = vld [vmem:[#allocation18] sm:$0xff] }
0x3b1a   :  { %6080 = vmatmul.mubr.msk.f32.vlgmr.msra.gmra.mxu1 %vm442_vm2, %v4598_v63  ;;  %6093 = vmatprep.subr.mxu1 %v6659_v26  ;;  %v5051_v63 = vld [vmem:[#allocation18 + $0x30] sm:$0xff] }
0x3b1b   :  { %6094 = vmatpush3.msra.mxu1 %v7490_v39  ;;  %6101 = vmatprep.mubr.msk.f32.mxu1 %vm6660_vm1, %v6659_v26 }
0x3b1c   :  { %6095 = vmatprep.subr.mxu1 %v6659_v26 }
0x3b1d   :  { %6096 = vmatpush3.msra.mxu1 %v7498_v44 }
0x3b1e   :  { %6097 = vmatprep.subr.mxu1 %v6659_v26 }
0x3b1f   :  { %6098 = vmatpush3.msra.mxu1 %v7502_v45 }
0x3b20   :  { %6099 = vmatprep.subr.mxu1 %v6659_v26 }
0x3b21   :  { %6100 = vmatpush3.msra.mxu1 %v7504_v46 }
0x3bcc   :  { %v4743_v56 = vpop.f32.mrf.mxu0 }
0x3bce   :  { %v6070_v57 = vpop.f32.mrf.mxu0 }
0x3bd2   :  { %v4667_v48 = vpop.f32.mrf.mxu1 }
0x3bd3   :  { %v4671_v39 = vadd.f32 %v4667_v48, %v4595_v47 }
0x3bd4   :  { %v6059_v58 = vpop.f32.mrf.mxu1 }
0x3bd5   :  { %v4747_v49 = vadd.f32 %v4743_v56, %v4671_v39  ;;  %v5055_v39 = vlaneseq }
0x3bd7   :  { %6418 = vtanh.f32 %v4747_v49  ;;  %v5287_v46 = vmul.f32 -1.442695, %v4747_v49  ;;  %v5056_v58 = vshrl.u32 %v5055_v39, 7 }
0x3bd9   :  { %v5057_v49 = vsub.s32 0, %v5056_v58 }
0x3bda   :  { %v4839_v25 = vpop.f32.mrf.mxu1 }
0x3bdb   :  { %v4843_v51 = vadd.f32 %v4839_v25, %v4772_v50  ;;  %v5053_v50 = vld [vmem:[%s7836_s18] sm:$0x3]  ;;  %v5061_v25 = vsub.s32 1, %v5056_v58  ;;  %s6663_s18 = smov [#allocation20]  }
0x3bdc   :  { %v6081_v44 = vpop.f32.mrf.mxu1 }
0x3bdd   :  { %6420 = vtanh.f32 %v4843_v51  ;;  %v5289_v53 = vmul.f32 -1.442695, %v4843_v51  ;;  %v5058_v51 = vrot.slane %v5053_v50, %v5057_v49  ;;  %v5062_v44 = vrot.slane %v5053_v50, %v5061_v25 }
0x3bde   :  { %6422 = vpow2.f32 %v5287_v46 }
0x3bdf   :  { %6424 = vpow2.f32 %v5289_v53 }
0x3be4   :  { %v6419_v14 = vpop.eup %6418 }
0x3be5   :  { %4757 = vrot.lane.b32.xlu0 %v6419_v14, %s6658_s24 }
0x3bea   :  { %v6421_v45 = vpop.eup %6420 }
0x3beb   :  { %4853 = vrot.lane.b32.xlu1 %v6421_v45, %s6658_s24  ;;  %v6423_v37 = vpop.eup %6422 }
0x3bec   :  { %v4751_v59 = vadd.f32 1.0, %v6423_v37  ;;  %v6425_v52 = vpop.eup %6424 }
0x3bed   :  { %v4847_v60 = vadd.f32 1.0, %v6425_v52 }
0x3bee   :  { %6426 = vrcp.f32 %v4751_v59 }
0x3bef   :  { %6428 = vrcp.f32 %v4847_v60 }
0x3bfb   :  { %v6427_v12 = vpop.eup %6426 }
0x3bfc   :  { %v6429_v4 = vpop.eup %6428  ;;  %v4755_v61 = vmul.f32 %v6427_v12, %v7748_v19 }
0x3bfd   :  { %v4851_v6 = vmul.f32 %v6429_v4, %v7752_v21 }
0x3c57   :  { %v4758_v2 = vpop.permute.xlu0 %4757 }
0x3c58   :  { %v4760_v3 = vmul.f32 %v6427_v12, %v4758_v2 }
0x3c5a   :  { %4762 = vrot.lane.b32.xlu0 %v4760_v3, %s6658_s24 }
0x3c5d   :  { %v4854_v5 = vpop.permute.xlu1 %4853 }
0x3c5e   :  { %v4856_v55 = vmul.f32 %v6429_v4, %v4854_v5 }
0x3c60   :  { %4858 = vrot.lane.b32.xlu1 %v4856_v55, %s6658_s24 }
0x3ccc   :  { %v4763_v62 = vpop.permute.xlu0 %4762 }
0x3ccd   :  { %v4765_v1 = vadd.f32 %v4763_v62, %v4755_v61 }
0x3ccf   :  { %6430 = vtanh.f32 %v4765_v1 }
0x3cd2   :  { %v4859_v7 = vpop.permute.xlu1 %4858 }
0x3cd3   :  { %v4861_v27 = vadd.f32 %v4859_v7, %v4851_v6 }
0x3cd5   :  { %6432 = vtanh.f32 %v4861_v27 }
0x3cdc   :  { %v6431_v8 = vpop.eup %6430 }
0x3cdd   :  { %4768 = vrot.lane.b32.xlu0 %v6431_v8, %s6658_s24 }
0x3ce2   :  { %v6433_v9 = vpop.eup %6432 }
0x3ce3   :  { %4864 = vrot.lane.b32.xlu1 %v6433_v9, %s6658_s24 }
0x3d4f   :  { %v4769_v10 = vpop.permute.xlu0 %4768 }
0x3d50   :  { %v4771_v28 = vmul.f32 %v6427_v12, %v4769_v10 }
0x3d52   :  { %4946 = vrot.lane.b32.xlu0 %v4771_v28, %s6661_s6 }
0x3d55   :  { %v4865_v11 = vpop.permute.xlu1 %4864 }
0x3d56   :  { %v4867_v29 = vmul.f32 %v6429_v4, %v4865_v11 }
0x3d58   :  { %4870 = vrot.lane.b32.xlu1 %v4867_v29, %s6661_s6 }
0x3dc4   :  { %v4947_v13 = vpop.permute.xlu0 %4946 }
0x3dc5   :  { %6102 = vmatmul.mubr.msk.f32.vlgmr.msra.gmra.mxu1 %vm442_vm2, %v4947_v13 }
0x3dca   :  { %v4871_v16 = vpop.permute.xlu1 %4870 }
0x3dcb   :  { %6091 = vmatmul.mubr.msk.f32.vlgmr.msra.gmra.mxu0 %vm442_vm2, %v4871_v16 }
0x3dcc   :  { %5134 = vmatprep.mubr.f32.mxu0 %v6659_v26  ;;  %5095 = vmatpush1.msra.mxu0 %v5051_v63 }
0x3dcd   :  { %5096 = vmatprep.subr.mxu0 %v5050_v34 }
0x3dce   :  { %5097 = vmatpush1.msra.mxu0 %v5049_v35 }
0x3dcf   :  { %5098 = vmatprep.subr.mxu0 %v5048_v38 }
0x3dd0   :  { %5099 = vmatpush1.msra.mxu0 %v5047_v40 }
0x3dd1   :  { %5100 = vmatprep.subr.mxu0 %v5046_v42 }
0x3dd2   :  { %5101 = vmatpush1.msra.mxu0 %v5045_v43 }
0x3e85   :  { %v5016_v36 = vpop.f32.mrf.mxu1 }
0x3e87   :  { %v6103_v17 = vpop.f32.mrf.mxu1 }
0x3e8b   :  { %v4940_v18 = vpop.f32.mrf.mxu0 }
0x3e8c   :  { %v4944_v19 = vadd.f32 %v4940_v18, %v4868_v15 }
0x3e8d   :  { %v6092_v41 = vpop.f32.mrf.mxu0 }
0x3e8e   :  { %v5020_v20 = vadd.f32 %v5016_v36, %v4944_v19 }
0x3e90   :  { %6434 = vtanh.f32 %v5020_v20  ;;  %v5292_v22 = vmul.f32 -1.442695, %v5020_v20 }
0x3e92   :  { %6436 = vpow2.f32 %v5292_v22 }
0x3e9d   :  { %v6435_v21 = vpop.eup %6434 }
0x3e9e   :  { %5030 = vrot.lane.b32.xlu1 %v6435_v21, %s6658_s24 }
0x3e9f   :  { %v6437_v0 = vpop.eup %6436 }
0x3ea0   :  { %v5024_v54 = vadd.f32 1.0, %v6437_v0 }
0x3ea2   :  { %6438 = vrcp.f32 %v5024_v54 }
0x3eaf   :  { %v6439_v23 = vpop.eup %6438 }
0x3eb0   :  { %v5028_v26 = vmul.f32 %v6439_v23, %v4765_v1 }
0x3f10   :  { %v5031_v24 = vpop.permute.xlu1 %5030 }
0x3f11   :  { %v5033_v30 = vmul.f32 %v6439_v23, %v5031_v24 }
0x3f13   :  { %5035 = vrot.lane.b32.xlu0 %v5033_v30, %s6658_s24 }
0x3f85   :  { %v5036_v31 = vpop.permute.xlu0 %5035 }
0x3f86   :  { %v5038_v32 = vadd.f32 %v5036_v31, %v5028_v26 }
0x3f88   :  { %6440 = vtanh.f32 %v5038_v32 }
0x3f95   :  { %v6441_v56 = vpop.eup %6440 }
0x3f96   :  { %5041 = vrot.lane.b32.xlu1 %v6441_v56, %s6658_s24  ;;  %s5172_s24 = sshll.u32 %s6663_s18, 4  ;;  %s5173_s24 = int_to_ptr.vmem [resolvable:$true] %s5172_s24 }
0x3f97   :  { %p6619_p13 = scmp.lt.s32.totalorder %s5173_s24, %s5173_s24 }
0x4008   :  { %v5042_v57 = vpop.permute.xlu1 %5041 }
0x4009   :  { %v5044_v47 = vmul.f32 %v6439_v23, %v5042_v57 }
0x400b   :  { %5066 = vrot.lane.b32.xlu0 %v5044_v47, %s6661_s6  ;;  %s6614_s6 = scalar_lea.vmem %s5173_s24, 128 }
0x400c   :  { %p6615_p12 = scmp.ne.s32.totalorder %s5173_s24, %s6614_s6  ;;  %p6620_p0 = scmp.lt.s32.totalorder %s6614_s6, %s6614_s6 }
0x400e   :  { %p6621_p1 = por %p6620_p0, %p6619_p13 }
0x4010   :  { %p6622_p2 = pnand %p6621_p1, %p6615_p12 }
0x407d   :  { %v5067_v48 = vpop.permute.xlu0 %5066 }
0x407e   :  { %5293 = vmatmul.mubr.msk.f32.vlgmr.msra.gmra.mxu0 %vm442_vm2, %v5067_v48 }
0x413e   :  { %v5136_v14 = vpop.f32.mrf.mxu0 }
0x413f   :  { %v5137_v45 = vadd.f32 %v5136_v14, %v5058_v51 }
0x4140   :  { %v5138_v46 = vpop.f32.mrf.mxu0 }
0x4141   :  { %v5141_v53 = vmax.f32 %v5137_v45, 0.0  ;;  %v5139_v37 = vadd.f32 %v5138_v46, %v5062_v44 }
0x4143   :  { %v5143_v59 = vmul.f32 %v5141_v53, %v5141_v53  ;;  %v5142_v52 = vmax.f32 %v5139_v37, 0.0 }
0x4145   :  { %v5144_v60 = vmul.f32 %v5142_v52, %v5142_v52  ;;  %v5146_v12 = vsel %vm5145_vm6, %v5143_v59, 0.0 }
0x4147   :  { %v5147_v2 = vsel %vm5145_vm6, %v5144_v60, 0.0 }
0x4148   :  { %v5148_v3 = vadd.f32 %v5147_v2, %v5146_v12 }
0x414a   :  { %5149 = vadd.xlane.f32.xlu1 %v5148_v3 }
0x41d3   :  { %v5150_v4 = vpop.xlane.xlu1 %5149 }
0x41d4   :  { %6442 = vrsqrt.f32 %v5150_v4  ;;  %vm5153_vm7 = vcmp.eq.f32.partialorder %v5150_v4, inf  ;;  %v5156_v61 = vand.u32 2147483648, %v5150_v4  ;;  %vm5155_vm8 = vcmp.eq.f32.partialorder %v5150_v4, 0.0 }
0x41e1   :  { %v6443_v5 = vpop.eup %6442 }
0x41e2   :  { %v5152_v55 = vmul.f32 %v6443_v5, %v5150_v4 }
0x41e4   :  { %v5154_v62 = vsel %vm5153_vm7, %v5150_v4, %v5152_v55 }
0x41e5   :  { %v5157_v1 = vsel %vm5155_vm8, %v5156_v61, %v5154_v62 }
0x41e6   :  { %6444 = vrcp.f32 %v5157_v1 }
0x41f3   :  { %v6445_v6 = vpop.eup %6444 }
0x41f4   :  { %v5159_v7 = vmul.f32 %v6445_v6, %v5141_v53  ;;  %v5160_v27 = vmul.f32 %v6445_v6, %v5142_v52 }
0x41f6   :  { %v5163_v8 = vcombine.low %v5159_v7, %v5160_v27 }
0x41f8   :  { %5165 = vst [vmem:[#allocation20] sm:$0xff] %v5163_v8 }
0x41f9   :  { %6625 = shalt.err (!%p6622_p2)
}
0x41fa   :  { %5175 = dma.vmem_to_hbm [thread:$0]  %s5173_s24, 128, %s7837_s19, [#allocation8]  }
0x41fb   :  { %6644 = dma.done.wait [#allocation8], 128  }
0x41fc   :  { %6645 = vsyncadd [#allocation8], 4294967168 }
0x41fd   :  { %5179 = vsyncpa [#allocation7], 1 }
0x41fe   :  { %5180 = vsyncpa [#allocation10], 1 }
0x41ff   :  { %5181 = vsyncpa [#allocation13], 1 }
0x4200   :  { %5182 = vsyncpa [#allocation16], 1 }
0x4201   :  { %5183 = vsyncpa [#allocation19], 1 }
0x4202   :  { %5184 = vsyncpa [#allocation8], 1 }

</bundles_post_ra>
